<compile_context>
chip_gen: v7x
topology: tpu7x:2x2x1
jax: 0.10.0
libtpu: 0.0.40
codegen_flags: <defaults>
</compile_context>

<pallas_src>
import functools

import jax
import jax.numpy as jnp
from jax.experimental import pallas as pl
from jax.experimental.pallas import tpu as pltpu

_EPS = 1e-5                      # PyTorch BatchNorm default eps
_VMEM_LIMIT = 32 * 1024 * 1024   # explicit, conservative on all of v5e/v6e/v7x


def _round_up(x, m):
    return ((x + m - 1) // m) * m


# ----------------------------------------------------------------------------- Pallas kernels
def _conv_mm_kernel(w_ref, x_ref, b_ref, o_ref, *, act):
    # w: (Coutp, K) bf16 (BN scale pre-folded), x: (K, TM) bf16, b: (Coutp, 1) f32
    y = jnp.dot(w_ref[...], x_ref[...], preferred_element_type=jnp.float32)
    y = y + b_ref[...]
    if act == "relu":
        y = jnp.maximum(y, 0.0)
    elif act == "sigmoid":
        y = jax.nn.sigmoid(y)
    o_ref[...] = y.astype(o_ref.dtype)


def _pick_tm(mp):
    # multiple of 128 dividing mp; prefer >=2 grid blocks so both v7x TensorCores get work
    if mp <= 128:
        return mp
    for tm in (512, 256, 128):
        if mp % tm == 0 and mp // tm >= 2:
            return tm
    return 128


def conv_matmul(wt, shift, cols_t, act, out_dtype):
    """act( wt @ cols_t + shift ): wt [Coutp,K] bf16, cols_t [K,M] bf16, shift [Coutp,1] f32."""
    coutp, k = wt.shape
    k2, m = cols_t.shape
    assert k == k2
    mp = _round_up(m, 128)
    if mp != m:
        cols_t = jnp.pad(cols_t, ((0, 0), (0, mp - m)))
    tm = _pick_tm(mp)
    out = pl.pallas_call(
        functools.partial(_conv_mm_kernel, act=act),
        out_shape=jax.ShapeDtypeStruct((coutp, mp), out_dtype),
        grid=(mp // tm,),
        in_specs=[
            pl.BlockSpec((coutp, k), lambda i: (0, 0)),   # weight: constant-resident block
            pl.BlockSpec((k, tm), lambda i: (0, i)),
            pl.BlockSpec((coutp, 1), lambda i: (0, 0)),
        ],
        out_specs=pl.BlockSpec((coutp, tm), lambda i: (0, i)),
        compiler_params=pltpu.CompilerParams(
            dimension_semantics=("parallel",), vmem_limit_bytes=_VMEM_LIMIT),
    )(wt, cols_t, shift)
    return out[:, :m] if mp != m else out


_LIN_ACTS = ("relu", "relu", "sigmoid", "relu", "relu", "relu")


def _linear_stack_kernel(x_ref, *refs):
    # refs: w0..w5, b0..b5, code_ref, dec_ref   (all weights already BN-scale-folded)
    w_refs, b_refs = refs[:6], refs[6:12]
    code_ref, dec_ref = refs[12], refs[13]
    h = x_ref[...]
    for idx in range(6):
        h = jnp.dot(h, w_refs[idx][...], preferred_element_type=jnp.float32) + b_refs[idx][...]
        h = jax.nn.sigmoid(h) if _LIN_ACTS[idx] == "sigmoid" else jnp.maximum(h, 0.0)
        if idx == 2:
            code_ref[...] = h.astype(code_ref.dtype)      # latent code after sigmoid
    dec_ref[...] = h.astype(dec_ref.dtype)


def linear_stack(lin_layers, x):
    """All 6 Linear+BN+act layers (3 enc + 3 dec) in one pallas_call. x: [B, flat] f32."""
    b = x.shape[0]
    bp = _round_up(b, 8)
    if bp != b:
        x = jnp.pad(x, ((0, bp - b), (0, 0)))
    ws = [l["w"] for l in lin_layers]
    bs = [l["shift"] for l in lin_layers]
    h2 = ws[2].shape[1]
    flat = ws[5].shape[1]
    args = [x] + ws + bs

    def _spec(a):
        nd = a.ndim
        return pl.BlockSpec(a.shape, lambda i, _nd=nd: (0,) * _nd)

    code, dec = pl.pallas_call(
        _linear_stack_kernel,
        out_shape=(jax.ShapeDtypeStruct((bp, h2), jnp.float32),
                   jax.ShapeDtypeStruct((bp, flat), jnp.float32)),
        grid=(1,),
        in_specs=[_spec(a) for a in args],
        out_specs=(pl.BlockSpec((bp, h2), lambda i: (0, 0)),
                   pl.BlockSpec((bp, flat), lambda i: (0, 0))),
        compiler_params=pltpu.CompilerParams(vmem_limit_bytes=_VMEM_LIMIT),
    )(*args)
    return code[:b], dec[:b]


# ----------------------------------------------------------------------------- glue (indexing only)
def _im2col_t(x_cnhw, kh=4, kw=4, stride=2, pad=1):
    """Strided-conv patches, channel-major. x:[C,N,H,W] -> cols^T:[C*kh*kw, N*Ho*Wo]."""
    c, n, h, w = x_cnhw.shape
    ho = (h + 2 * pad - kh) // stride + 1
    wo = (w + 2 * pad - kw) // stride + 1
    xp = jnp.pad(x_cnhw, ((0, 0), (0, 0), (pad, pad), (pad, pad)))
    cols = [xp[:, :, i:i + stride * ho:stride, j:j + stride * wo:stride]
            for i in range(kh) for j in range(kw)]
    p = jnp.stack(cols, axis=1)                      # [C, kh*kw, N, Ho, Wo]
    return p.reshape(c * kh * kw, n * ho * wo), (n, ho, wo)


def _im2col_transposed_t(x_cnhw, kh=4, kw=4, stride=2, pad=1):
    """ConvTranspose = stride-1 conv over zero-dilated, re-padded input (channel-major)."""
    c, n, h, w = x_cnhw.shape
    ho, wo = (h - 1) * stride - 2 * pad + kh, (w - 1) * stride - 2 * pad + kw
    hd, wd = stride * (h - 1) + 1, stride * (w - 1) + 1
    xd = jnp.zeros((c, n, hd, wd), x_cnhw.dtype).at[:, :, ::stride, ::stride].set(x_cnhw)
    pp = kh - 1 - pad
    xp = jnp.pad(xd, ((0, 0), (0, 0), (pp, pp), (pp, pp)))
    cols = [xp[:, :, i:i + ho, j:j + wo] for i in range(kh) for j in range(kw)]
    p = jnp.stack(cols, axis=1)
    return p.reshape(c * kh * kw, n * ho * wo), (n, ho, wo)


# ----------------------------------------------------------------------------- parameter prep
def _fuse_bn(bias, bn):
    """Fold eval-mode BatchNorm + bias into per-output-channel (scale, shift)."""
    if bn is None:
        return jnp.ones_like(bias), bias
    gamma, beta, mean, var = bn
    s = gamma / jnp.sqrt(var + _EPS)
    return s, (bias - mean) * s + beta


def _prep_conv(w, b, bn, is_transpose):
    """Fold BN scale into weights; pre-flip/reshape/pad/cast once (static)."""
    if is_transpose:                                   # ConvTranspose2d weight [Cin, Cout, kh, kw]
        w = jnp.flip(w, axis=(2, 3)).transpose(1, 0, 2, 3)
    cout, cin, kh, kw = w.shape
    scale, shift = _fuse_bn(b, bn)
    wm = w.reshape(cout, cin * kh * kw) * scale[:, None]
    coutp = _round_up(cout, 8)
    wm = jnp.pad(wm, ((0, coutp - cout), (0, 0))).astype(jnp.bfloat16)
    sh = jnp.pad(shift, (0, coutp - cout)).reshape(coutp, 1).astype(jnp.float32)
    return {"wt": wm, "shift": sh, "cout": cout}


def _prep_linear(w, b, bn):
    scale, shift = _fuse_bn(b, bn)
    return {"w": (w * scale[:, None]).T.astype(jnp.float32),
            "shift": shift.reshape(1, -1).astype(jnp.float32)}


def prepare_params(params):
    return {
        "enc_conv": [_prep_conv(p["w"], p["b"], p["bn"], False) for p in params["enc_conv"]],
        "dec_conv": [_prep_conv(p["w"], p["b"], p["bn"], True) for p in params["dec_conv"]],
        "lin": [_prep_linear(p["w"], p["b"], p["bn"])
                for p in params["enc_lin"] + params["dec_lin"]],
    }


# ----------------------------------------------------------------------------- raw parameters
def _init_conv(key, cout, cin, k=4):
    k1, k2 = jax.random.split(key)
    return {"w": 0.05 * jax.random.normal(k1, (cout, cin, k, k), jnp.float32),
            "b": 0.05 * jax.random.normal(k2, (cout,), jnp.float32)}


def _init_convT(key, cin, cout, k=4):
    k1, k2 = jax.random.split(key)
    return {"w": 0.05 * jax.random.normal(k1, (cin, cout, k, k), jnp.float32),
            "b": 0.05 * jax.random.normal(k2, (cout,), jnp.float32)}


def _init_linear(key, nin, nout):
    k1, k2 = jax.random.split(key)
    return {"w": 0.05 * jax.random.normal(k1, (nout, nin), jnp.float32),
            "b": 0.05 * jax.random.normal(k2, (nout,), jnp.float32)}


def _init_bn(key, n):
    k1, k2, k3, k4 = jax.random.split(key, 4)
    return (jax.random.uniform(k1, (n,), jnp.float32, 0.5, 1.5),
            0.1 * jax.random.normal(k2, (n,), jnp.float32),
            0.1 * jax.random.normal(k3, (n,), jnp.float32),
            jax.random.uniform(k4, (n,), jnp.float32, 0.5, 1.5))


def init_cae_params(key, height, width, color_ch, cnn_chs, h_dims):
    c0, c1, c2, c3 = cnn_chs
    h0, h1, h2 = h_dims
    flat = c3 * (height // 16) * (width // 16)
    keys = iter(jax.random.split(key, 64))

    enc_conv = []
    for cin, cout in [(color_ch, c0), (c0, c1), (c1, c2), (c2, c3)]:
        p = _init_conv(next(keys), cout, cin)
        p["bn"] = _init_bn(next(keys), cout)
        enc_conv.append(p)

    enc_lin = []
    for nin, nout in [(flat, h0), (h0, h1), (h1, h2)]:
        p = _init_linear(next(keys), nin, nout)
        p["bn"] = _init_bn(next(keys), nout)
        enc_lin.append(p)

    dec_lin = []
    for nin, nout in [(h2, h1), (h1, h0), (h0, flat)]:
        p = _init_linear(next(keys), nin, nout)
        p["bn"] = _init_bn(next(keys), nout)
        dec_lin.append(p)

    dec_conv = []
    for idx, (cin, cout) in enumerate([(c3, c2), (c2, c1), (c1, c0), (c0, color_ch)]):
        p = _init_convT(next(keys), cin, cout)
        p["bn"] = _init_bn(next(keys), cout) if idx < 3 else None   # last ConvT has no BN
        dec_conv.append(p)

    return {"enc_conv": enc_conv, "enc_lin": enc_lin,
            "dec_lin": dec_lin, "dec_conv": dec_conv}


# ----------------------------------------------------------------------------- forward
def cae_forward(prep, x_nchw):
    # encoder conv stack: channel-major (C, N, H, W), bf16 activations
    h = x_nchw.transpose(1, 0, 2, 3).astype(jnp.bfloat16)
    for layer in prep["enc_conv"]:
        cols_t, (n, ho, wo) = _im2col_t(h)
        y = conv_matmul(layer["wt"], layer["shift"], cols_t, "relu", jnp.bfloat16)
        h = y[:layer["cout"]].reshape(layer["cout"], n, ho, wo)
    c3, n, hc, wc = h.shape

    # fused linear stack (3 encoder + 3 decoder Linear+BN+act in ONE kernel)
    flat = h.transpose(1, 0, 2, 3).reshape(n, c3 * hc * wc).astype(jnp.float32)
    code, dec = linear_stack(prep["lin"], flat)

    # decoder conv-transpose stack
    d = dec.reshape(n, c3, hc, wc).transpose(1, 0, 2, 3).astype(jnp.bfloat16)
    num_dec = len(prep["dec_conv"])
    for idx, layer in enumerate(prep["dec_conv"]):
        cols_t, (n2, ho, wo) = _im2col_transposed_t(d)
        out_dtype = jnp.float32 if idx == num_dec - 1 else jnp.bfloat16
        y = conv_matmul(layer["wt"], layer["shift"], cols_t, "relu", out_dtype)
        d = y[:layer["cout"]].reshape(layer["cout"], n2, ho, wo)
    x_hat = d.transpose(1, 0, 2, 3)                     # back to NCHW, f32
    return code, x_hat


# ----------------------------------------------------------------------------- main
if __name__ == "__main__":
    # H=W=32 so four stride-2 convs give a 2x2 feature map (matches PyTorch convoluted_size).
    batch, color_ch, H, W = 2, 3, 32, 32
    cnn_chs = (8, 16, 32, 64)
    h_dims = (128, 64, 32)

    key = jax.random.PRNGKey(0)
    kp, kx = jax.random.split(key)
    raw_params = init_cae_params(kp, H, W, color_ch, cnn_chs, h_dims)
    prep = prepare_params(raw_params)          # BN-folded, padded, bf16 weights (static)
    x = jax.random.normal(kx, (batch, color_ch, H, W), jnp.float32)

    fwd = jax.jit(lambda xx: cae_forward(prep, xx))
    h, x_hat = fwd(x)
    jax.block_until_ready((h, x_hat))

    assert h.shape == (batch, h_dims[2])
    assert x_hat.shape == (batch, color_ch, H, W)
    assert bool(jnp.all(jnp.isfinite(h))) and bool(jnp.all(jnp.isfinite(x_hat)))
    # TODO(synk): training-mode BatchNorm (batch statistics) is not reproduced; eval-mode
    # running-stats affine is folded into the fused matmul weights/shift instead.
    print("KERNEL_OK")
</pallas_src>

<mosaic_0001>
module attributes {stable_mosaic.version = 11 : i64} {
  func.func @_conv_mm_kernel(%arg0: i32, %arg1: memref<8x48xbf16, #tpu.memory_space<vmem>>, %arg2: memref<48x256xbf16, #tpu.memory_space<vmem>>, %arg3: memref<8x1xf32, #tpu.memory_space<vmem>>, %arg4: memref<8x256xbf16, #tpu.memory_space<vmem>>) attributes {dimension_semantics = [#tpu.dimension_semantics<parallel>], iteration_bounds = array<i64: 2>, scalar_prefetch = 0 : i64, scratch_operands = 0 : i64, tpu.core_type = #tpu.core_type<tc>, window_params = [{pipeline_mode = #tpu.pipeline_mode<synchronous>, transform_indices = @transform_0, window_bounds = array<i64: 8, 48>}, {transform_indices = @transform_1, window_bounds = array<i64: 48, 256>}, {pipeline_mode = #tpu.pipeline_mode<synchronous>, transform_indices = @transform_2, window_bounds = array<i64: 8, 1>}, {transform_indices = @transform_3, window_bounds = array<i64: 8, 256>}]} {
    %c0 = arith.constant 0 : index
    %c0_0 = arith.constant 0 : index
    %0 = vector.load %arg1[%c0, %c0_0] : memref<8x48xbf16, #tpu.memory_space<vmem>>, vector<8x48xbf16>
    %c0_1 = arith.constant 0 : index
    %c0_2 = arith.constant 0 : index
    %1 = vector.load %arg2[%c0_1, %c0_2] : memref<48x256xbf16, #tpu.memory_space<vmem>>, vector<48x256xbf16>
    %cst = arith.constant dense<0.000000e+00> : vector<8x256xf32>
    %2 = tpu.matmul %0, %1, %cst {dimension_numbers = #tpu.dot_dimension_numbers<[1], [0], [0], [1], [0, 0, 1, 1], [], []>} : vector<8x48xbf16>, vector<48x256xbf16>, vector<8x256xf32> -> vector<8x256xf32>
    %c0_3 = arith.constant 0 : index
    %c0_4 = arith.constant 0 : index
    %3 = vector.load %arg3[%c0_3, %c0_4] : memref<8x1xf32, #tpu.memory_space<vmem>>, vector<8x1xf32>
    %4 = vector.broadcast %3 : vector<8x1xf32> to vector<8x256xf32>
    %5 = arith.addf %2, %4 : vector<8x256xf32>
    %cst_5 = arith.constant 0.000000e+00 : f32
    %6 = vector.broadcast %cst_5 : f32 to vector<8x256xf32>
    %7 = arith.maximumf %5, %6 : vector<8x256xf32>
    %8 = arith.truncf %7 : vector<8x256xf32> to vector<8x256xbf16>
    %c0_6 = arith.constant 0 : index
    %c0_7 = arith.constant 0 : index
    %9 = vector.load %arg4[%c0_6, %c0_7] : memref<8x256xbf16, #tpu.memory_space<vmem>>, vector<8x256xbf16>
    tpu.vector_store %arg4[%c0_6, %c0_7], %8 {strides = array<i32>} : memref<8x256xbf16, #tpu.memory_space<vmem>>, vector<8x256xbf16>,
    return
  }
  func.func @transform_0(%arg0: i32) -> (i32, i32) {
    %c0_i32 = arith.constant 0 : i32
    %c0_i32_0 = arith.constant 0 : i32
    %c0_i32_1 = arith.constant 0 : i32
    return %c0_i32, %c0_i32_0 : i32, i32
  }
  func.func @transform_1(%arg0: i32) -> (i32, i32) {
    %c0_i32 = arith.constant 0 : i32
    %c0_i32_0 = arith.constant 0 : i32
    return %c0_i32, %arg0 : i32, i32
  }
  func.func @transform_2(%arg0: i32) -> (i32, i32) {
    %c0_i32 = arith.constant 0 : i32
    %c0_i32_0 = arith.constant 0 : i32
    %c0_i32_1 = arith.constant 0 : i32
    return %c0_i32, %c0_i32_0 : i32, i32
  }
  func.func @transform_3(%arg0: i32) -> (i32, i32) {
    %c0_i32 = arith.constant 0 : i32
    %c0_i32_0 = arith.constant 0 : i32
    return %c0_i32, %arg0 : i32, i32
  }
}

module attributes {stable_mosaic.version = 11 : i64} {
  func.func @_conv_mm_kernel(%arg0: i32, %arg1: memref<16x128xbf16, #tpu.memory_space<vmem>>, %arg2: memref<128x128xbf16, #tpu.memory_space<vmem>>, %arg3: memref<16x1xf32, #tpu.memory_space<vmem>>, %arg4: memref<16x128xbf16, #tpu.memory_space<vmem>>) attributes {dimension_semantics = [#tpu.dimension_semantics<parallel>], iteration_bounds = array<i64: 1>, scalar_prefetch = 0 : i64, scratch_operands = 0 : i64, tpu.core_type = #tpu.core_type<tc>, window_params = [{pipeline_mode = #tpu.pipeline_mode<synchronous>, transform_indices = @transform_0, window_bounds = array<i64: 16, 128>}, {transform_indices = @transform_1, window_bounds = array<i64: 128, 128>}, {pipeline_mode = #tpu.pipeline_mode<synchronous>, transform_indices = @transform_2, window_bounds = array<i64: 16, 1>}, {transform_indices = @transform_3, window_bounds = array<i64: 16, 128>}]} {
    %c0 = arith.constant 0 : index
    %c0_0 = arith.constant 0 : index
    %0 = vector.load %arg1[%c0, %c0_0] : memref<16x128xbf16, #tpu.memory_space<vmem>>, vector<16x128xbf16>
    %c0_1 = arith.constant 0 : index
    %c0_2 = arith.constant 0 : index
    %1 = vector.load %arg2[%c0_1, %c0_2] : memref<128x128xbf16, #tpu.memory_space<vmem>>, vector<128x128xbf16>
    %cst = arith.constant dense<0.000000e+00> : vector<16x128xf32>
    %2 = tpu.matmul %0, %1, %cst {dimension_numbers = #tpu.dot_dimension_numbers<[1], [0], [0], [1], [0, 0, 1, 1], [], []>} : vector<16x128xbf16>, vector<128x128xbf16>, vector<16x128xf32> -> vector<16x128xf32>
    %c0_3 = arith.constant 0 : index
    %c0_4 = arith.constant 0 : index
    %3 = vector.load %arg3[%c0_3, %c0_4] : memref<16x1xf32, #tpu.memory_space<vmem>>, vector<16x1xf32>
    %4 = vector.broadcast %3 : vector<16x1xf32> to vector<16x128xf32>
    %5 = arith.addf %2, %4 : vector<16x128xf32>
    %cst_5 = arith.constant 0.000000e+00 : f32
    %6 = vector.broadcast %cst_5 : f32 to vector<16x128xf32>
    %7 = arith.maximumf %5, %6 : vector<16x128xf32>
    %8 = arith.truncf %7 : vector<16x128xf32> to vector<16x128xbf16>
    %c0_6 = arith.constant 0 : index
    %c0_7 = arith.constant 0 : index
    %9 = vector.load %arg4[%c0_6, %c0_7] : memref<16x128xbf16, #tpu.memory_space<vmem>>, vector<16x128xbf16>
    tpu.vector_store %arg4[%c0_6, %c0_7], %8 {strides = array<i32>} : memref<16x128xbf16, #tpu.memory_space<vmem>>, vector<16x128xbf16>,
    return
  }
  func.func @transform_0(%arg0: i32) -> (i32, i32) {
    %c0_i32 = arith.constant 0 : i32
    %c0_i32_0 = arith.constant 0 : i32
    %c0_i32_1 = arith.constant 0 : i32
    return %c0_i32, %c0_i32_0 : i32, i32
  }
  func.func @transform_1(%arg0: i32) -> (i32, i32) {
    %c0_i32 = arith.constant 0 : i32
    %c0_i32_0 = arith.constant 0 : i32
    return %c0_i32, %arg0 : i32, i32
  }
  func.func @transform_2(%arg0: i32) -> (i32, i32) {
    %c0_i32 = arith.constant 0 : i32
    %c0_i32_0 = arith.constant 0 : i32
    %c0_i32_1 = arith.constant 0 : i32
    return %c0_i32, %c0_i32_0 : i32, i32
  }
  func.func @transform_3(%arg0: i32) -> (i32, i32) {
    %c0_i32 = arith.constant 0 : i32
    %c0_i32_0 = arith.constant 0 : i32
    return %c0_i32, %arg0 : i32, i32
  }
}

module attributes {stable_mosaic.version = 11 : i64} {
  func.func @_conv_mm_kernel(%arg0: i32, %arg1: memref<32x256xbf16, #tpu.memory_space<vmem>>, %arg2: memref<256x128xbf16, #tpu.memory_space<vmem>>, %arg3: memref<32x1xf32, #tpu.memory_space<vmem>>, %arg4: memref<32x128xbf16, #tpu.memory_space<vmem>>) attributes {dimension_semantics = [#tpu.dimension_semantics<parallel>], iteration_bounds = array<i64: 1>, scalar_prefetch = 0 : i64, scratch_operands = 0 : i64, tpu.core_type = #tpu.core_type<tc>, window_params = [{pipeline_mode = #tpu.pipeline_mode<synchronous>, transform_indices = @transform_0, window_bounds = array<i64: 32, 256>}, {transform_indices = @transform_1, window_bounds = array<i64: 256, 128>}, {pipeline_mode = #tpu.pipeline_mode<synchronous>, transform_indices = @transform_2, window_bounds = array<i64: 32, 1>}, {transform_indices = @transform_3, window_bounds = array<i64: 32, 128>}]} {
    %c0 = arith.constant 0 : index
    %c0_0 = arith.constant 0 : index
    %0 = vector.load %arg1[%c0, %c0_0] : memref<32x256xbf16, #tpu.memory_space<vmem>>, vector<32x256xbf16>
    %c0_1 = arith.constant 0 : index
    %c0_2 = arith.constant 0 : index
    %1 = vector.load %arg2[%c0_1, %c0_2] : memref<256x128xbf16, #tpu.memory_space<vmem>>, vector<256x128xbf16>
    %cst = arith.constant dense<0.000000e+00> : vector<32x128xf32>
    %2 = tpu.matmul %0, %1, %cst {dimension_numbers = #tpu.dot_dimension_numbers<[1], [0], [0], [1], [0, 0, 1, 1], [], []>} : vector<32x256xbf16>, vector<256x128xbf16>, vector<32x128xf32> -> vector<32x128xf32>
    %c0_3 = arith.constant 0 : index
    %c0_4 = arith.constant 0 : index
    %3 = vector.load %arg3[%c0_3, %c0_4] : memref<32x1xf32, #tpu.memory_space<vmem>>, vector<32x1xf32>
    %4 = vector.broadcast %3 : vector<32x1xf32> to vector<32x128xf32>
    %5 = arith.addf %2, %4 : vector<32x128xf32>
    %cst_5 = arith.constant 0.000000e+00 : f32
    %6 = vector.broadcast %cst_5 : f32 to vector<32x128xf32>
    %7 = arith.maximumf %5, %6 : vector<32x128xf32>
    %8 = arith.truncf %7 : vector<32x128xf32> to vector<32x128xbf16>
    %c0_6 = arith.constant 0 : index
    %c0_7 = arith.constant 0 : index
    %9 = vector.load %arg4[%c0_6, %c0_7] : memref<32x128xbf16, #tpu.memory_space<vmem>>, vector<32x128xbf16>
    tpu.vector_store %arg4[%c0_6, %c0_7], %8 {strides = array<i32>} : memref<32x128xbf16, #tpu.memory_space<vmem>>, vector<32x128xbf16>,
    return
  }
  func.func @transform_0(%arg0: i32) -> (i32, i32) {
    %c0_i32 = arith.constant 0 : i32
    %c0_i32_0 = arith.constant 0 : i32
    %c0_i32_1 = arith.constant 0 : i32
    return %c0_i32, %c0_i32_0 : i32, i32
  }
  func.func @transform_1(%arg0: i32) -> (i32, i32) {
    %c0_i32 = arith.constant 0 : i32
    %c0_i32_0 = arith.constant 0 : i32
    return %c0_i32, %arg0 : i32, i32
  }
  func.func @transform_2(%arg0: i32) -> (i32, i32) {
    %c0_i32 = arith.constant 0 : i32
    %c0_i32_0 = arith.constant 0 : i32
    %c0_i32_1 = arith.constant 0 : i32
    return %c0_i32, %c0_i32_0 : i32, i32
  }
  func.func @transform_3(%arg0: i32) -> (i32, i32) {
    %c0_i32 = arith.constant 0 : i32
    %c0_i32_0 = arith.constant 0 : i32
    return %c0_i32, %arg0 : i32, i32
  }
}

module attributes {stable_mosaic.version = 11 : i64} {
  func.func @_conv_mm_kernel(%arg0: i32, %arg1: memref<64x512xbf16, #tpu.memory_space<vmem>>, %arg2: memref<512x128xbf16, #tpu.memory_space<vmem>>, %arg3: memref<64x1xf32, #tpu.memory_space<vmem>>, %arg4: memref<64x128xbf16, #tpu.memory_space<vmem>>) attributes {dimension_semantics = [#tpu.dimension_semantics<parallel>], iteration_bounds = array<i64: 1>, scalar_prefetch = 0 : i64, scratch_operands = 0 : i64, tpu.core_type = #tpu.core_type<tc>, window_params = [{pipeline_mode = #tpu.pipeline_mode<synchronous>, transform_indices = @transform_0, window_bounds = array<i64: 64, 512>}, {transform_indices = @transform_1, window_bounds = array<i64: 512, 128>}, {pipeline_mode = #tpu.pipeline_mode<synchronous>, transform_indices = @transform_2, window_bounds = array<i64: 64, 1>}, {transform_indices = @transform_3, window_bounds = array<i64: 64, 128>}]} {
    %c0 = arith.constant 0 : index
    %c0_0 = arith.constant 0 : index
    %0 = vector.load %arg1[%c0, %c0_0] : memref<64x512xbf16, #tpu.memory_space<vmem>>, vector<64x512xbf16>
    %c0_1 = arith.constant 0 : index
    %c0_2 = arith.constant 0 : index
    %1 = vector.load %arg2[%c0_1, %c0_2] : memref<512x128xbf16, #tpu.memory_space<vmem>>, vector<512x128xbf16>
    %cst = arith.constant dense<0.000000e+00> : vector<64x128xf32>
    %2 = tpu.matmul %0, %1, %cst {dimension_numbers = #tpu.dot_dimension_numbers<[1], [0], [0], [1], [0, 0, 1, 1], [], []>} : vector<64x512xbf16>, vector<512x128xbf16>, vector<64x128xf32> -> vector<64x128xf32>
    %c0_3 = arith.constant 0 : index
    %c0_4 = arith.constant 0 : index
    %3 = vector.load %arg3[%c0_3, %c0_4] : memref<64x1xf32, #tpu.memory_space<vmem>>, vector<64x1xf32>
    %4 = vector.broadcast %3 : vector<64x1xf32> to vector<64x128xf32>
    %5 = arith.addf %2, %4 : vector<64x128xf32>
    %cst_5 = arith.constant 0.000000e+00 : f32
    %6 = vector.broadcast %cst_5 : f32 to vector<64x128xf32>
    %7 = arith.maximumf %5, %6 : vector<64x128xf32>
    %8 = arith.truncf %7 : vector<64x128xf32> to vector<64x128xbf16>
    %c0_6 = arith.constant 0 : index
    %c0_7 = arith.constant 0 : index
    %9 = vector.load %arg4[%c0_6, %c0_7] : memref<64x128xbf16, #tpu.memory_space<vmem>>, vector<64x128xbf16>
    tpu.vector_store %arg4[%c0_6, %c0_7], %8 {strides = array<i32>} : memref<64x128xbf16, #tpu.memory_space<vmem>>, vector<64x128xbf16>,
    return
  }
  func.func @transform_0(%arg0: i32) -> (i32, i32) {
    %c0_i32 = arith.constant 0 : i32
    %c0_i32_0 = arith.constant 0 : i32
    %c0_i32_1 = arith.constant 0 : i32
    return %c0_i32, %c0_i32_0 : i32, i32
  }
  func.func @transform_1(%arg0: i32) -> (i32, i32) {
    %c0_i32 = arith.constant 0 : i32
    %c0_i32_0 = arith.constant 0 : i32
    return %c0_i32, %arg0 : i32, i32
  }
  func.func @transform_2(%arg0: i32) -> (i32, i32) {
    %c0_i32 = arith.constant 0 : i32
    %c0_i32_0 = arith.constant 0 : i32
    %c0_i32_1 = arith.constant 0 : i32
    return %c0_i32, %c0_i32_0 : i32, i32
  }
  func.func @transform_3(%arg0: i32) -> (i32, i32) {
    %c0_i32 = arith.constant 0 : i32
    %c0_i32_0 = arith.constant 0 : i32
    return %c0_i32, %arg0 : i32, i32
  }
}

module attributes {stable_mosaic.version = 11 : i64} {
  func.func @_linear_stack_kernel(%arg0: i32, %arg1: memref<8x256xf32, #tpu.memory_space<vmem>>, %arg2: memref<256x128xf32, #tpu.memory_space<vmem>>, %arg3: memref<128x64xf32, #tpu.memory_space<vmem>>, %arg4: memref<64x32xf32, #tpu.memory_space<vmem>>, %arg5: memref<32x64xf32, #tpu.memory_space<vmem>>, %arg6: memref<64x128xf32, #tpu.memory_space<vmem>>, %arg7: memref<128x256xf32, #tpu.memory_space<vmem>>, %arg8: memref<1x128xf32, #tpu.memory_space<vmem>>, %arg9: memref<1x64xf32, #tpu.memory_space<vmem>>, %arg10: memref<1x32xf32, #tpu.memory_space<vmem>>, %arg11: memref<1x64xf32, #tpu.memory_space<vmem>>, %arg12: memref<1x128xf32, #tpu.memory_space<vmem>>, %arg13: memref<1x256xf32, #tpu.memory_space<vmem>>, %arg14: memref<8x32xf32, #tpu.memory_space<vmem>>, %arg15: memref<8x256xf32, #tpu.memory_space<vmem>>) attributes {dimension_semantics = [#tpu.dimension_semantics<arbitrary>], iteration_bounds = array<i64: 1>, scalar_prefetch = 0 : i64, scratch_operands = 0 : i64, tpu.core_type = #tpu.core_type<tc>, window_params = [{pipeline_mode = #tpu.pipeline_mode<synchronous>, transform_indices = @transform_0, window_bounds = array<i64: 8, 256>}, {pipeline_mode = #tpu.pipeline_mode<synchronous>, transform_indices = @transform_1, window_bounds = array<i64: 256, 128>}, {pipeline_mode = #tpu.pipeline_mode<synchronous>, transform_indices = @transform_2, window_bounds = array<i64: 128, 64>}, {pipeline_mode = #tpu.pipeline_mode<synchronous>, transform_indices = @transform_3, window_bounds = array<i64: 64, 32>}, {pipeline_mode = #tpu.pipeline_mode<synchronous>, transform_indices = @transform_4, window_bounds = array<i64: 32, 64>}, {pipeline_mode = #tpu.pipeline_mode<synchronous>, transform_indices = @transform_5, window_bounds = array<i64: 64, 128>}, {pipeline_mode = #tpu.pipeline_mode<synchronous>, transform_indices = @transform_6, window_bounds = array<i64: 128, 256>}, {pipeline_mode = #tpu.pipeline_mode<synchronous>, transform_indices = @transform_7, window_bounds = array<i64: 1, 128>}, {pipeline_mode = #tpu.pipeline_mode<synchronous>, transform_indices = @transform_8, window_bounds = array<i64: 1, 64>}, {pipeline_mode = #tpu.pipeline_mode<synchronous>, transform_indices = @transform_9, window_bounds = array<i64: 1, 32>}, {pipeline_mode = #tpu.pipeline_mode<synchronous>, transform_indices = @transform_10, window_bounds = array<i64: 1, 64>}, {pipeline_mode = #tpu.pipeline_mode<synchronous>, transform_indices = @transform_11, window_bounds = array<i64: 1, 128>}, {pipeline_mode = #tpu.pipeline_mode<synchronous>, transform_indices = @transform_12, window_bounds = array<i64: 1, 256>}, {pipeline_mode = #tpu.pipeline_mode<synchronous>, transform_indices = @transform_13, window_bounds = array<i64: 8, 32>}, {pipeline_mode = #tpu.pipeline_mode<synchronous>, transform_indices = @transform_14, window_bounds = array<i64: 8, 256>}]} {
    %c0 = arith.constant 0 : index
    %c0_0 = arith.constant 0 : index
    %0 = vector.load %arg1[%c0, %c0_0] : memref<8x256xf32, #tpu.memory_space<vmem>>, vector<8x256xf32>
    %c0_1 = arith.constant 0 : index
    %c0_2 = arith.constant 0 : index
    %1 = vector.load %arg2[%c0_1, %c0_2] : memref<256x128xf32, #tpu.memory_space<vmem>>, vector<256x128xf32>
    %cst = arith.constant dense<0.000000e+00> : vector<8x128xf32>
    %2 = tpu.matmul %0, %1, %cst {dimension_numbers = #tpu.dot_dimension_numbers<[1], [0], [0], [1], [0, 0, 1, 1], [], []>} : vector<8x256xf32>, vector<256x128xf32>, vector<8x128xf32> -> vector<8x128xf32>
    %c0_3 = arith.constant 0 : index
    %c0_4 = arith.constant 0 : index
    %3 = vector.load %arg8[%c0_3, %c0_4] : memref<1x128xf32, #tpu.memory_space<vmem>>, vector<1x128xf32>
    %4 = vector.broadcast %3 : vector<1x128xf32> to vector<8x128xf32>
    %5 = arith.addf %2, %4 : vector<8x128xf32>
    %cst_5 = arith.constant 0.000000e+00 : f32
    %6 = vector.broadcast %cst_5 : f32 to vector<8x128xf32>
    %7 = arith.maximumf %5, %6 : vector<8x128xf32>
    %c0_6 = arith.constant 0 : index
    %c0_7 = arith.constant 0 : index
    %8 = vector.load %arg3[%c0_6, %c0_7] : memref<128x64xf32, #tpu.memory_space<vmem>>, vector<128x64xf32>
    %cst_8 = arith.constant dense<0.000000e+00> : vector<8x64xf32>
    %9 = tpu.matmul %7, %8, %cst_8 {dimension_numbers = #tpu.dot_dimension_numbers<[1], [0], [0], [1], [0, 0, 1, 1], [], []>} : vector<8x128xf32>, vector<128x64xf32>, vector<8x64xf32> -> vector<8x64xf32>
    %c0_9 = arith.constant 0 : index
    %c0_10 = arith.constant 0 : index
    %10 = vector.load %arg9[%c0_9, %c0_10] : memref<1x64xf32, #tpu.memory_space<vmem>>, vector<1x64xf32>
    %11 = vector.broadcast %10 : vector<1x64xf32> to vector<8x64xf32>
    %12 = arith.addf %9, %11 : vector<8x64xf32>
    %cst_11 = arith.constant 0.000000e+00 : f32
    %13 = vector.broadcast %cst_11 : f32 to vector<8x64xf32>
    %14 = arith.maximumf %12, %13 : vector<8x64xf32>
    %c0_12 = arith.constant 0 : index
    %c0_13 = arith.constant 0 : index
    %15 = vector.load %arg4[%c0_12, %c0_13] : memref<64x32xf32, #tpu.memory_space<vmem>>, vector<64x32xf32>
    %cst_14 = arith.constant dense<0.000000e+00> : vector<8x32xf32>
    %16 = tpu.matmul %14, %15, %cst_14 {dimension_numbers = #tpu.dot_dimension_numbers<[1], [0], [0], [1], [0, 0, 1, 1], [], []>} : vector<8x64xf32>, vector<64x32xf32>, vector<8x32xf32> -> vector<8x32xf32>
    %c0_15 = arith.constant 0 : index
    %c0_16 = arith.constant 0 : index
    %17 = vector.load %arg10[%c0_15, %c0_16] : memref<1x32xf32, #tpu.memory_space<vmem>>, vector<1x32xf32>
    %18 = vector.broadcast %17 : vector<1x32xf32> to vector<8x32xf32>
    %19 = arith.addf %16, %18 : vector<8x32xf32>
    %20 = arith.negf %19 : vector<8x32xf32>
    %21 = math.exp %20 : vector<8x32xf32>
    %cst_17 = arith.constant 1.000000e+00 : f32
    %22 = vector.broadcast %cst_17 : f32 to vector<8x32xf32>
    %23 = arith.addf %22, %21 : vector<8x32xf32>
    %24 = arith.divf %22, %23 : vector<8x32xf32>
    %c0_18 = arith.constant 0 : index
    %c0_19 = arith.constant 0 : index
    %25 = vector.load %arg14[%c0_18, %c0_19] : memref<8x32xf32, #tpu.memory_space<vmem>>, vector<8x32xf32>
    tpu.vector_store %arg14[%c0_18, %c0_19], %24 {strides = array<i32>} : memref<8x32xf32, #tpu.memory_space<vmem>>, vector<8x32xf32>,
    %c0_20 = arith.constant 0 : index
    %c0_21 = arith.constant 0 : index
    %26 = vector.load %arg5[%c0_20, %c0_21] : memref<32x64xf32, #tpu.memory_space<vmem>>, vector<32x64xf32>
    %cst_22 = arith.constant dense<0.000000e+00> : vector<8x64xf32>
    %27 = tpu.matmul %24, %26, %cst_22 {dimension_numbers = #tpu.dot_dimension_numbers<[1], [0], [0], [1], [0, 0, 1, 1], [], []>} : vector<8x32xf32>, vector<32x64xf32>, vector<8x64xf32> -> vector<8x64xf32>
    %c0_23 = arith.constant 0 : index
    %c0_24 = arith.constant 0 : index
    %28 = vector.load %arg11[%c0_23, %c0_24] : memref<1x64xf32, #tpu.memory_space<vmem>>, vector<1x64xf32>
    %29 = vector.broadcast %28 : vector<1x64xf32> to vector<8x64xf32>
    %30 = arith.addf %27, %29 : vector<8x64xf32>
    %cst_25 = arith.constant 0.000000e+00 : f32
    %31 = vector.broadcast %cst_25 : f32 to vector<8x64xf32>
    %32 = arith.maximumf %30, %31 : vector<8x64xf32>
    %c0_26 = arith.constant 0 : index
    %c0_27 = arith.constant 0 : index
    %33 = vector.load %arg6[%c0_26, %c0_27] : memref<64x128xf32, #tpu.memory_space<vmem>>, vector<64x128xf32>
    %cst_28 = arith.constant dense<0.000000e+00> : vector<8x128xf32>
    %34 = tpu.matmul %32, %33, %cst_28 {dimension_numbers = #tpu.dot_dimension_numbers<[1], [0], [0], [1], [0, 0, 1, 1], [], []>} : vector<8x64xf32>, vector<64x128xf32>, vector<8x128xf32> -> vector<8x128xf32>
    %c0_29 = arith.constant 0 : index
    %c0_30 = arith.constant 0 : index
    %35 = vector.load %arg12[%c0_29, %c0_30] : memref<1x128xf32, #tpu.memory_space<vmem>>, vector<1x128xf32>
    %36 = vector.broadcast %35 : vector<1x128xf32> to vector<8x128xf32>
    %37 = arith.addf %34, %36 : vector<8x128xf32>
    %cst_31 = arith.constant 0.000000e+00 : f32
    %38 = vector.broadcast %cst_31 : f32 to vector<8x128xf32>
    %39 = arith.maximumf %37, %38 : vector<8x128xf32>
    %c0_32 = arith.constant 0 : index
    %c0_33 = arith.constant 0 : index
    %40 = vector.load %arg7[%c0_32, %c0_33] : memref<128x256xf32, #tpu.memory_space<vmem>>, vector<128x256xf32>
    %cst_34 = arith.constant dense<0.000000e+00> : vector<8x256xf32>
    %41 = tpu.matmul %39, %40, %cst_34 {dimension_numbers = #tpu.dot_dimension_numbers<[1], [0], [0], [1], [0, 0, 1, 1], [], []>} : vector<8x128xf32>, vector<128x256xf32>, vector<8x256xf32> -> vector<8x256xf32>
    %c0_35 = arith.constant 0 : index
    %c0_36 = arith.constant 0 : index
    %42 = vector.load %arg13[%c0_35, %c0_36] : memref<1x256xf32, #tpu.memory_space<vmem>>, vector<1x256xf32>
    %43 = vector.broadcast %42 : vector<1x256xf32> to vector<8x256xf32>
    %44 = arith.addf %41, %43 : vector<8x256xf32>
    %cst_37 = arith.constant 0.000000e+00 : f32
    %45 = vector.broadcast %cst_37 : f32 to vector<8x256xf32>
    %46 = arith.maximumf %44, %45 : vector<8x256xf32>
    %c0_38 = arith.constant 0 : index
    %c0_39 = arith.constant 0 : index
    %47 = vector.load %arg15[%c0_38, %c0_39] : memref<8x256xf32, #tpu.memory_space<vmem>>, vector<8x256xf32>
    tpu.vector_store %arg15[%c0_38, %c0_39], %46 {strides = array<i32>} : memref<8x256xf32, #tpu.memory_space<vmem>>, vector<8x256xf32>,
    return
  }
  func.func @transform_0(%arg0: i32) -> (i32, i32) {
    %c0_i32 = arith.constant 0 : i32
    %c0_i32_0 = arith.constant 0 : i32
    %c0_i32_1 = arith.constant 0 : i32
    return %c0_i32, %c0_i32_0 : i32, i32
  }
  func.func @transform_1(%arg0: i32) -> (i32, i32) {
    %c0_i32 = arith.constant 0 : i32
    %c0_i32_0 = arith.constant 0 : i32
    %c0_i32_1 = arith.constant 0 : i32
    return %c0_i32, %c0_i32_0 : i32, i32
  }
  func.func @transform_2(%arg0: i32) -> (i32, i32) {
    %c0_i32 = arith.constant 0 : i32
    %c0_i32_0 = arith.constant 0 : i32
    %c0_i32_1 = arith.constant 0 : i32
    return %c0_i32, %c0_i32_0 : i32, i32
  }
  func.func @transform_3(%arg0: i32) -> (i32, i32) {
    %c0_i32 = arith.constant 0 : i32
    %c0_i32_0 = arith.constant 0 : i32
    %c0_i32_1 = arith.constant 0 : i32
    return %c0_i32, %c0_i32_0 : i32, i32
  }
  func.func @transform_4(%arg0: i32) -> (i32, i32) {
    %c0_i32 = arith.constant 0 : i32
    %c0_i32_0 = arith.constant 0 : i32
    %c0_i32_1 = arith.constant 0 : i32
    return %c0_i32, %c0_i32_0 : i32, i32
  }
  func.func @transform_5(%arg0: i32) -> (i32, i32) {
    %c0_i32 = arith.constant 0 : i32
    %c0_i32_0 = arith.constant 0 : i32
    %c0_i32_1 = arith.constant 0 : i32
    return %c0_i32, %c0_i32_0 : i32, i32
  }
  func.func @transform_6(%arg0: i32) -> (i32, i32) {
    %c0_i32 = arith.constant 0 : i32
    %c0_i32_0 = arith.constant 0 : i32
    %c0_i32_1 = arith.constant 0 : i32
    return %c0_i32, %c0_i32_0 : i32, i32
  }
  func.func @transform_7(%arg0: i32) -> (i32, i32) {
    %c0_i32 = arith.constant 0 : i32
    %c0_i32_0 = arith.constant 0 : i32
    %c0_i32_1 = arith.constant 0 : i32
    return %c0_i32, %c0_i32_0 : i32, i32
  }
  func.func @transform_8(%arg0: i32) -> (i32, i32) {
    %c0_i32 = arith.constant 0 : i32
    %c0_i32_0 = arith.constant 0 : i32
    %c0_i32_1 = arith.constant 0 : i32
    return %c0_i32, %c0_i32_0 : i32, i32
  }
  func.func @transform_9(%arg0: i32) -> (i32, i32) {
    %c0_i32 = arith.constant 0 : i32
    %c0_i32_0 = arith.constant 0 : i32
    %c0_i32_1 = arith.constant 0 : i32
    return %c0_i32, %c0_i32_0 : i32, i32
  }
  func.func @transform_10(%arg0: i32) -> (i32, i32) {
    %c0_i32 = arith.constant 0 : i32
    %c0_i32_0 = arith.constant 0 : i32
    %c0_i32_1 = arith.constant 0 : i32
    return %c0_i32, %c0_i32_0 : i32, i32
  }
  func.func @transform_11(%arg0: i32) -> (i32, i32) {
    %c0_i32 = arith.constant 0 : i32
    %c0_i32_0 = arith.constant 0 : i32
    %c0_i32_1 = arith.constant 0 : i32
    return %c0_i32, %c0_i32_0 : i32, i32
  }
  func.func @transform_12(%arg0: i32) -> (i32, i32) {
    %c0_i32 = arith.constant 0 : i32
    %c0_i32_0 = arith.constant 0 : i32
    %c0_i32_1 = arith.constant 0 : i32
    return %c0_i32, %c0_i32_0 : i32, i32
  }
  func.func @transform_13(%arg0: i32) -> (i32, i32) {
    %c0_i32 = arith.constant 0 : i32
    %c0_i32_0 = arith.constant 0 : i32
    %c0_i32_1 = arith.constant 0 : i32
    return %c0_i32, %c0_i32_0 : i32, i32
  }
  func.func @transform_14(%arg0: i32) -> (i32, i32) {
    %c0_i32 = arith.constant 0 : i32
    %c0_i32_0 = arith.constant 0 : i32
    %c0_i32_1 = arith.constant 0 : i32
    return %c0_i32, %c0_i32_0 : i32, i32
  }
}

module attributes {stable_mosaic.version = 11 : i64} {
  func.func @_conv_mm_kernel(%arg0: i32, %arg1: memref<32x1024xbf16, #tpu.memory_space<vmem>>, %arg2: memref<1024x128xbf16, #tpu.memory_space<vmem>>, %arg3: memref<32x1xf32, #tpu.memory_space<vmem>>, %arg4: memref<32x128xbf16, #tpu.memory_space<vmem>>) attributes {dimension_semantics = [#tpu.dimension_semantics<parallel>], iteration_bounds = array<i64: 1>, scalar_prefetch = 0 : i64, scratch_operands = 0 : i64, tpu.core_type = #tpu.core_type<tc>, window_params = [{pipeline_mode = #tpu.pipeline_mode<synchronous>, transform_indices = @transform_0, window_bounds = array<i64: 32, 1024>}, {transform_indices = @transform_1, window_bounds = array<i64: 1024, 128>}, {pipeline_mode = #tpu.pipeline_mode<synchronous>, transform_indices = @transform_2, window_bounds = array<i64: 32, 1>}, {transform_indices = @transform_3, window_bounds = array<i64: 32, 128>}]} {
    %c0 = arith.constant 0 : index
    %c0_0 = arith.constant 0 : index
    %0 = vector.load %arg1[%c0, %c0_0] : memref<32x1024xbf16, #tpu.memory_space<vmem>>, vector<32x1024xbf16>
    %c0_1 = arith.constant 0 : index
    %c0_2 = arith.constant 0 : index
    %1 = vector.load %arg2[%c0_1, %c0_2] : memref<1024x128xbf16, #tpu.memory_space<vmem>>, vector<1024x128xbf16>
    %cst = arith.constant dense<0.000000e+00> : vector<32x128xf32>
    %2 = tpu.matmul %0, %1, %cst {dimension_numbers = #tpu.dot_dimension_numbers<[1], [0], [0], [1], [0, 0, 1, 1], [], []>} : vector<32x1024xbf16>, vector<1024x128xbf16>, vector<32x128xf32> -> vector<32x128xf32>
    %c0_3 = arith.constant 0 : index
    %c0_4 = arith.constant 0 : index
    %3 = vector.load %arg3[%c0_3, %c0_4] : memref<32x1xf32, #tpu.memory_space<vmem>>, vector<32x1xf32>
    %4 = vector.broadcast %3 : vector<32x1xf32> to vector<32x128xf32>
    %5 = arith.addf %2, %4 : vector<32x128xf32>
    %cst_5 = arith.constant 0.000000e+00 : f32
    %6 = vector.broadcast %cst_5 : f32 to vector<32x128xf32>
    %7 = arith.maximumf %5, %6 : vector<32x128xf32>
    %8 = arith.truncf %7 : vector<32x128xf32> to vector<32x128xbf16>
    %c0_6 = arith.constant 0 : index
    %c0_7 = arith.constant 0 : index
    %9 = vector.load %arg4[%c0_6, %c0_7] : memref<32x128xbf16, #tpu.memory_space<vmem>>, vector<32x128xbf16>
    tpu.vector_store %arg4[%c0_6, %c0_7], %8 {strides = array<i32>} : memref<32x128xbf16, #tpu.memory_space<vmem>>, vector<32x128xbf16>,
    return
  }
  func.func @transform_0(%arg0: i32) -> (i32, i32) {
    %c0_i32 = arith.constant 0 : i32
    %c0_i32_0 = arith.constant 0 : i32
    %c0_i32_1 = arith.constant 0 : i32
    return %c0_i32, %c0_i32_0 : i32, i32
  }
  func.func @transform_1(%arg0: i32) -> (i32, i32) {
    %c0_i32 = arith.constant 0 : i32
    %c0_i32_0 = arith.constant 0 : i32
    return %c0_i32, %arg0 : i32, i32
  }
  func.func @transform_2(%arg0: i32) -> (i32, i32) {
    %c0_i32 = arith.constant 0 : i32
    %c0_i32_0 = arith.constant 0 : i32
    %c0_i32_1 = arith.constant 0 : i32
    return %c0_i32, %c0_i32_0 : i32, i32
  }
  func.func @transform_3(%arg0: i32) -> (i32, i32) {
    %c0_i32 = arith.constant 0 : i32
    %c0_i32_0 = arith.constant 0 : i32
    return %c0_i32, %arg0 : i32, i32
  }
}

module attributes {stable_mosaic.version = 11 : i64} {
  func.func @_conv_mm_kernel(%arg0: i32, %arg1: memref<16x512xbf16, #tpu.memory_space<vmem>>, %arg2: memref<512x128xbf16, #tpu.memory_space<vmem>>, %arg3: memref<16x1xf32, #tpu.memory_space<vmem>>, %arg4: memref<16x128xbf16, #tpu.memory_space<vmem>>) attributes {dimension_semantics = [#tpu.dimension_semantics<parallel>], iteration_bounds = array<i64: 1>, scalar_prefetch = 0 : i64, scratch_operands = 0 : i64, tpu.core_type = #tpu.core_type<tc>, window_params = [{pipeline_mode = #tpu.pipeline_mode<synchronous>, transform_indices = @transform_0, window_bounds = array<i64: 16, 512>}, {transform_indices = @transform_1, window_bounds = array<i64: 512, 128>}, {pipeline_mode = #tpu.pipeline_mode<synchronous>, transform_indices = @transform_2, window_bounds = array<i64: 16, 1>}, {transform_indices = @transform_3, window_bounds = array<i64: 16, 128>}]} {
    %c0 = arith.constant 0 : index
    %c0_0 = arith.constant 0 : index
    %0 = vector.load %arg1[%c0, %c0_0] : memref<16x512xbf16, #tpu.memory_space<vmem>>, vector<16x512xbf16>
    %c0_1 = arith.constant 0 : index
    %c0_2 = arith.constant 0 : index
    %1 = vector.load %arg2[%c0_1, %c0_2] : memref<512x128xbf16, #tpu.memory_space<vmem>>, vector<512x128xbf16>
    %cst = arith.constant dense<0.000000e+00> : vector<16x128xf32>
    %2 = tpu.matmul %0, %1, %cst {dimension_numbers = #tpu.dot_dimension_numbers<[1], [0], [0], [1], [0, 0, 1, 1], [], []>} : vector<16x512xbf16>, vector<512x128xbf16>, vector<16x128xf32> -> vector<16x128xf32>
    %c0_3 = arith.constant 0 : index
    %c0_4 = arith.constant 0 : index
    %3 = vector.load %arg3[%c0_3, %c0_4] : memref<16x1xf32, #tpu.memory_space<vmem>>, vector<16x1xf32>
    %4 = vector.broadcast %3 : vector<16x1xf32> to vector<16x128xf32>
    %5 = arith.addf %2, %4 : vector<16x128xf32>
    %cst_5 = arith.constant 0.000000e+00 : f32
    %6 = vector.broadcast %cst_5 : f32 to vector<16x128xf32>
    %7 = arith.maximumf %5, %6 : vector<16x128xf32>
    %8 = arith.truncf %7 : vector<16x128xf32> to vector<16x128xbf16>
    %c0_6 = arith.constant 0 : index
    %c0_7 = arith.constant 0 : index
    %9 = vector.load %arg4[%c0_6, %c0_7] : memref<16x128xbf16, #tpu.memory_space<vmem>>, vector<16x128xbf16>
    tpu.vector_store %arg4[%c0_6, %c0_7], %8 {strides = array<i32>} : memref<16x128xbf16, #tpu.memory_space<vmem>>, vector<16x128xbf16>,
    return
  }
  func.func @transform_0(%arg0: i32) -> (i32, i32) {
    %c0_i32 = arith.constant 0 : i32
    %c0_i32_0 = arith.constant 0 : i32
    %c0_i32_1 = arith.constant 0 : i32
    return %c0_i32, %c0_i32_0 : i32, i32
  }
  func.func @transform_1(%arg0: i32) -> (i32, i32) {
    %c0_i32 = arith.constant 0 : i32
    %c0_i32_0 = arith.constant 0 : i32
    return %c0_i32, %arg0 : i32, i32
  }
  func.func @transform_2(%arg0: i32) -> (i32, i32) {
    %c0_i32 = arith.constant 0 : i32
    %c0_i32_0 = arith.constant 0 : i32
    %c0_i32_1 = arith.constant 0 : i32
    return %c0_i32, %c0_i32_0 : i32, i32
  }
  func.func @transform_3(%arg0: i32) -> (i32, i32) {
    %c0_i32 = arith.constant 0 : i32
    %c0_i32_0 = arith.constant 0 : i32
    return %c0_i32, %arg0 : i32, i32
  }
}

module attributes {stable_mosaic.version = 11 : i64} {
  func.func @_conv_mm_kernel(%arg0: i32, %arg1: memref<8x256xbf16, #tpu.memory_space<vmem>>, %arg2: memref<256x256xbf16, #tpu.memory_space<vmem>>, %arg3: memref<8x1xf32, #tpu.memory_space<vmem>>, %arg4: memref<8x256xbf16, #tpu.memory_space<vmem>>) attributes {dimension_semantics = [#tpu.dimension_semantics<parallel>], iteration_bounds = array<i64: 2>, scalar_prefetch = 0 : i64, scratch_operands = 0 : i64, tpu.core_type = #tpu.core_type<tc>, window_params = [{pipeline_mode = #tpu.pipeline_mode<synchronous>, transform_indices = @transform_0, window_bounds = array<i64: 8, 256>}, {transform_indices = @transform_1, window_bounds = array<i64: 256, 256>}, {pipeline_mode = #tpu.pipeline_mode<synchronous>, transform_indices = @transform_2, window_bounds = array<i64: 8, 1>}, {transform_indices = @transform_3, window_bounds = array<i64: 8, 256>}]} {
    %c0 = arith.constant 0 : index
    %c0_0 = arith.constant 0 : index
    %0 = vector.load %arg1[%c0, %c0_0] : memref<8x256xbf16, #tpu.memory_space<vmem>>, vector<8x256xbf16>
    %c0_1 = arith.constant 0 : index
    %c0_2 = arith.constant 0 : index
    %1 = vector.load %arg2[%c0_1, %c0_2] : memref<256x256xbf16, #tpu.memory_space<vmem>>, vector<256x256xbf16>
    %cst = arith.constant dense<0.000000e+00> : vector<8x256xf32>
    %2 = tpu.matmul %0, %1, %cst {dimension_numbers = #tpu.dot_dimension_numbers<[1], [0], [0], [1], [0, 0, 1, 1], [], []>} : vector<8x256xbf16>, vector<256x256xbf16>, vector<8x256xf32> -> vector<8x256xf32>
    %c0_3 = arith.constant 0 : index
    %c0_4 = arith.constant 0 : index
    %3 = vector.load %arg3[%c0_3, %c0_4] : memref<8x1xf32, #tpu.memory_space<vmem>>, vector<8x1xf32>
    %4 = vector.broadcast %3 : vector<8x1xf32> to vector<8x256xf32>
    %5 = arith.addf %2, %4 : vector<8x256xf32>
    %cst_5 = arith.constant 0.000000e+00 : f32
    %6 = vector.broadcast %cst_5 : f32 to vector<8x256xf32>
    %7 = arith.maximumf %5, %6 : vector<8x256xf32>
    %8 = arith.truncf %7 : vector<8x256xf32> to vector<8x256xbf16>
    %c0_6 = arith.constant 0 : index
    %c0_7 = arith.constant 0 : index
    %9 = vector.load %arg4[%c0_6, %c0_7] : memref<8x256xbf16, #tpu.memory_space<vmem>>, vector<8x256xbf16>
    tpu.vector_store %arg4[%c0_6, %c0_7], %8 {strides = array<i32>} : memref<8x256xbf16, #tpu.memory_space<vmem>>, vector<8x256xbf16>,
    return
  }
  func.func @transform_0(%arg0: i32) -> (i32, i32) {
    %c0_i32 = arith.constant 0 : i32
    %c0_i32_0 = arith.constant 0 : i32
    %c0_i32_1 = arith.constant 0 : i32
    return %c0_i32, %c0_i32_0 : i32, i32
  }
  func.func @transform_1(%arg0: i32) -> (i32, i32) {
    %c0_i32 = arith.constant 0 : i32
    %c0_i32_0 = arith.constant 0 : i32
    return %c0_i32, %arg0 : i32, i32
  }
  func.func @transform_2(%arg0: i32) -> (i32, i32) {
    %c0_i32 = arith.constant 0 : i32
    %c0_i32_0 = arith.constant 0 : i32
    %c0_i32_1 = arith.constant 0 : i32
    return %c0_i32, %c0_i32_0 : i32, i32
  }
  func.func @transform_3(%arg0: i32) -> (i32, i32) {
    %c0_i32 = arith.constant 0 : i32
    %c0_i32_0 = arith.constant 0 : i32
    return %c0_i32, %arg0 : i32, i32
  }
}

module attributes {stable_mosaic.version = 11 : i64} {
  func.func @_conv_mm_kernel(%arg0: i32, %arg1: memref<8x128xbf16, #tpu.memory_space<vmem>>, %arg2: memref<128x512xbf16, #tpu.memory_space<vmem>>, %arg3: memref<8x1xf32, #tpu.memory_space<vmem>>, %arg4: memref<8x512xf32, #tpu.memory_space<vmem>>) attributes {dimension_semantics = [#tpu.dimension_semantics<parallel>], iteration_bounds = array<i64: 4>, scalar_prefetch = 0 : i64, scratch_operands = 0 : i64, tpu.core_type = #tpu.core_type<tc>, window_params = [{pipeline_mode = #tpu.pipeline_mode<synchronous>, transform_indices = @transform_0, window_bounds = array<i64: 8, 128>}, {transform_indices = @transform_1, window_bounds = array<i64: 128, 512>}, {pipeline_mode = #tpu.pipeline_mode<synchronous>, transform_indices = @transform_2, window_bounds = array<i64: 8, 1>}, {transform_indices = @transform_3, window_bounds = array<i64: 8, 512>}]} {
    %c0 = arith.constant 0 : index
    %c0_0 = arith.constant 0 : index
    %0 = vector.load %arg1[%c0, %c0_0] : memref<8x128xbf16, #tpu.memory_space<vmem>>, vector<8x128xbf16>
    %c0_1 = arith.constant 0 : index
    %c0_2 = arith.constant 0 : index
    %1 = vector.load %arg2[%c0_1, %c0_2] : memref<128x512xbf16, #tpu.memory_space<vmem>>, vector<128x512xbf16>
    %cst = arith.constant dense<0.000000e+00> : vector<8x512xf32>
    %2 = tpu.matmul %0, %1, %cst {dimension_numbers = #tpu.dot_dimension_numbers<[1], [0], [0], [1], [0, 0, 1, 1], [], []>} : vector<8x128xbf16>, vector<128x512xbf16>, vector<8x512xf32> -> vector<8x512xf32>
    %c0_3 = arith.constant 0 : index
    %c0_4 = arith.constant 0 : index
    %3 = vector.load %arg3[%c0_3, %c0_4] : memref<8x1xf32, #tpu.memory_space<vmem>>, vector<8x1xf32>
    %4 = vector.broadcast %3 : vector<8x1xf32> to vector<8x512xf32>
    %5 = arith.addf %2, %4 : vector<8x512xf32>
    %cst_5 = arith.constant 0.000000e+00 : f32
    %6 = vector.broadcast %cst_5 : f32 to vector<8x512xf32>
    %7 = arith.maximumf %5, %6 : vector<8x512xf32>
    %c0_6 = arith.constant 0 : index
    %c0_7 = arith.constant 0 : index
    %8 = vector.load %arg4[%c0_6, %c0_7] : memref<8x512xf32, #tpu.memory_space<vmem>>, vector<8x512xf32>
    tpu.vector_store %arg4[%c0_6, %c0_7], %7 {strides = array<i32>} : memref<8x512xf32, #tpu.memory_space<vmem>>, vector<8x512xf32>,
    return
  }
  func.func @transform_0(%arg0: i32) -> (i32, i32) {
    %c0_i32 = arith.constant 0 : i32
    %c0_i32_0 = arith.constant 0 : i32
    %c0_i32_1 = arith.constant 0 : i32
    return %c0_i32, %c0_i32_0 : i32, i32
  }
  func.func @transform_1(%arg0: i32) -> (i32, i32) {
    %c0_i32 = arith.constant 0 : i32
    %c0_i32_0 = arith.constant 0 : i32
    return %c0_i32, %arg0 : i32, i32
  }
  func.func @transform_2(%arg0: i32) -> (i32, i32) {
    %c0_i32 = arith.constant 0 : i32
    %c0_i32_0 = arith.constant 0 : i32
    %c0_i32_1 = arith.constant 0 : i32
    return %c0_i32, %c0_i32_0 : i32, i32
  }
  func.func @transform_3(%arg0: i32) -> (i32, i32) {
    %c0_i32 = arith.constant 0 : i32
    %c0_i32_0 = arith.constant 0 : i32
    return %c0_i32, %arg0 : i32, i32
  }
}

</mosaic_0001>

<bundles_post_ra>
// kernel: _lambda_.9
= control target key start
LH: loop header
LB: loop body
LE: loop exit
PB: predicated region body
PF: predicated region fallthrough
CT: control target
= control target key end

     0   :  { %s493_s12 = smov 0   ;;  %s495_s13 = smov 0   ;;  %s551_s0 = inlined_call_operand.vmem [shape: bf16[8,48], index: 0, kind: input, shape index: {}]   ;;  %s552_s1 = inlined_call_operand.vmem [shape: bf16[48,512], index: 1, kind: input, shape index: {}]   ;;  %s553_s2 = inlined_call_operand.vmem [shape: f32[8,1], index: 2, kind: input, shape index: {}]   ;;  %s554_s3 = inlined_call_operand.vmem [shape: bf16[8,512], index: 3, kind: output, shape index: {}]  }
   0x1   :  { %s497_s14 = smov 0  }
   0x2 LB: > { %s390_s15 = sadd.s32 4294967295, %s470_s14   ;;  %s510_s16 = sadd.s32 1, %s470_s14   ;;  %s470_s14 = sphi %s497_s14, %s557_s14   ;;  %s466_s13 = sphi %s495_s13, %s556_s13   ;;  %s462_s12 = sphi %s493_s12, %s555_s12  }
   0x3   : > { %s38_s17 = ssub.s32 %s470_s14, %s510_s16  ;;  %s41_s18 = sadd.s32 1, %s466_s13 }
   0x4   : > { %p39_p0 = scmp.eq.s32.totalorder %s38_s17, 0  ;;  %p48_p1 = scmp.ne.s32.totalorder %s466_s13, %s462_s12 }
   0x5   : > { %p49_p2 = scmp.eq.s32.totalorder %s470_s14, 0  ;;  %p393_p4 = scmp.ge.s32.totalorder %s470_s14, 2 }
   0x6   : > { %s519_s19 = scalar_select %p39_p0, %s466_s13, %s41_s18  }
   0x7   : > { %p50_p3 = por %p49_p2, %p48_p1  ;;  %127 = sbr.rel (%p393_p4) target bundleno = 21 (0x15), region = 24 }
   0xe   : > { %130 = sbr.rel (!%p50_p3) target bundleno = 21 (0x15), region = 28  ;;  %s132_s20 = sand.u32 (%p50_p3), 1, %s466_s13  }
   0xf   : > { %s409_s21 = sshll.u32 (%p50_p3), %s470_s14, 3  ;;  %s411_s22 = smul.u32 (%p50_p3), 48, %s132_s20 }
  0x10   : > { %s137_s25 = scalar_lea.vmem (%p50_p3), %s552_s1, %s409_s21 }
  0x11   : > { %v175_v0 = vld [vmem:[%s137_s25] sm:$0xff] (%p50_p3)  ;;  %v177_v1 = vld [vmem:[%s137_s25 + $0x10] sm:$0xff] (%p50_p3)  ;;  %s134_s26 = scalar_lea.vmem (%p50_p3), [#allocation2], %s411_s22 }
  0x12   : > { %v179_v2 = vld [vmem:[%s137_s25 + $0x20] sm:$0xff] (%p50_p3)  ;;  %v181_v3 = vld [vmem:[%s137_s25 + $0x30] sm:$0xff] (%p50_p3)  ;;  %176 = vst [vmem:[%s134_s26] sm:$0xff] (%p50_p3), %v175_v0  ;;  %178 = vst [vmem:[%s134_s26 + $0x8] sm:$0xff] (%p50_p3), %v177_v1 }
  0x13   : > { %v183_v4 = vld [vmem:[%s137_s25 + $0x40] sm:$0xff] (%p50_p3)  ;;  %v185_v5 = vld [vmem:[%s137_s25 + $0x50] sm:$0xff] (%p50_p3)  ;;  %180 = vst [vmem:[%s134_s26 + $0x10] sm:$0xff] (%p50_p3), %v179_v2  ;;  %182 = vst [vmem:[%s134_s26 + $0x18] sm:$0xff] (%p50_p3), %v181_v3 }
  0x14   : > { %184 = vst [vmem:[%s134_s26 + $0x20] sm:$0xff] (%p50_p3), %v183_v4  ;;  %186 = vst [vmem:[%s134_s26 + $0x28] sm:$0xff] (%p50_p3), %v185_v5 }
  0x15 PF: > { %p396_p5 = scmp.ge.s32.totalorder %s470_s14, 1  ;;  %p191_p6 = scmp.lt.s32.totalorder %s470_s14, 3 }
  0x17   : > { %p192_p7 = pnand %p396_p5, %p191_p6 }
  0x18   : > { %s198_s27 = sand.u32 (!%p192_p7), 1, %s462_s12   ;;  %v236_v6 = vld [vmem:[%s553_s2] sm:$0xff] (!%p192_p7)  ;;  %v472_v7 = vmov (!%p192_p7), 0   ;;  %vm272_vm0 = vcmask (!%p192_p7), 392192   ;;  %s397_s7 = sshll.u32 (!%p192_p7), %s390_s15, 1 }
  0x19   : > { %195 = sbr.rel (%p192_p7) target bundleno = 262 (0x106), region = 66  ;;  %308 = vmatprep.mubr.bf16.mxu0 (!%p192_p7), %v472_v7  ;;  %438 = vset.pattern.permute.xlu0 (!%p192_p7), %v472_v7  ;;  %v229_v14 = vld [vmem:[%s551_s0] sm:$0xf] (!%p192_p7)  ;;  %p223_p8 = scmp.lt.s32.totalorder (!%p192_p7), %s397_s7, 3 }
  0x1a   : > { %s412_s30 = smul.u32 (!%p192_p7), 48, %s198_s27  ;;  %239 = vperm.xlu0 (!%p192_p7), %438, %v236_v6  }
  0x1c   : > { %s200_s4 = scalar_lea.vmem (!%p192_p7), [#allocation2], %s412_s30 }
  0x1d   : > { %v439_v8 = vld [vmem:[%s200_s4 + $0x4] ss:$8 sps:$4 sm:$0xff] (!%p192_p7)   ;;  %v441_v9 = vld [vmem:[%s200_s4] ss:$8 sps:$4 sm:$0xff] (!%p192_p7)   ;;  %v442_v10 = vld [vmem:[%s200_s4 + $0x14] ss:$8 sps:$4 sm:$0xff] (!%p192_p7)  }
  0x1e   : > { %276 = vmatprep.subr.bf16.mxu0 (!%p192_p7), %v439_v8  ;;  %v444_v11 = vld [vmem:[%s200_s4 + $0x10] ss:$8 sps:$4 sm:$0xff] (!%p192_p7)   ;;  %v445_v12 = vld [vmem:[%s200_s4 + $0x24] ss:$8 sps:$4 sm:$0xff] (!%p192_p7)   ;;  %v447_v13 = vld [vmem:[%s200_s4 + $0x20] ss:$8 sps:$4 sm:$0xff] (!%p192_p7)  }
  0x1f   : > { %277 = vmatpush1.bf16.msra.mxu0 (!%p192_p7), %v441_v9 }
  0x20   : > { %278 = vmatprep.subr.bf16.mxu0 %v442_v10  ;;  %s559_s7 = smov (!%p223_p8, %s397_s7), 3 }
  0x21   : > { %s398_s8 = sshll.u32 %s559_s7, 2 }
  0x22   : > { %s226_s11 = scalar_lea.vmem %s554_s3, %s398_s8 }
  0x23   : > { %279 = vmatpush1.bf16.msra.mxu0 %v444_v11 }
  0x24   : > { %280 = vmatprep.subr.bf16.mxu0 %v445_v12 }
  0x27   : > { %281 = vmatpush1.bf16.msra.mxu0 %v447_v13 }
  0x2a   : > { %405 = vmatmul.mubr.msk.bf16.vlgmr.msra.gmra.mrb[0].mxu0 %vm272_vm0, %v229_v14 }
  0x99   : > { %v240_v15 = vpop.permute.xlu0 %239 }
  0xfd   : > { %v310_v16 = vpop.f32.mrb[0].mxu0 }
  0xfe   : > { %v311_v17 = vadd.f32 %v310_v16, %v240_v15  ;;  %v312_v18 = vpop.f32.mrb[1].mxu0 }
  0xff   : > { %v313_v19 = vadd.f32 %v312_v18, %v240_v15  ;;  %v314_v20 = vpop.f32.mrb[2].mxu0 }
 0x100   : > { %v317_v21 = vmax.f32 %v311_v17, 0.0  ;;  %v315_v22 = vpop.f32.mrb[3].mxu0 }
 0x101   : > { %v318_v23 = vmax.f32 %v313_v19, 0.0 }
 0x103   : > { %v410_v24 = vpack.c.bf16 %v318_v23, %v317_v21 }
 0x105   : > { %327 = vst [vmem:[%s226_s11] sm:$0xff] %v410_v24 }
 0x106 PF: > { %p10_p9 = scmp.ge.s32.totalorder %s510_s16, 4   ;;  %s555_s12 = smov %s466_s13 }
 0x107   : > { %s556_s13 = smov %s519_s19  ;;  %s557_s14 = smov %s510_s16 }
 0x108   :  { %12 = sbr.rel (!%p10_p9) target bundleno = 2 (0x2), region = 105 }

// kernel: _lambda_.10
= control target key start
LH: loop header
LB: loop body
LE: loop exit
PB: predicated region body
PF: predicated region fallthrough
CT: control target
= control target key end

     0   :  { %v216_v0 = vmov 0.0   ;;  %vm217_vm0 = vmmov 0   ;;  %v218_v2 = vmov 0   ;;  %s275_s1 = inlined_call_operand.vmem [shape: bf16[128,128], index: 1, kind: input, shape index: {}]   ;;  %s276_s2 = inlined_call_operand.vmem [shape: f32[16,1], index: 2, kind: input, shape index: {}]   ;;  %s277_s0 = inlined_call_operand.vmem [shape: bf16[16,128], index: 0, kind: input, shape index: {}]   ;;  %s278_s3 = inlined_call_operand.vmem [shape: bf16[16,128], index: 3, kind: output, shape index: {}]  }
   0x1   :  { %183 = vmatprep.subr.bf16.mxu0 %v216_v0  ;;  %v207_v1 = vld [vmem:[%s275_s1] sm:$0xff]   ;;  %199 = vmatprep.mubr.msk.bf16.mxu0 %vm217_vm0, %v216_v0  ;;  %v208_v3 = vld [vmem:[%s275_s1 + $0x8] sm:$0xff]   ;;  %v209_v4 = vld [vmem:[%s275_s1 + $0x10] sm:$0xff]  }
   0x2   :  { %206 = vset.pattern.permute.xlu0 %v218_v2  ;;  %184 = vmatpush3.bf16.msra.mxu0 %v207_v1  ;;  %v33_v5 = vld [vmem:[%s276_s2] sm:$0xff]  ;;  %v210_v6 = vld [vmem:[%s275_s1 + $0x18] sm:$0xff]   ;;  %v34_v7 = vld [vmem:[%s276_s2 + $0x8] sm:$0xff] }
   0x3   :  { %185 = vmatprep.subr.bf16.mxu0 %v216_v0  ;;  %37 = vperm.xlu0 %206, %v33_v5   ;;  %v211_v8 = vld [vmem:[%s275_s1 + $0x20] sm:$0xff]   ;;  %v212_v9 = vld [vmem:[%s275_s1 + $0x28] sm:$0xff]   ;;  %v213_v10 = vld [vmem:[%s275_s1 + $0x30] sm:$0xff]  }
   0x4   :  { %v214_v11 = vld [vmem:[%s275_s1 + $0x38] sm:$0xff]   ;;  %v215_v12 = vld [vmem:[%s277_s0] sm:$0xff]  }
   0x6   :  { %186 = vmatpush3.bf16.msra.mxu0 %v208_v3 }
   0x7   :  { %187 = vmatprep.subr.bf16.mxu0 %v216_v0  ;;  %42 = vperm.xlu0 %206, %v34_v7  }
   0xa   :  { %188 = vmatpush3.bf16.msra.mxu0 %v209_v4 }
   0xb   :  { %189 = vmatprep.subr.bf16.mxu0 %v216_v0 }
   0xe   :  { %190 = vmatpush3.bf16.msra.mxu0 %v210_v6 }
   0xf   :  { %191 = vmatprep.subr.bf16.mxu0 %v216_v0 }
  0x12   :  { %192 = vmatpush3.bf16.msra.mxu0 %v211_v8 }
  0x13   :  { %193 = vmatprep.subr.bf16.mxu0 %v216_v0 }
  0x16   :  { %194 = vmatpush3.bf16.msra.mxu0 %v212_v9 }
  0x17   :  { %195 = vmatprep.subr.bf16.mxu0 %v216_v0 }
  0x1a   :  { %196 = vmatpush3.bf16.msra.mxu0 %v213_v10 }
  0x1b   :  { %197 = vmatprep.subr.bf16.mxu0 %v216_v0 }
  0x1e   :  { %198 = vmatpush3.bf16.msra.mxu0 %v214_v11 }
  0x21   :  { %200 = vmatmul.mubr.bf16.vlgmr.msra.gmra.mrb[0].mxu0 %v215_v12 }
  0x82   :  { %v38_v13 = vpop.permute.xlu0 %37 }
  0x86   :  { %v43_v17 = vpop.permute.xlu0 %42 }
  0xf4   :  { %v133_v14 = vpop.f32.mrb[0].mxu0 }
  0xf5   :  { %v134_v15 = vadd.f32 %v133_v14, %v38_v13  ;;  %v201_v16 = vpop.f32.mrb[1].mxu0 }
  0xf6   :  { %v136_v18 = vpop.f32.mrb[2].mxu0 }
  0xf7   :  { %v137_v19 = vadd.f32 %v136_v18, %v43_v17  ;;  %v202_v20 = vpop.f32.mrb[3].mxu0  ;;  %v140_v21 = vmax.f32 %v134_v15, 0.0 }
  0xf9   :  { %v141_v22 = vmax.f32 %v137_v19, 0.0 }
  0xfb   :  { %v172_v23 = vpack.c.bf16 %v141_v22, %v140_v21 }
  0xfd   :  { %173 = vst [vmem:[%s278_s3] sm:$0xff] %v172_v23  }

// kernel: _lambda_.11
= control target key start
LH: loop header
LB: loop body
LE: loop exit
PB: predicated region body
PF: predicated region fallthrough
CT: control target
= control target key end

     0   :  { %v376_v1 = vmov 0   ;;  %s475_s1 = inlined_call_operand.vmem [shape: bf16[256,128], index: 1, kind: input, shape index: {}]   ;;  %s476_s0 = inlined_call_operand.vmem [shape: bf16[32,256], index: 0, kind: input, shape index: {}]   ;;  %s477_s2 = inlined_call_operand.vmem [shape: f32[32,1], index: 2, kind: input, shape index: {}]   ;;  %s478_s3 = inlined_call_operand.vmem [shape: bf16[32,128], index: 3, kind: output, shape index: {}]  }
   0x1   :  { %v354_v0 = vld [vmem:[%s475_s1 + $0x40] sm:$0xff]   ;;  %353 = vset.pattern.permute.xlu1 %v376_v1  ;;  %352 = vset.pattern.permute.xlu0 %v376_v1  ;;  %v356_v3 = vld [vmem:[%s475_s1 + $0x48] sm:$0xff]   ;;  %v358_v5 = vld [vmem:[%s475_s1 + $0x50] sm:$0xff]  }
   0x2   :  { %v355_v2 = vld [vmem:[%s475_s1] sm:$0xff]   ;;  %307 = vmatprep.subr.bf16.mxu0 %v354_v0  ;;  %335 = vmatprep.subr.bf16.mxu1 %v354_v0  ;;  %v357_v4 = vld [vmem:[%s475_s1 + $0x8] sm:$0xff]   ;;  %v359_v6 = vld [vmem:[%s475_s1 + $0x10] sm:$0xff]  }
   0x3   :  { %308 = vmatpush3.bf16.msra.mxu0 %v355_v2  ;;  %343 = vmatpush3.bf16.msra.mxu1 %v355_v2  ;;  %v360_v7 = vld [vmem:[%s475_s1 + $0x58] sm:$0xff]   ;;  %v362_v9 = vld [vmem:[%s475_s1 + $0x60] sm:$0xff]   ;;  %v364_v11 = vld [vmem:[%s475_s1 + $0x68] sm:$0xff]  }
   0x4   :  { %309 = vmatprep.subr.bf16.mxu0 %v356_v3  ;;  %336 = vmatprep.subr.bf16.mxu1 %v356_v3  ;;  %v361_v8 = vld [vmem:[%s475_s1 + $0x18] sm:$0xff]   ;;  %v363_v10 = vld [vmem:[%s475_s1 + $0x20] sm:$0xff]   ;;  %v365_v14 = vld [vmem:[%s475_s1 + $0x28] sm:$0xff]  }
   0x5   :  { %v372_v12 = vld [vmem:[%s476_s0 + $0x4] ss:$8 sps:$4 sm:$0xff]   ;;  %v375_v13 = vld [vmem:[%s476_s0 + $0x14] ss:$8 sps:$4 sm:$0xff]   ;;  %v370_v23 = vld [vmem:[%s476_s0] ss:$8 sps:$4 sm:$0xff]  }
   0x6   :  { %v53_v15 = vld [vmem:[%s477_s2 + $0x10] sm:$0xff]  ;;  %v51_v16 = vld [vmem:[%s477_s2] sm:$0xff]  ;;  %223 = vmatprep.mubr.bf16.mxu0 %v372_v12  ;;  %231 = vmatprep.mubr.bf16.mxu1 %v375_v13  ;;  %v54_v19 = vld [vmem:[%s477_s2 + $0x18] sm:$0xff] }
   0x7   :  { %310 = vmatpush3.bf16.msra.mxu0 %v357_v4  ;;  %344 = vmatpush3.bf16.msra.mxu1 %v357_v4  ;;  %v366_v17 = vld [vmem:[%s475_s1 + $0x70] sm:$0xff]   ;;  %v52_v20 = vld [vmem:[%s477_s2 + $0x8] sm:$0xff]  ;;  %v368_v21 = vld [vmem:[%s475_s1 + $0x78] sm:$0xff]  }
   0x8   :  { %311 = vmatprep.subr.bf16.mxu0 %v358_v5  ;;  %337 = vmatprep.subr.bf16.mxu1 %v358_v5  ;;  %v367_v18 = vld [vmem:[%s475_s1 + $0x30] sm:$0xff]   ;;  %v369_v22 = vld [vmem:[%s475_s1 + $0x38] sm:$0xff]  }
   0x9   :  { %67 = vperm.xlu1 %353, %v53_v15   ;;  %57 = vperm.xlu0 %352, %v51_v16   ;;  %v373_v24 = vld [vmem:[%s476_s0 + $0x10] ss:$8 sps:$4 sm:$0xff]  }
   0xb   :  { %312 = vmatpush3.bf16.msra.mxu0 %v359_v6  ;;  %345 = vmatpush3.bf16.msra.mxu1 %v359_v6 }
   0xc   :  { %313 = vmatprep.subr.bf16.mxu0 %v360_v7  ;;  %338 = vmatprep.subr.bf16.mxu1 %v360_v7 }
   0xd   :  { %72 = vperm.xlu1 %353, %v54_v19   ;;  %62 = vperm.xlu0 %352, %v52_v20  }
   0xf   :  { %314 = vmatpush3.bf16.msra.mxu0 %v361_v8  ;;  %346 = vmatpush3.bf16.msra.mxu1 %v361_v8 }
  0x10   :  { %315 = vmatprep.subr.bf16.mxu0 %v362_v9  ;;  %339 = vmatprep.subr.bf16.mxu1 %v362_v9 }
  0x13   :  { %316 = vmatpush3.bf16.msra.mxu0 %v363_v10  ;;  %347 = vmatpush3.bf16.msra.mxu1 %v363_v10 }
  0x14   :  { %317 = vmatprep.subr.bf16.mxu0 %v364_v11  ;;  %340 = vmatprep.subr.bf16.mxu1 %v364_v11 }
  0x17   :  { %318 = vmatpush3.bf16.msra.mxu0 %v365_v14  ;;  %348 = vmatpush3.bf16.msra.mxu1 %v365_v14 }
  0x18   :  { %319 = vmatprep.subr.bf16.mxu0 %v366_v17  ;;  %341 = vmatprep.subr.bf16.mxu1 %v366_v17 }
  0x1b   :  { %320 = vmatpush3.bf16.msra.mxu0 %v367_v18  ;;  %349 = vmatpush3.bf16.msra.mxu1 %v367_v18 }
  0x1c   :  { %321 = vmatprep.subr.bf16.mxu0 %v368_v21  ;;  %342 = vmatprep.subr.bf16.mxu1 %v368_v21 }
  0x1f   :  { %322 = vmatpush3.bf16.msra.mxu0 %v369_v22  ;;  %350 = vmatpush3.bf16.msra.mxu1 %v369_v22 }
  0x22   :  { %224 = vmatmul.mubr.bf16.vlgmr.msra.gmra.mrb[0].mxu0 %v370_v23  ;;  %232 = vmatmul.mubr.bf16.vlgmr.msra.gmra.mrb[0].mxu1 %v373_v24 }
  0x88   :  { %v68_v25 = vpop.permute.xlu1 %67  ;;  %v58_v26 = vpop.permute.xlu0 %57 }
  0x8c   :  { %v73_v41 = vpop.permute.xlu1 %72  ;;  %v63_v42 = vpop.permute.xlu0 %62 }
  0xf5   :  { %v323_v27 = vpop.f32.mrb[0].mxu0  ;;  %v329_v28 = vpop.f32.mrb[0].mxu1 }
  0xf6   :  { %v324_v29 = vpop.f32.mrb[1].mxu0  ;;  %v330_v30 = vpop.f32.mrb[1].mxu1 }
  0xf7   :  { %v325_v31 = vadd.f32 %v324_v29, %v323_v27  ;;  %v331_v32 = vadd.f32 %v330_v30, %v329_v28  ;;  %v326_v33 = vpop.f32.mrb[2].mxu0  ;;  %v332_v34 = vpop.f32.mrb[2].mxu1 }
  0xf8   :  { %v327_v35 = vpop.f32.mrb[3].mxu0  ;;  %v333_v36 = vpop.f32.mrb[3].mxu1 }
  0xf9   :  { %v226_v37 = vadd.f32 %v325_v31, %v58_v26  ;;  %v234_v38 = vadd.f32 %v331_v32, %v68_v25  ;;  %v328_v39 = vadd.f32 %v327_v35, %v326_v33  ;;  %v334_v40 = vadd.f32 %v333_v36, %v332_v34 }
  0xfb   :  { %v229_v43 = vadd.f32 %v328_v39, %v63_v42  ;;  %v237_v44 = vadd.f32 %v334_v40, %v73_v41  ;;  %v240_v45 = vmax.f32 %v226_v37, 0.0  ;;  %v242_v46 = vmax.f32 %v234_v38, 0.0 }
  0xfd   :  { %v241_v47 = vmax.f32 %v229_v43, 0.0  ;;  %v243_v48 = vmax.f32 %v237_v44, 0.0 }
  0xff   :  { %v299_v49 = vpack.c.bf16 %v241_v47, %v240_v45  ;;  %v304_v50 = vpack.c.bf16 %v243_v48, %v242_v46 }
 0x101   :  { %300 = vst [vmem:[%s478_s3] sm:$0xff] %v299_v49   ;;  %306 = vst [vmem:[%s478_s3 + $0x8] sm:$0xff] %v304_v50  }

// kernel: _lambda_.12
= control target key start
LH: loop header
LB: loop body
LE: loop exit
PB: predicated region body
PF: predicated region fallthrough
CT: control target
= control target key end

     0   :  { %v823_v1 = vmov 0   ;;  %s1024_s1 = inlined_call_operand.vmem [shape: bf16[512,128], index: 1, kind: input, shape index: {}]   ;;  %s1025_s0 = inlined_call_operand.vmem [shape: bf16[64,512], index: 0, kind: input, shape index: {}]   ;;  %s1026_s2 = inlined_call_operand.vmem [shape: f32[64,1], index: 2, kind: input, shape index: {}]   ;;  %s1027_s3 = inlined_call_operand.vmem [shape: bf16[64,128], index: 3, kind: output, shape index: {}]  }
   0x1   :  { %v767_v0 = vld [vmem:[%s1024_s1 + $0x40] sm:$0xff]   ;;  %765 = vset.pattern.permute.xlu0 %v823_v1  ;;  %766 = vset.pattern.permute.xlu1 %v823_v1  ;;  %v771_v5 = vld [vmem:[%s1024_s1 + $0x48] sm:$0xff]   ;;  %v775_v9 = vld [vmem:[%s1024_s1 + $0x50] sm:$0xff]  }
   0x2   :  { %v768_v2 = vld [vmem:[%s1024_s1 + $0xc0] sm:$0xff]   ;;  %684 = vmatprep.subr.bf16.mxu0 %v767_v0  ;;  %v772_v6 = vld [vmem:[%s1024_s1 + $0xc8] sm:$0xff]   ;;  %v776_v10 = vld [vmem:[%s1024_s1 + $0xd0] sm:$0xff]  }
   0x3   :  { %v769_v3 = vld [vmem:[%s1024_s1] sm:$0xff]   ;;  %724 = vmatprep.subr.bf16.mxu1 %v768_v2  ;;  %v773_v7 = vld [vmem:[%s1024_s1 + $0x8] sm:$0xff]   ;;  %v777_v11 = vld [vmem:[%s1024_s1 + $0x10] sm:$0xff]  }
   0x4   :  { %v770_v4 = vld [vmem:[%s1024_s1 + $0x80] sm:$0xff]   ;;  %685 = vmatpush3.bf16.msra.mxu0 %v769_v3  ;;  %v774_v8 = vld [vmem:[%s1024_s1 + $0x88] sm:$0xff]   ;;  %v778_v12 = vld [vmem:[%s1024_s1 + $0x90] sm:$0xff]  }
   0x5   :  { %725 = vmatpush3.bf16.msra.mxu1 %v770_v4  ;;  %686 = vmatprep.subr.bf16.mxu0 %v771_v5  ;;  %v779_v13 = vld [vmem:[%s1024_s1 + $0x58] sm:$0xff]   ;;  %v783_v17 = vld [vmem:[%s1024_s1 + $0x60] sm:$0xff]   ;;  %v787_v21 = vld [vmem:[%s1024_s1 + $0x68] sm:$0xff]  }
   0x6   :  { %726 = vmatprep.subr.bf16.mxu1 %v772_v6  ;;  %v780_v14 = vld [vmem:[%s1024_s1 + $0xd8] sm:$0xff]   ;;  %v784_v18 = vld [vmem:[%s1024_s1 + $0xe0] sm:$0xff]   ;;  %v788_v22 = vld [vmem:[%s1024_s1 + $0xe8] sm:$0xff]  }
   0x7   :  { %v781_v15 = vld [vmem:[%s1024_s1 + $0x18] sm:$0xff]   ;;  %v785_v19 = vld [vmem:[%s1024_s1 + $0x20] sm:$0xff]   ;;  %v789_v23 = vld [vmem:[%s1024_s1 + $0x28] sm:$0xff]  }
   0x8   :  { %687 = vmatpush3.bf16.msra.mxu0 %v773_v7  ;;  %v782_v16 = vld [vmem:[%s1024_s1 + $0x98] sm:$0xff]   ;;  %v786_v20 = vld [vmem:[%s1024_s1 + $0xa0] sm:$0xff]   ;;  %v790_v24 = vld [vmem:[%s1024_s1 + $0xa8] sm:$0xff]  }
   0x9   :  { %727 = vmatpush3.bf16.msra.mxu1 %v774_v8  ;;  %688 = vmatprep.subr.bf16.mxu0 %v775_v9  ;;  %v791_v25 = vld [vmem:[%s1024_s1 + $0x70] sm:$0xff]   ;;  %v795_v29 = vld [vmem:[%s1024_s1 + $0x78] sm:$0xff]   ;;  %v95_v43 = vld [vmem:[%s1026_s2] sm:$0xff] }
   0xa   :  { %728 = vmatprep.subr.bf16.mxu1 %v776_v10  ;;  %v792_v26 = vld [vmem:[%s1024_s1 + $0xf0] sm:$0xff]   ;;  %v796_v30 = vld [vmem:[%s1024_s1 + $0xf8] sm:$0xff]   ;;  %105 = vperm.xlu0 %765, %v95_v43   ;;  %v96_v45 = vld [vmem:[%s1026_s2 + $0x8] sm:$0xff] }
   0xb   :  { %v793_v27 = vld [vmem:[%s1024_s1 + $0x30] sm:$0xff]   ;;  %v797_v31 = vld [vmem:[%s1024_s1 + $0x38] sm:$0xff]   ;;  %v99_v48 = vld [vmem:[%s1026_s2 + $0x20] sm:$0xff] }
   0xc   :  { %689 = vmatpush3.bf16.msra.mxu0 %v777_v11  ;;  %v794_v28 = vld [vmem:[%s1024_s1 + $0xb0] sm:$0xff]   ;;  %v798_v32 = vld [vmem:[%s1024_s1 + $0xb8] sm:$0xff]   ;;  %v100_v51 = vld [vmem:[%s1026_s2 + $0x28] sm:$0xff] }
   0xd   :  { %729 = vmatpush3.bf16.msra.mxu1 %v778_v12  ;;  %690 = vmatprep.subr.bf16.mxu0 %v779_v13  ;;  %v799_v33 = vld [vmem:[%s1025_s0] ss:$16 sps:$4 sm:$0xff]   ;;  %v801_v34 = vld [vmem:[%s1025_s0 + $0x4] ss:$16 sps:$4 sm:$0xff]   ;;  %v802_v35 = vld [vmem:[%s1025_s0 + $0x8] ss:$16 sps:$4 sm:$0xff]  }
   0xe   :  { %730 = vmatprep.subr.bf16.mxu1 %v780_v14  ;;  %v804_v36 = vld [vmem:[%s1025_s0 + $0xc] ss:$16 sps:$4 sm:$0xff]   ;;  %447 = vmatprep.mubr.bf16.mxu0 %v801_v34  ;;  %v805_v37 = vld [vmem:[%s1025_s0 + $0x24] ss:$16 sps:$4 sm:$0xff]   ;;  %v809_v39 = vld [vmem:[%s1025_s0 + $0x20] ss:$16 sps:$4 sm:$0xff]  }
   0xf   :  { %512 = vmatprep.mubr.bf16.mxu1 %v804_v36  ;;  %v807_v38 = vld [vmem:[%s1025_s0 + $0x2c] ss:$16 sps:$4 sm:$0xff]   ;;  %v810_v40 = vld [vmem:[%s1025_s0 + $0x28] ss:$16 sps:$4 sm:$0xff]   ;;  %v811_v41 = vld [vmem:[%s1025_s0 + $0x44] ss:$16 sps:$4 sm:$0xff]   ;;  %110 = vperm.xlu0 %765, %v96_v45  }
  0x10   :  { %691 = vmatpush3.bf16.msra.mxu0 %v781_v15  ;;  %v813_v42 = vld [vmem:[%s1025_s0 + $0x4c] ss:$16 sps:$4 sm:$0xff]   ;;  %v97_v44 = vld [vmem:[%s1026_s2 + $0x10] sm:$0xff]  ;;  %v816_v49 = vld [vmem:[%s1025_s0 + $0x48] ss:$16 sps:$4 sm:$0xff]  }
  0x11   :  { %731 = vmatpush3.bf16.msra.mxu1 %v782_v16  ;;  %692 = vmatprep.subr.bf16.mxu0 %v783_v17  ;;  %v98_v46 = vld [vmem:[%s1026_s2 + $0x18] sm:$0xff]  ;;  %v815_v47 = vld [vmem:[%s1025_s0 + $0x40] ss:$16 sps:$4 sm:$0xff]   ;;  %v817_v50 = vld [vmem:[%s1025_s0 + $0x64] ss:$16 sps:$4 sm:$0xff]  }
  0x12   :  { %732 = vmatprep.subr.bf16.mxu1 %v784_v18  ;;  %115 = vperm.xlu1 %766, %v97_v44   ;;  %v819_v52 = vld [vmem:[%s1025_s0 + $0x6c] ss:$16 sps:$4 sm:$0xff]   ;;  %v101_v53 = vld [vmem:[%s1026_s2 + $0x30] sm:$0xff]  ;;  %v822_v56 = vld [vmem:[%s1025_s0 + $0x68] ss:$16 sps:$4 sm:$0xff]  }
  0x13   :  { %125 = vperm.xlu0 %765, %v99_v48   ;;  %v102_v54 = vld [vmem:[%s1026_s2 + $0x38] sm:$0xff]  ;;  %v821_v55 = vld [vmem:[%s1025_s0 + $0x60] ss:$16 sps:$4 sm:$0xff]  }
  0x14   :  { %693 = vmatpush3.bf16.msra.mxu0 %v785_v19 }
  0x15   :  { %733 = vmatpush3.bf16.msra.mxu1 %v786_v20  ;;  %694 = vmatprep.subr.bf16.mxu0 %v787_v21 }
  0x16   :  { %734 = vmatprep.subr.bf16.mxu1 %v788_v22  ;;  %120 = vperm.xlu1 %766, %v98_v46  }
  0x17   :  { %135 = vperm.xlu0 %765, %v101_v53  }
  0x18   :  { %695 = vmatpush3.bf16.msra.mxu0 %v789_v23 }
  0x19   :  { %735 = vmatpush3.bf16.msra.mxu1 %v790_v24  ;;  %696 = vmatprep.subr.bf16.mxu0 %v791_v25 }
  0x1a   :  { %736 = vmatprep.subr.bf16.mxu1 %v792_v26  ;;  %130 = vperm.xlu1 %766, %v100_v51  }
  0x1c   :  { %697 = vmatpush3.bf16.msra.mxu0 %v793_v27 }
  0x1d   :  { %737 = vmatpush3.bf16.msra.mxu1 %v794_v28  ;;  %698 = vmatprep.subr.bf16.mxu0 %v795_v29 }
  0x1e   :  { %738 = vmatprep.subr.bf16.mxu1 %v796_v30  ;;  %140 = vperm.xlu1 %766, %v102_v54  }
  0x20   :  { %699 = vmatpush3.bf16.msra.mxu0 %v797_v31 }
  0x21   :  { %739 = vmatpush3.bf16.msra.mxu1 %v798_v32 }
  0x23   :  { %448 = vmatmul.mubr.bf16.vlgmr.msra.gmra.mrb[0].mxu0 %v799_v33 }
  0x24   :  { %513 = vmatmul.mubr.bf16.vlgmr.msra.gmra.mrb[0].mxu1 %v802_v35  ;;  %455 = vmatprep.mubr.bf16.mxu0 %v805_v37 }
  0x25   :  { %520 = vmatprep.mubr.bf16.mxu1 %v807_v38 }
  0x2b   :  { %456 = vmatmul.mubr.bf16.gmra.mrb[4].mxu0 %v809_v39 }
  0x2c   :  { %521 = vmatmul.mubr.bf16.gmra.mrb[4].mxu1 %v810_v40  ;;  %463 = vmatprep.mubr.bf16.mxu0 %v811_v41 }
  0x2d   :  { %528 = vmatprep.mubr.bf16.mxu1 %v813_v42 }
  0x33   :  { %464 = vmatmul.mubr.bf16.gmra.mrb[8].mxu0 %v815_v47 }
  0x34   :  { %529 = vmatmul.mubr.bf16.gmra.mrb[8].mxu1 %v816_v49  ;;  %471 = vmatprep.mubr.bf16.mxu0 %v817_v50 }
  0x35   :  { %536 = vmatprep.mubr.bf16.mxu1 %v819_v52 }
  0x3b   :  { %472 = vmatmul.mubr.bf16.gmra.mrb[12].mxu0 %v821_v55 }
  0x3c   :  { %537 = vmatmul.mubr.bf16.gmra.mrb[12].mxu1 %v822_v56 }
  0x89   :  { %v106_v57 = vpop.permute.xlu0 %105 }
  0x8e   :  { %v111_v59 = vpop.permute.xlu0 %110 }
  0x91   :  { %v116_v10 = vpop.permute.xlu1 %115 }
  0x92   :  { %v126_v32 = vpop.permute.xlu0 %125 }
  0x95   :  { %v121_v27 = vpop.permute.xlu1 %120 }
  0x96   :  { %v136_v52 = vpop.permute.xlu0 %135 }
  0x99   :  { %v131_v48 = vpop.permute.xlu1 %130 }
  0xf6   :  { %v700_v58 = vpop.f32.mrb[0].mxu0 }
  0xf7   :  { %v740_v60 = vpop.f32.mrb[0].mxu1  ;;  %v701_v61 = vpop.f32.mrb[1].mxu0 }
  0xf8   :  { %v702_v62 = vadd.f32 %v701_v61, %v700_v58  ;;  %v741_v63 = vpop.f32.mrb[1].mxu1  ;;  %v703_v0 = vpop.f32.mrb[2].mxu0 }
  0xf9   :  { %v742_v1 = vadd.f32 %v741_v63, %v740_v60  ;;  %v743_v2 = vpop.f32.mrb[2].mxu1  ;;  %v704_v3 = vpop.f32.mrb[3].mxu0 }
  0xfa   :  { %v450_v4 = vadd.f32 %v702_v62, %v106_v57  ;;  %v705_v5 = vadd.f32 %v704_v3, %v703_v0  ;;  %v744_v6 = vpop.f32.mrb[3].mxu1 }
  0xfb   :  { %v745_v7 = vadd.f32 %v744_v6, %v743_v2 }
  0xfc   :  { %v515_v8 = vadd.f32 %v742_v1, %v450_v4  ;;  %v453_v9 = vadd.f32 %v705_v5, %v111_v59  ;;  %v141_v5 = vpop.permute.xlu1 %140 }
  0xfe   :  { %v518_v11 = vadd.f32 %v745_v7, %v453_v9  ;;  %v706_v12 = vpop.f32.mrb[4].mxu0  ;;  %v545_v15 = vmax.f32 %v515_v8, 0.0 }
  0xff   :  { %v746_v13 = vpop.f32.mrb[4].mxu1  ;;  %v707_v14 = vpop.f32.mrb[5].mxu0 }
 0x100   :  { %v546_v16 = vmax.f32 %v518_v11, 0.0  ;;  %v708_v17 = vadd.f32 %v707_v14, %v706_v12  ;;  %v747_v18 = vpop.f32.mrb[5].mxu1  ;;  %v709_v19 = vpop.f32.mrb[6].mxu0 }
 0x101   :  { %v748_v20 = vadd.f32 %v747_v18, %v746_v13  ;;  %v749_v21 = vpop.f32.mrb[6].mxu1  ;;  %v710_v22 = vpop.f32.mrb[7].mxu0 }
 0x102   :  { %v664_v23 = vpack.c.bf16 %v546_v16, %v545_v15  ;;  %v458_v24 = vadd.f32 %v708_v17, %v116_v10  ;;  %v711_v25 = vadd.f32 %v710_v22, %v709_v19  ;;  %v750_v26 = vpop.f32.mrb[7].mxu1 }
 0x103   :  { %v751_v28 = vadd.f32 %v750_v26, %v749_v21 }
 0x104   :  { %665 = vst [vmem:[%s1027_s3] sm:$0xff] %v664_v23   ;;  %v523_v29 = vadd.f32 %v748_v20, %v458_v24  ;;  %v461_v30 = vadd.f32 %v711_v25, %v121_v27 }
 0x106   :  { %v526_v31 = vadd.f32 %v751_v28, %v461_v30  ;;  %v712_v33 = vpop.f32.mrb[8].mxu0  ;;  %v547_v36 = vmax.f32 %v523_v29, 0.0 }
 0x107   :  { %v752_v34 = vpop.f32.mrb[8].mxu1  ;;  %v713_v35 = vpop.f32.mrb[9].mxu0 }
 0x108   :  { %v548_v37 = vmax.f32 %v526_v31, 0.0  ;;  %v714_v38 = vadd.f32 %v713_v35, %v712_v33  ;;  %v753_v39 = vpop.f32.mrb[9].mxu1  ;;  %v715_v40 = vpop.f32.mrb[10].mxu0 }
 0x109   :  { %v754_v41 = vadd.f32 %v753_v39, %v752_v34  ;;  %v755_v42 = vpop.f32.mrb[10].mxu1  ;;  %v716_v43 = vpop.f32.mrb[11].mxu0 }
 0x10a   :  { %v669_v44 = vpack.c.bf16 %v548_v37, %v547_v36  ;;  %v466_v45 = vadd.f32 %v714_v38, %v126_v32  ;;  %v717_v46 = vadd.f32 %v716_v43, %v715_v40  ;;  %v756_v47 = vpop.f32.mrb[11].mxu1 }
 0x10b   :  { %v757_v49 = vadd.f32 %v756_v47, %v755_v42 }
 0x10c   :  { %681 = vst [vmem:[%s1027_s3 + $0x8] sm:$0xff] %v669_v44   ;;  %v531_v50 = vadd.f32 %v754_v41, %v466_v45  ;;  %v469_v51 = vadd.f32 %v717_v46, %v131_v48 }
 0x10e   :  { %v534_v53 = vadd.f32 %v757_v49, %v469_v51  ;;  %v718_v54 = vpop.f32.mrb[12].mxu0  ;;  %v549_v57 = vmax.f32 %v531_v50, 0.0 }
 0x10f   :  { %v758_v55 = vpop.f32.mrb[12].mxu1  ;;  %v719_v56 = vpop.f32.mrb[13].mxu0 }
 0x110   :  { %v550_v58 = vmax.f32 %v534_v53, 0.0  ;;  %v720_v59 = vadd.f32 %v719_v56, %v718_v54  ;;  %v759_v60 = vpop.f32.mrb[13].mxu1  ;;  %v721_v61 = vpop.f32.mrb[14].mxu0 }
 0x111   :  { %v760_v62 = vadd.f32 %v759_v60, %v758_v55  ;;  %v761_v63 = vpop.f32.mrb[14].mxu1  ;;  %v722_v0 = vpop.f32.mrb[15].mxu0 }
 0x112   :  { %v674_v1 = vpack.c.bf16 %v550_v58, %v549_v57  ;;  %v474_v2 = vadd.f32 %v720_v59, %v136_v52  ;;  %v723_v3 = vadd.f32 %v722_v0, %v721_v61  ;;  %v762_v4 = vpop.f32.mrb[15].mxu1 }
 0x113   :  { %v763_v6 = vadd.f32 %v762_v4, %v761_v63 }
 0x114   :  { %682 = vst [vmem:[%s1027_s3 + $0x10] sm:$0xff] %v674_v1   ;;  %v539_v7 = vadd.f32 %v760_v62, %v474_v2  ;;  %v477_v8 = vadd.f32 %v723_v3, %v141_v5 }
 0x116   :  { %v542_v9 = vadd.f32 %v763_v6, %v477_v8  ;;  %v551_v10 = vmax.f32 %v539_v7, 0.0 }
 0x118   :  { %v552_v11 = vmax.f32 %v542_v9, 0.0 }
 0x11a   :  { %v679_v12 = vpack.c.bf16 %v552_v11, %v551_v10 }
 0x11c   :  { %683 = vst [vmem:[%s1027_s3 + $0x18] sm:$0xff] %v679_v12  }

// kernel: _lambda_.13
= control target key start
LH: loop header
LB: loop body
LE: loop exit
PB: predicated region body
PF: predicated region fallthrough
CT: control target
= control target key end

     0   :  { %v943_v3 = vmov 0.0|0.0   ;;  %vm944_vm0 = vmmov 0   ;;  %vm267_vm1 = vcmask 523264   ;;  %vm347_vm2 = vcmask 261120   ;;  %s1383_s1 = inlined_call_operand.vmem [shape: f32[256,128], index: 1, kind: input, shape index: {}]   ;;  %s1384_s0 = inlined_call_operand.vmem [shape: f32[8,256], index: 0, kind: input, shape index: {}]   ;;  %s1385_s2 = inlined_call_operand.vmem [shape: f32[128,64], index: 2, kind: input, shape index: {}]   ;;  %s1386_s7 = inlined_call_operand.vmem [shape: f32[1,128], index: 7, kind: input, shape index: {}]   ;;  %s1387_s3 = inlined_call_operand.vmem [shape: f32[64,32], index: 3, kind: input, shape index: {}]   ;;  %s1388_s8 = inlined_call_operand.vmem [shape: f32[1,64], index: 8, kind: input, shape index: {}]   ;;  %s1389_s4 = inlined_call_operand.vmem [shape: f32[32,64], index: 4, kind: input, shape index: {}]   ;;  %s1390_s9 = inlined_call_operand.vmem [shape: f32[1,32], index: 9, kind: input, shape index: {}]   ;;  %s1391_s5 = inlined_call_operand.vmem [shape: f32[64,128], index: 5, kind: input, shape index: {}]   ;;  %s1392_s13 = inlined_call_operand.vmem [shape: f32[8,32], index: 13, kind: output, shape index: {0}]   ;;  %s1393_s6 = inlined_call_operand.vmem [shape: f32[128,256], index: 6, kind: input, shape index: {}]   ;;  %s1394_s10 = inlined_call_operand.vmem [shape: f32[1,64], index: 10, kind: input, shape index: {}]   ;;  %s1395_s11 = inlined_call_operand.vmem [shape: f32[1,128], index: 11, kind: input, shape index: {}]   ;;  %s1396_s12 = inlined_call_operand.vmem [shape: f32[1,256], index: 12, kind: input, shape index: {}]   ;;  %s1397_s14 = inlined_call_operand.vmem [shape: f32[8,256], index: 14, kind: output, shape index: {1}]  }
   0x1   :  { %v64_v0 = vld [vmem:[%s1383_s1 + $0x80] sm:$0xff]  ;;  %v65_v1 = vld [vmem:[%s1383_s1 + $0x88] sm:$0xff]  ;;  %850 = vmatprep.subr.bf16.mxu1 %v943_v3  ;;  %v66_v6 = vld [vmem:[%s1383_s1 + $0x90] sm:$0xff] }
   0x2   :  { %v48_v2 = vld [vmem:[%s1383_s1] sm:$0xff]  ;;  %v818_v4 = vpack.c.bf16 %v65_v1, %v64_v0  ;;  %v49_v5 = vld [vmem:[%s1383_s1 + $0x8] sm:$0xff]  ;;  %v67_v7 = vld [vmem:[%s1383_s1 + $0x98] sm:$0xff] }
   0x3   :  { %v820_v8 = vpack.c.bf16 %v49_v5, %v48_v2  ;;  %v822_v9 = vpack.c.bf16 %v67_v7, %v66_v6  ;;  %v50_v10 = vld [vmem:[%s1383_s1 + $0x10] sm:$0xff]  ;;  %v51_v11 = vld [vmem:[%s1383_s1 + $0x18] sm:$0xff]  ;;  %v68_v12 = vld [vmem:[%s1383_s1 + $0xa0] sm:$0xff] }
   0x4   :  { %819 = vmatprep.subr.bf16.mxu0 %v818_v4  ;;  %v69_v13 = vld [vmem:[%s1383_s1 + $0xa8] sm:$0xff]  ;;  %v824_v14 = vpack.c.bf16 %v51_v11, %v50_v10  ;;  %v52_v16 = vld [vmem:[%s1383_s1 + $0x20] sm:$0xff]  ;;  %v70_v18 = vld [vmem:[%s1383_s1 + $0xb0] sm:$0xff] }
   0x5   :  { %821 = vmatpush3.bf16.msra.mxu0 %v820_v8  ;;  %v826_v15 = vpack.c.bf16 %v69_v13, %v68_v12  ;;  %v53_v17 = vld [vmem:[%s1383_s1 + $0x28] sm:$0xff]  ;;  %v71_v19 = vld [vmem:[%s1383_s1 + $0xb8] sm:$0xff]  ;;  %v54_v22 = vld [vmem:[%s1383_s1 + $0x30] sm:$0xff]  ;;  %v945_v12 = vmov 0.0  }
   0x6   :  { %823 = vmatprep.subr.bf16.mxu0 %v822_v9  ;;  %v828_v20 = vpack.c.bf16 %v53_v17, %v52_v16  ;;  %v830_v21 = vpack.c.bf16 %v71_v19, %v70_v18  ;;  %v55_v23 = vld [vmem:[%s1383_s1 + $0x38] sm:$0xff]  ;;  %v72_v24 = vld [vmem:[%s1383_s1 + $0xc0] sm:$0xff]  ;;  %v73_v25 = vld [vmem:[%s1383_s1 + $0xc8] sm:$0xff]  ;;  %766 = vmatprep.mubr.msk.f32.mxu1 %vm944_vm0, %v945_v12 }
   0x7   :  { %v47_v26 = vld [vmem:[%s1384_s0 + $0x8] sm:$0xff]  ;;  %v158_v27 = vld [vmem:[%s1385_s2] sm:$0xff]  ;;  %v832_v29 = vpack.c.bf16 %v55_v23, %v54_v22  ;;  %v160_v31 = vld [vmem:[%s1385_s2 + $0x10] sm:$0xff]  ;;  %v834_v33 = vpack.c.bf16 %v73_v25, %v72_v24 }
   0x8   :  { %151 = vmatprep.mubr.f32.mxu0 %v47_v26  ;;  %v159_v28 = vld [vmem:[%s1385_s2 + $0x8] sm:$0xff]  ;;  %v161_v32 = vld [vmem:[%s1385_s2 + $0x18] sm:$0xff]  ;;  %v56_v34 = vld [vmem:[%s1383_s1 + $0x40] sm:$0xff] }
   0x9   :  { %825 = vmatpush3.bf16.msra.mxu0 %v824_v14  ;;  %v851_v30 = vpack.c.bf16 %v159_v28, %v158_v27  ;;  %v57_v35 = vld [vmem:[%s1383_s1 + $0x48] sm:$0xff]  ;;  %v74_v36 = vld [vmem:[%s1383_s1 + $0xd0] sm:$0xff]  ;;  %v75_v37 = vld [vmem:[%s1383_s1 + $0xd8] sm:$0xff]  ;;  %v854_v38 = vpack.c.bf16 %v161_v32, %v160_v31 }
   0xa   :  { %827 = vmatprep.subr.bf16.mxu0 %v826_v15  ;;  %v162_v39 = vld [vmem:[%s1385_s2 + $0x20] sm:$0xff]  ;;  %v163_v40 = vld [vmem:[%s1385_s2 + $0x28] sm:$0xff]  ;;  %v836_v41 = vpack.c.bf16 %v57_v35, %v56_v34  ;;  %v838_v42 = vpack.c.bf16 %v75_v37, %v74_v36  ;;  %v58_v43 = vld [vmem:[%s1383_s1 + $0x50] sm:$0xff] }
   0xb   :  { %852 = vmatpush3.bf16.msra.mxu1 %v851_v30  ;;  %v59_v44 = vld [vmem:[%s1383_s1 + $0x58] sm:$0xff]  ;;  %v76_v45 = vld [vmem:[%s1383_s1 + $0xe0] sm:$0xff]  ;;  %v77_v46 = vld [vmem:[%s1383_s1 + $0xe8] sm:$0xff]  ;;  %v857_v47 = vpack.c.bf16 %v163_v40, %v162_v39 }
   0xc   :  { %853 = vmatprep.subr.bf16.mxu1 %v943_v3  ;;  %v164_v48 = vld [vmem:[%s1385_s2 + $0x30] sm:$0xff]  ;;  %v165_v49 = vld [vmem:[%s1385_s2 + $0x38] sm:$0xff]  ;;  %v840_v50 = vpack.c.bf16 %v59_v44, %v58_v43  ;;  %v842_v51 = vpack.c.bf16 %v77_v46, %v76_v45  ;;  %v60_v52 = vld [vmem:[%s1383_s1 + $0x60] sm:$0xff] }
   0xd   :  { %829 = vmatpush3.bf16.msra.mxu0 %v828_v20  ;;  %v61_v53 = vld [vmem:[%s1383_s1 + $0x68] sm:$0xff]  ;;  %v78_v54 = vld [vmem:[%s1383_s1 + $0xf0] sm:$0xff]  ;;  %v79_v55 = vld [vmem:[%s1383_s1 + $0xf8] sm:$0xff]  ;;  %v860_v56 = vpack.c.bf16 %v165_v49, %v164_v48 }
   0xe   :  { %831 = vmatprep.subr.bf16.mxu0 %v830_v21  ;;  %v166_v57 = vld [vmem:[%s1385_s2 + $0x40] sm:$0xff]  ;;  %v167_v58 = vld [vmem:[%s1385_s2 + $0x48] sm:$0xff]  ;;  %v844_v59 = vpack.c.bf16 %v61_v53, %v60_v52  ;;  %v846_v60 = vpack.c.bf16 %v79_v55, %v78_v54  ;;  %v62_v61 = vld [vmem:[%s1383_s1 + $0x70] sm:$0xff] }
   0xf   :  { %855 = vmatpush3.bf16.msra.mxu1 %v854_v38  ;;  %v63_v62 = vld [vmem:[%s1383_s1 + $0x78] sm:$0xff]  ;;  %v863_v63 = vpack.c.bf16 %v167_v58, %v166_v57  ;;  %v168_v0 = vld [vmem:[%s1385_s2 + $0x50] sm:$0xff]  ;;  %v46_v5 = vld [vmem:[%s1384_s0] sm:$0xff] }
  0x10   :  { %856 = vmatprep.subr.bf16.mxu1 %v943_v3  ;;  %v169_v1 = vld [vmem:[%s1385_s2 + $0x58] sm:$0xff]  ;;  %v848_v2 = vpack.c.bf16 %v63_v62, %v62_v61  ;;  %v170_v6 = vld [vmem:[%s1385_s2 + $0x60] sm:$0xff]  ;;  %v171_v7 = vld [vmem:[%s1385_s2 + $0x68] sm:$0xff] }
  0x11   :  { %833 = vmatpush3.bf16.msra.mxu0 %v832_v29  ;;  %v866_v4 = vpack.c.bf16 %v169_v1, %v168_v0  ;;  %v869_v8 = vpack.c.bf16 %v171_v7, %v170_v6  ;;  %v172_v9 = vld [vmem:[%s1385_s2 + $0x70] sm:$0xff]  ;;  %v173_v10 = vld [vmem:[%s1385_s2 + $0x78] sm:$0xff]  ;;  %v650_v14 = vld [vmem:[%s1386_s7] ss:$0 sm:$0xff] }
  0x12   :  { %835 = vmatprep.subr.bf16.mxu0 %v834_v33  ;;  %v872_v11 = vpack.c.bf16 %v173_v10, %v172_v9  ;;  %v252_v17 = vld [vmem:[%s1387_s3] sm:$0xff]  ;;  %v253_v18 = vld [vmem:[%s1387_s3 + $0x8] sm:$0xff]  ;;  %v254_v22 = vld [vmem:[%s1387_s3 + $0x10] sm:$0xff] }
  0x13   :  { %858 = vmatpush3.bf16.msra.mxu1 %v857_v47  ;;  %v875_v20 = vpack.c.bf16 %v253_v18, %v252_v17  ;;  %v255_v23 = vld [vmem:[%s1387_s3 + $0x18] sm:$0xff]  ;;  %v256_v25 = vld [vmem:[%s1387_s3 + $0x20] sm:$0xff]  ;;  %v257_v26 = vld [vmem:[%s1387_s3 + $0x28] sm:$0xff] }
  0x14   :  { %859 = vmatprep.subr.bf16.mxu1 %v943_v3  ;;  %v878_v24 = vpack.c.bf16 %v255_v23, %v254_v22  ;;  %v881_v27 = vpack.c.bf16 %v257_v26, %v256_v25  ;;  %v258_v28 = vld [vmem:[%s1387_s3 + $0x30] sm:$0xff]  ;;  %v259_v29 = vld [vmem:[%s1387_s3 + $0x38] sm:$0xff]  ;;  %v651_v31 = vld [vmem:[%s1388_s8] ss:$0 sm:$0xff] }
  0x15   :  { %837 = vmatpush3.bf16.msra.mxu0 %v836_v41  ;;  %v884_v30 = vpack.c.bf16 %v259_v29, %v258_v28  ;;  %v349_v36 = vld [vmem:[%s1389_s4] sm:$0xff]  ;;  %v350_v37 = vld [vmem:[%s1389_s4 + $0x8] sm:$0xff]  ;;  %v351_v38 = vld [vmem:[%s1389_s4 + $0x10] sm:$0xff] }
  0x16   :  { %839 = vmatprep.subr.bf16.mxu0 %v838_v42  ;;  %v887_v39 = vpack.c.bf16 %v350_v37, %v349_v36  ;;  %v352_v40 = vld [vmem:[%s1389_s4 + $0x18] sm:$0xff]  ;;  %v652_v42 = vld [vmem:[%s1390_s9] ss:$0 sm:$0xff]  ;;  %v436_v52 = vld [vmem:[%s1391_s5 + $0x10] sm:$0xff] }
  0x17   :  { %861 = vmatpush3.bf16.msra.mxu1 %v860_v56  ;;  %v890_v41 = vpack.c.bf16 %v352_v40, %v351_v38  ;;  %v434_v49 = vld [vmem:[%s1391_s5] sm:$0xff]  ;;  %v437_v53 = vld [vmem:[%s1391_s5 + $0x18] sm:$0xff]  ;;  %v439_v57 = vld [vmem:[%s1391_s5 + $0x28] sm:$0xff] }
  0x18   :  { %862 = vmatprep.subr.bf16.mxu1 %v943_v3  ;;  %v896_v55 = vpack.c.bf16 %v437_v53, %v436_v52  ;;  %v438_v56 = vld [vmem:[%s1391_s5 + $0x20] sm:$0xff]  ;;  %v524_v62 = vld [vmem:[%s1393_s6 + $0x8] sm:$0xff]  ;;  %v525_v1 = vld [vmem:[%s1393_s6 + $0x10] sm:$0xff] }
  0x19   :  { %841 = vmatpush3.bf16.msra.mxu0 %v840_v50  ;;  %v435_v50 = vld [vmem:[%s1391_s5 + $0x8] sm:$0xff]  ;;  %v899_v58 = vpack.c.bf16 %v439_v57, %v438_v56  ;;  %v527_v7 = vld [vmem:[%s1393_s6 + $0x20] sm:$0xff]  ;;  %v534_v10 = vld [vmem:[%s1393_s6 + $0x58] sm:$0xff]  ;;  %v557_v56 = vlaneseq }
  0x1a   :  { %843 = vmatprep.subr.bf16.mxu0 %v842_v51  ;;  %v893_v51 = vpack.c.bf16 %v435_v50, %v434_v49  ;;  %v532_v9 = vld [vmem:[%s1393_s6 + $0x48] sm:$0xff]  ;;  %v542_v22 = vld [vmem:[%s1393_s6 + $0x98] sm:$0xff]  ;;  %v539_v25 = vld [vmem:[%s1393_s6 + $0x80] sm:$0xff] }
  0x1b   :  { %864 = vmatpush3.bf16.msra.mxu1 %v863_v63  ;;  %v526_v63 = vld [vmem:[%s1393_s6 + $0x18] sm:$0xff]  ;;  %v541_v26 = vld [vmem:[%s1393_s6 + $0x90] sm:$0xff]  ;;  %v547_v37 = vld [vmem:[%s1393_s6 + $0xc0] sm:$0xff]  ;;  %v558_v57 = vshrl.u32 %v557_v56, 7 }
  0x1c   :  { %865 = vmatprep.subr.bf16.mxu1 %v943_v3  ;;  %v904_v0 = vpack.c.bf16 %v526_v63, %v524_v62  ;;  %v546_v28 = vld [vmem:[%s1393_s6 + $0xb8] sm:$0xff]  ;;  %v922_v29 = vpack.c.bf16 %v541_v26, %v539_v25  ;;  %v549_v38 = vld [vmem:[%s1393_s6 + $0xd0] sm:$0xff]  ;;  %v655_v40 = vld [vmem:[%s1394_s10] ss:$0 sm:$0xff] }
  0x1d   :  { %845 = vmatpush3.bf16.msra.mxu0 %v844_v59  ;;  %v440_v59 = vld [vmem:[%s1391_s5 + $0x30] sm:$0xff] }
  0x1e   :  { %847 = vmatprep.subr.bf16.mxu0 %v846_v60  ;;  %v441_v60 = vld [vmem:[%s1391_s5 + $0x38] sm:$0xff]  ;;  %v553_v49 = vld [vmem:[%s1393_s6 + $0xf0] sm:$0xff] }
  0x1f   :  { %867 = vmatpush3.bf16.msra.mxu1 %v866_v4  ;;  %v902_v61 = vpack.c.bf16 %v441_v60, %v440_v59  ;;  %v530_v4 = vld [vmem:[%s1393_s6 + $0x38] sm:$0xff]  ;;  %v555_v59 = vld [vmem:[%s1396_s12] sm:$0x3]  ;;  %v563_v60 = vsub.s32 1, %v558_v57 }
  0x20   :  { %868 = vmatprep.subr.bf16.mxu1 %v943_v3 }
  0x21   :  { %849 = vmatpush3.bf16.msra.mxu0 %v848_v2  ;;  %v528_v2 = vld [vmem:[%s1393_s6 + $0x28] sm:$0xff]  ;;  %v564_v62 = vrot.slane %v555_v59, %v563_v60 }
  0x22   :  { %v908_v6 = vpack.c.bf16 %v530_v4, %v528_v2  ;;  %905 = vmatprep.subr.bf16.mxu0 %v904_v0 }
  0x23   :  { %870 = vmatpush3.bf16.msra.mxu1 %v869_v8  ;;  %v529_v8 = vld [vmem:[%s1393_s6 + $0x30] sm:$0xff] }
  0x24   :  { %152 = vmatmul.mubr.f32.vlgmr.msra.gmra.mrb[0].mxu0 %v46_v5  ;;  %871 = vmatprep.subr.bf16.mxu1 %v943_v3 }
  0x25   :  { %631 = vmatprep.mubr.f32.mxu0 %v945_v12 }
  0x27   :  { %873 = vmatpush3.bf16.msra.mxu1 %v872_v11  ;;  %v910_v11 = vpack.c.bf16 %v529_v8, %v527_v7 }
  0x28   :  { %874 = vmatprep.subr.bf16.mxu1 %v943_v3 }
  0xf7   :  { %v691_v13 = vpop.f32.mrb[0].mxu0 }
  0xf8   :  { %v692_v15 = vpop.f32.mrb[1].mxu0 }
  0xf9   :  { %v693_v16 = vadd.f32 %v692_v15, %v691_v13  ;;  %v531_v13 = vld [vmem:[%s1393_s6 + $0x40] sm:$0xff]  ;;  %v536_v15 = vld [vmem:[%s1393_s6 + $0x68] sm:$0xff] }
  0xfb   :  { %v154_v19 = vadd.f32 %v693_v16, %v650_v14  ;;  %v533_v14 = vld [vmem:[%s1393_s6 + $0x50] sm:$0xff]  ;;  %v538_v16 = vld [vmem:[%s1393_s6 + $0x78] sm:$0xff] }
  0xfc   :  { %v914_v17 = vpack.c.bf16 %v533_v14, %v531_v13  ;;  %v916_v18 = vpack.c.bf16 %v538_v16, %v536_v15 }
  0xfd   :  { %v157_v21 = vmax.f32 %v154_v19, 0.0  ;;  %v535_v19 = vld [vmem:[%s1393_s6 + $0x60] sm:$0xff] }
  0xff   :  { %767 = vmatmul.mubr.f32.vlgmr.msra.gmra.mrb[0].mxu1 %v157_v21  ;;  %v540_v21 = vld [vmem:[%s1393_s6 + $0x88] sm:$0xff] }
 0x100   :  { %876 = vmatpush3.bf16.msra.mxu1 %v875_v20  ;;  %785 = vmatprep.mubr.msk.f32.mxu1 %vm944_vm0, %v945_v12  ;;  %v537_v20 = vld [vmem:[%s1393_s6 + $0x70] sm:$0xff] }
 0x101   :  { %877 = vmatprep.subr.bf16.mxu1 %v943_v3  ;;  %v918_v23 = vpack.c.bf16 %v537_v20, %v535_v19 }
 0x104   :  { %879 = vmatpush3.bf16.msra.mxu1 %v878_v24  ;;  %v920_v24 = vpack.c.bf16 %v542_v22, %v540_v21 }
 0x105   :  { %880 = vmatprep.subr.bf16.mxu1 %v943_v3 }
 0x108   :  { %882 = vmatpush3.bf16.msra.mxu1 %v881_v27  ;;  %v544_v27 = vld [vmem:[%s1393_s6 + $0xa8] sm:$0xff] }
 0x109   :  { %883 = vmatprep.subr.bf16.mxu1 %v943_v3 }
 0x10c   :  { %885 = vmatpush3.bf16.msra.mxu1 %v884_v30  ;;  %v924_v30 = vpack.c.bf16 %v546_v28, %v544_v27 }
 0x10d   :  { %886 = vmatprep.subr.bf16.mxu1 %v943_v3 }
 0x1d2   :  { %v247_v32 = vpop.f32.mrb[0].mxu1 }
 0x1d3   :  { %v248_v33 = vadd.f32 %v651_v31, %v247_v32  ;;  %v768_v34 = vpop.f32.mrb[1].mxu1  ;;  %v543_v31 = vld [vmem:[%s1393_s6 + $0xa0] sm:$0xff]  ;;  %v545_v32 = vld [vmem:[%s1393_s6 + $0xb0] sm:$0xff] }
 0x1d4   :  { %v550_v34 = vld [vmem:[%s1393_s6 + $0xd8] sm:$0xff] }
 0x1d5   :  { %v251_v35 = vmax.f32 %v248_v33, 0.0  ;;  %v548_v33 = vld [vmem:[%s1393_s6 + $0xc8] sm:$0xff] }
 0x1d6   :  { %v928_v36 = vpack.c.bf16 %v550_v34, %v548_v33 }
 0x1d7   :  { %786 = vmatmul.mubr.msk.f32.vlgmr.msra.gmra.mrb[2].mxu1 %vm267_vm1, %v251_v35  ;;  %v926_v35 = vpack.c.bf16 %v545_v32, %v543_v31 }
 0x1d8   :  { %796 = vmatprep.mubr.msk.f32.mxu1 %vm944_vm0, %v945_v12  ;;  %888 = vmatpush3.bf16.msra.mxu1 %v887_v39  ;;  %v930_v39 = vpack.c.bf16 %v549_v38, %v547_v37 }
 0x1d9   :  { %889 = vmatprep.subr.bf16.mxu1 %v943_v3 }
 0x1dc   :  { %891 = vmatpush3.bf16.msra.mxu1 %v890_v41 }
 0x1dd   :  { %892 = vmatprep.subr.bf16.mxu1 %v943_v3 }
 0x2aa   :  { %v337_v43 = vpop.f32.mrb[2].mxu1 }
 0x2ab   :  { %v338_v44 = vadd.f32 %v652_v42, %v337_v43  ;;  %v787_v45 = vpop.f32.mrb[3].mxu1 }
 0x2ac   :  { %v552_v45 = vld [vmem:[%s1393_s6 + $0xe8] sm:$0xff] }
 0x2ad   :  { %v654_v46 = vmul.f32 -1.442695, %v338_v44 }
 0x2af   :  { %939 = vpow2.f32 %v654_v46  ;;  %v554_v46 = vld [vmem:[%s1393_s6 + $0xf8] sm:$0xff] }
 0x2b9   :  { %v940_v47 = vpop.eup %939 }
 0x2ba   :  { %v344_v48 = vadd.f32 1.0, %v940_v47  ;;  %v932_v47 = vpack.c.bf16 %v554_v46, %v552_v45 }
 0x2bc   :  { %941 = vrcp.f32 %v344_v48  ;;  %v551_v48 = vld [vmem:[%s1393_s6 + $0xe0] sm:$0xff] }
 0x2bd   :  { %v934_v50 = vpack.c.bf16 %v553_v49, %v551_v48 }
 0x2c6   :  { %v942_v54 = vpop.eup %941 }
 0x2c7   :  { %348 = vst.msk [vmem:[%s1392_s13] sm:$0xff] %vm347_vm2, %v942_v54  ;;  %797 = vmatmul.mubr.msk.f32.vlgmr.msra.gmra.mrb[4].mxu1 %vm347_vm2, %v942_v54 }
 0x2c8   :  { %894 = vmatpush3.bf16.msra.mxu1 %v893_v51  ;;  %815 = vmatprep.mubr.msk.f32.mxu1 %vm944_vm0, %v945_v12  ;;  %v912_v12 = vpack.c.bf16 %v534_v10, %v532_v9  ;;  %v657_v51 = vld [vmem:[%s1395_s11] ss:$0 sm:$0xff] }
 0x2c9   :  { %895 = vmatprep.subr.bf16.mxu1 %v943_v3 }
 0x2cc   :  { %897 = vmatpush3.bf16.msra.mxu1 %v896_v55 }
 0x2cd   :  { %898 = vmatprep.subr.bf16.mxu1 %v943_v3 }
 0x2d0   :  { %900 = vmatpush3.bf16.msra.mxu1 %v899_v58  ;;  %v559_v58 = vsub.s32 0, %v558_v57 }
 0x2d1   :  { %901 = vmatprep.subr.bf16.mxu1 %v943_v3  ;;  %v523_v3 = vld [vmem:[%s1393_s6] sm:$0xff] }
 0x2d2   :  { %v906_v5 = vpack.c.bf16 %v525_v1, %v523_v3 }
 0x2d4   :  { %903 = vmatpush3.bf16.msra.mxu1 %v902_v61  ;;  %907 = vmatpush1.bf16.msra.mxu0 %v906_v5  ;;  %v560_v61 = vrot.slane %v555_v59, %v559_v58 }
 0x2d5   :  { %909 = vmatprep.subr.bf16.mxu0 %v908_v6 }
 0x2d8   :  { %911 = vmatpush1.bf16.msra.mxu0 %v910_v11 }
 0x2d9   :  { %913 = vmatprep.subr.bf16.mxu0 %v912_v12 }
 0x2dc   :  { %915 = vmatpush1.bf16.msra.mxu0 %v914_v17 }
 0x2dd   :  { %917 = vmatprep.subr.bf16.mxu0 %v916_v18 }
 0x2e0   :  { %919 = vmatpush1.bf16.msra.mxu0 %v918_v23 }
 0x2e1   :  { %921 = vmatprep.subr.bf16.mxu0 %v920_v24 }
 0x2e4   :  { %923 = vmatpush1.bf16.msra.mxu0 %v922_v29 }
 0x2e5   :  { %925 = vmatprep.subr.bf16.mxu0 %v924_v30 }
 0x2e8   :  { %927 = vmatpush1.bf16.msra.mxu0 %v926_v35 }
 0x2e9   :  { %929 = vmatprep.subr.bf16.mxu0 %v928_v36 }
 0x2ec   :  { %931 = vmatpush1.bf16.msra.mxu0 %v930_v39 }
 0x2ed   :  { %933 = vmatprep.subr.bf16.mxu0 %v932_v47 }
 0x2f0   :  { %935 = vmatpush1.bf16.msra.mxu0 %v934_v50 }
 0x39a   :  { %v429_v41 = vpop.f32.mrb[4].mxu1 }
 0x39b   :  { %v430_v42 = vadd.f32 %v655_v40, %v429_v41  ;;  %v798_v43 = vpop.f32.mrb[5].mxu1 }
 0x39d   :  { %v433_v44 = vmax.f32 %v430_v42, 0.0 }
 0x39f   :  { %816 = vmatmul.mubr.msk.f32.vlgmr.msra.gmra.mrb[6].mxu1 %vm267_vm1, %v433_v44 }
 0x472   :  { %v518_v52 = vpop.f32.mrb[6].mxu1 }
 0x473   :  { %v519_v53 = vadd.f32 %v657_v51, %v518_v52  ;;  %v817_v54 = vpop.f32.mrb[7].mxu1 }
 0x475   :  { %v522_v55 = vmax.f32 %v519_v53, 0.0 }
 0x477   :  { %632 = vmatmul.mubr.f32.vlgmr.msra.gmra.mrb[2].mxu0 %v522_v55 }
 0x54a   :  { %v633_v63 = vpop.f32.mrb[2].mxu0 }
 0x54b   :  { %v634_v3 = vadd.f32 %v633_v63, %v560_v61  ;;  %v635_v0 = vpop.f32.mrb[3].mxu0 }
 0x54c   :  { %v636_v1 = vadd.f32 %v635_v0, %v564_v62 }
 0x54d   :  { %v638_v2 = vmax.f32 %v634_v3, 0.0 }
 0x54e   :  { %v639_v4 = vmax.f32 %v636_v1, 0.0 }
 0x54f   :  { %640 = vst [vmem:[%s1397_s14] sm:$0xff] %v638_v2 }
 0x550   :  { %641 = vst [vmem:[%s1397_s14 + $0x8] sm:$0xff] %v639_v4 }

// kernel: _lambda_.14
= control target key start
LH: loop header
LB: loop body
LE: loop exit
PB: predicated region body
PF: predicated region fallthrough
CT: control target
= control target key end

     0   :  { %v1149_v1 = vmov 0   ;;  %s1428_s1 = inlined_call_operand.vmem [shape: bf16[1024,128], index: 1, kind: input, shape index: {}]   ;;  %s1429_s0 = inlined_call_operand.vmem [shape: bf16[32,1024], index: 0, kind: input, shape index: {}]   ;;  %s1430_s2 = inlined_call_operand.vmem [shape: f32[32,1], index: 2, kind: input, shape index: {}]   ;;  %s1431_s3 = inlined_call_operand.vmem [shape: bf16[32,128], index: 3, kind: output, shape index: {}]  }
   0x1   :  { %v1085_v0 = vld [vmem:[%s1428_s1 + $0x40] sm:$0xff]   ;;  %1083 = vset.pattern.permute.xlu0 %v1149_v1  ;;  %1084 = vset.pattern.permute.xlu1 %v1149_v1  ;;  %v1089_v5 = vld [vmem:[%s1428_s1 + $0x48] sm:$0xff]   ;;  %v1093_v9 = vld [vmem:[%s1428_s1 + $0x50] sm:$0xff]  }
   0x2   :  { %v1086_v2 = vld [vmem:[%s1428_s1 + $0xc0] sm:$0xff]   ;;  %970 = vmatprep.subr.bf16.mxu0 %v1085_v0  ;;  %v1090_v6 = vld [vmem:[%s1428_s1 + $0xc8] sm:$0xff]   ;;  %v1094_v10 = vld [vmem:[%s1428_s1 + $0xd0] sm:$0xff]  }
   0x3   :  { %v1087_v3 = vld [vmem:[%s1428_s1] sm:$0xff]   ;;  %998 = vmatprep.subr.bf16.mxu1 %v1086_v2  ;;  %v1091_v7 = vld [vmem:[%s1428_s1 + $0x8] sm:$0xff]   ;;  %v1095_v11 = vld [vmem:[%s1428_s1 + $0x10] sm:$0xff]  }
   0x4   :  { %v1088_v4 = vld [vmem:[%s1428_s1 + $0x80] sm:$0xff]   ;;  %971 = vmatpush3.bf16.msra.mxu0 %v1087_v3  ;;  %v1092_v8 = vld [vmem:[%s1428_s1 + $0x88] sm:$0xff]   ;;  %v1096_v12 = vld [vmem:[%s1428_s1 + $0x90] sm:$0xff]  }
   0x5   :  { %999 = vmatpush3.bf16.msra.mxu1 %v1088_v4  ;;  %972 = vmatprep.subr.bf16.mxu0 %v1089_v5  ;;  %v1097_v13 = vld [vmem:[%s1428_s1 + $0x58] sm:$0xff]   ;;  %v1101_v17 = vld [vmem:[%s1428_s1 + $0x60] sm:$0xff]   ;;  %v1105_v21 = vld [vmem:[%s1428_s1 + $0x68] sm:$0xff]  }
   0x6   :  { %1000 = vmatprep.subr.bf16.mxu1 %v1090_v6  ;;  %v1098_v14 = vld [vmem:[%s1428_s1 + $0xd8] sm:$0xff]   ;;  %v1102_v18 = vld [vmem:[%s1428_s1 + $0xe0] sm:$0xff]   ;;  %v1106_v22 = vld [vmem:[%s1428_s1 + $0xe8] sm:$0xff]  }
   0x7   :  { %v1099_v15 = vld [vmem:[%s1428_s1 + $0x18] sm:$0xff]   ;;  %v1103_v19 = vld [vmem:[%s1428_s1 + $0x20] sm:$0xff]   ;;  %v1107_v23 = vld [vmem:[%s1428_s1 + $0x28] sm:$0xff]  }
   0x8   :  { %973 = vmatpush3.bf16.msra.mxu0 %v1091_v7  ;;  %v1100_v16 = vld [vmem:[%s1428_s1 + $0x98] sm:$0xff]   ;;  %v1104_v20 = vld [vmem:[%s1428_s1 + $0xa0] sm:$0xff]   ;;  %v1108_v24 = vld [vmem:[%s1428_s1 + $0xa8] sm:$0xff]  }
   0x9   :  { %1001 = vmatpush3.bf16.msra.mxu1 %v1092_v8  ;;  %974 = vmatprep.subr.bf16.mxu0 %v1093_v9  ;;  %v1109_v25 = vld [vmem:[%s1428_s1 + $0x70] sm:$0xff]   ;;  %v1113_v29 = vld [vmem:[%s1428_s1 + $0x78] sm:$0xff]   ;;  %v15_v33 = vld [vmem:[%s1429_s0] sm:$0xff] }
   0xa   :  { %1002 = vmatprep.subr.bf16.mxu1 %v1094_v10  ;;  %v1110_v26 = vld [vmem:[%s1428_s1 + $0xf0] sm:$0xff]   ;;  %v1114_v30 = vld [vmem:[%s1428_s1 + $0xf8] sm:$0xff]   ;;  %v19_v34 = vld [vmem:[%s1429_s0 + $0x20] sm:$0xff] }
   0xb   :  { %v1111_v27 = vld [vmem:[%s1428_s1 + $0x30] sm:$0xff]   ;;  %v1115_v31 = vld [vmem:[%s1428_s1 + $0x38] sm:$0xff]   ;;  %v16_v35 = vld [vmem:[%s1429_s0 + $0x8] sm:$0xff]  ;;  %v871_v36 = vcombine.low %v15_v33, %v19_v34  ;;  %v872_v37 = vcombine.high %v15_v33, %v19_v34 }
   0xc   :  { %975 = vmatpush3.bf16.msra.mxu0 %v1095_v11  ;;  %v1112_v28 = vld [vmem:[%s1428_s1 + $0xb0] sm:$0xff]   ;;  %v1116_v32 = vld [vmem:[%s1428_s1 + $0xb8] sm:$0xff]   ;;  %v20_v38 = vld [vmem:[%s1429_s0 + $0x28] sm:$0xff] }
   0xd   :  { %1003 = vmatpush3.bf16.msra.mxu1 %v1096_v12  ;;  %976 = vmatprep.subr.bf16.mxu0 %v1097_v13  ;;  %v873_v39 = vcombine.low %v16_v35, %v20_v38  ;;  %v874_v40 = vcombine.high %v16_v35, %v20_v38  ;;  %v1117_v41 = vld [vmem:[%s1428_s1 + $0x140] sm:$0xff]   ;;  %v1121_v45 = vld [vmem:[%s1428_s1 + $0x148] sm:$0xff]   ;;  %v1125_v49 = vld [vmem:[%s1428_s1 + $0x150] sm:$0xff]  }
   0xe   :  { %1004 = vmatprep.subr.bf16.mxu1 %v1098_v14  ;;  %679 = vmatprep.mubr.bf16.mxu0 %v872_v37  ;;  %v1118_v42 = vld [vmem:[%s1428_s1 + $0x1c0] sm:$0xff]   ;;  %v1122_v46 = vld [vmem:[%s1428_s1 + $0x1c8] sm:$0xff]   ;;  %v1126_v50 = vld [vmem:[%s1428_s1 + $0x1d0] sm:$0xff]  }
   0xf   :  { %728 = vmatprep.mubr.bf16.mxu1 %v874_v40  ;;  %v1119_v43 = vld [vmem:[%s1428_s1 + $0x100] sm:$0xff]   ;;  %v1123_v47 = vld [vmem:[%s1428_s1 + $0x108] sm:$0xff]   ;;  %v1127_v51 = vld [vmem:[%s1428_s1 + $0x110] sm:$0xff]  }
  0x10   :  { %977 = vmatpush3.bf16.msra.mxu0 %v1099_v15  ;;  %v1120_v44 = vld [vmem:[%s1428_s1 + $0x180] sm:$0xff]   ;;  %v1124_v48 = vld [vmem:[%s1428_s1 + $0x188] sm:$0xff]   ;;  %v1128_v52 = vld [vmem:[%s1428_s1 + $0x190] sm:$0xff]  }
  0x11   :  { %1005 = vmatpush3.bf16.msra.mxu1 %v1100_v16  ;;  %978 = vmatprep.subr.bf16.mxu0 %v1101_v17  ;;  %v1129_v53 = vld [vmem:[%s1428_s1 + $0x158] sm:$0xff]   ;;  %v1133_v57 = vld [vmem:[%s1428_s1 + $0x160] sm:$0xff]   ;;  %v1137_v0 = vld [vmem:[%s1428_s1 + $0x168] sm:$0xff]  }
  0x12   :  { %1006 = vmatprep.subr.bf16.mxu1 %v1102_v18  ;;  %v1130_v54 = vld [vmem:[%s1428_s1 + $0x1d8] sm:$0xff]   ;;  %v1134_v58 = vld [vmem:[%s1428_s1 + $0x1e0] sm:$0xff]   ;;  %v1138_v2 = vld [vmem:[%s1428_s1 + $0x1e8] sm:$0xff]  }
  0x13   :  { %v1131_v55 = vld [vmem:[%s1428_s1 + $0x118] sm:$0xff]   ;;  %v1135_v59 = vld [vmem:[%s1428_s1 + $0x120] sm:$0xff]   ;;  %v1139_v3 = vld [vmem:[%s1428_s1 + $0x128] sm:$0xff]  }
  0x14   :  { %979 = vmatpush3.bf16.msra.mxu0 %v1103_v19  ;;  %v1132_v56 = vld [vmem:[%s1428_s1 + $0x198] sm:$0xff]   ;;  %v1136_v60 = vld [vmem:[%s1428_s1 + $0x1a0] sm:$0xff]   ;;  %v1140_v4 = vld [vmem:[%s1428_s1 + $0x1a8] sm:$0xff]  }
  0x15   :  { %1007 = vmatpush3.bf16.msra.mxu1 %v1104_v20  ;;  %980 = vmatprep.subr.bf16.mxu0 %v1105_v21  ;;  %v23_v61 = vld [vmem:[%s1429_s0 + $0x40] sm:$0xff]  ;;  %v24_v5 = vld [vmem:[%s1429_s0 + $0x48] sm:$0xff]  ;;  %v1141_v9 = vld [vmem:[%s1428_s1 + $0x170] sm:$0xff]  }
  0x16   :  { %1008 = vmatprep.subr.bf16.mxu1 %v1106_v22  ;;  %v27_v62 = vld [vmem:[%s1429_s0 + $0x60] sm:$0xff]  ;;  %v28_v6 = vld [vmem:[%s1429_s0 + $0x68] sm:$0xff]  ;;  %v1142_v10 = vld [vmem:[%s1428_s1 + $0x1f0] sm:$0xff]  }
  0x17   :  { %v880_v63 = vcombine.high %v23_v61, %v27_v62  ;;  %v879_v1 = vcombine.low %v23_v61, %v27_v62  ;;  %v882_v7 = vcombine.high %v24_v5, %v28_v6  ;;  %v881_v8 = vcombine.low %v24_v5, %v28_v6  ;;  %v1143_v11 = vld [vmem:[%s1428_s1 + $0x130] sm:$0xff]   ;;  %v1145_v13 = vld [vmem:[%s1428_s1 + $0x178] sm:$0xff]   ;;  %v160_v33 = vld [vmem:[%s1430_s2 + $0x8] sm:$0xff] }
  0x18   :  { %981 = vmatpush3.bf16.msra.mxu0 %v1107_v23  ;;  %v1144_v12 = vld [vmem:[%s1428_s1 + $0x1b0] sm:$0xff]   ;;  %v1146_v14 = vld [vmem:[%s1428_s1 + $0x1f8] sm:$0xff]  }
  0x19   :  { %1009 = vmatpush3.bf16.msra.mxu1 %v1108_v24  ;;  %982 = vmatprep.subr.bf16.mxu0 %v1109_v25  ;;  %v1147_v15 = vld [vmem:[%s1428_s1 + $0x138] sm:$0xff]   ;;  %v17_v17 = vld [vmem:[%s1429_s0 + $0x10] sm:$0xff] }
  0x1a   :  { %1010 = vmatprep.subr.bf16.mxu1 %v1110_v26  ;;  %v1148_v16 = vld [vmem:[%s1428_s1 + $0x1b8] sm:$0xff]   ;;  %v21_v18 = vld [vmem:[%s1429_s0 + $0x30] sm:$0xff] }
  0x1b   :  { %v18_v19 = vld [vmem:[%s1429_s0 + $0x18] sm:$0xff]  ;;  %v875_v21 = vcombine.low %v17_v17, %v21_v18  ;;  %v876_v22 = vcombine.high %v17_v17, %v21_v18  ;;  %v25_v25 = vld [vmem:[%s1429_s0 + $0x50] sm:$0xff] }
  0x1c   :  { %983 = vmatpush3.bf16.msra.mxu0 %v1111_v27  ;;  %v22_v20 = vld [vmem:[%s1429_s0 + $0x38] sm:$0xff]  ;;  %v29_v26 = vld [vmem:[%s1429_s0 + $0x70] sm:$0xff] }
  0x1d   :  { %1011 = vmatpush3.bf16.msra.mxu1 %v1112_v28  ;;  %984 = vmatprep.subr.bf16.mxu0 %v1113_v29  ;;  %v877_v23 = vcombine.low %v18_v19, %v22_v20  ;;  %v878_v24 = vcombine.high %v18_v19, %v22_v20  ;;  %v26_v27 = vld [vmem:[%s1429_s0 + $0x58] sm:$0xff]  ;;  %v884_v28 = vcombine.high %v25_v25, %v29_v26 }
  0x1e   :  { %1012 = vmatprep.subr.bf16.mxu1 %v1114_v30  ;;  %v30_v29 = vld [vmem:[%s1429_s0 + $0x78] sm:$0xff]  ;;  %v883_v35 = vcombine.low %v25_v25, %v29_v26 }
  0x1f   :  { %v886_v30 = vcombine.high %v26_v27, %v30_v29  ;;  %v162_v34 = vld [vmem:[%s1430_s2 + $0x18] sm:$0xff] }
  0x20   :  { %985 = vmatpush3.bf16.msra.mxu0 %v1115_v31  ;;  %v159_v31 = vld [vmem:[%s1430_s2] sm:$0xff] }
  0x21   :  { %1013 = vmatpush3.bf16.msra.mxu1 %v1116_v32  ;;  %1026 = vmatprep.subr.bf16.mxu0 %v1117_v41  ;;  %v161_v32 = vld [vmem:[%s1430_s2 + $0x10] sm:$0xff] }
  0x22   :  { %1054 = vmatprep.subr.bf16.mxu1 %v1118_v42  ;;  %165 = vperm.xlu0 %1083, %v159_v31  }
  0x23   :  { %680 = vmatmul.mubr.bf16.vlgmr.msra.gmra.mrb[0].mxu0 %v871_v36  ;;  %175 = vperm.xlu1 %1084, %v161_v32   ;;  %v885_v36 = vcombine.low %v26_v27, %v30_v29 }
  0x24   :  { %729 = vmatmul.mubr.bf16.vlgmr.msra.gmra.mrb[0].mxu1 %v873_v39  ;;  %1027 = vmatpush3.bf16.msra.mxu0 %v1119_v43 }
  0x25   :  { %1055 = vmatpush3.bf16.msra.mxu1 %v1120_v44  ;;  %1028 = vmatprep.subr.bf16.mxu0 %v1121_v45 }
  0x26   :  { %1056 = vmatprep.subr.bf16.mxu1 %v1122_v46  ;;  %687 = vmatprep.mubr.bf16.mxu0 %v880_v63 }
  0x27   :  { %736 = vmatprep.mubr.bf16.mxu1 %v882_v7  ;;  %170 = vperm.xlu0 %1083, %v160_v33  }
  0x28   :  { %1029 = vmatpush3.bf16.msra.mxu0 %v1123_v47  ;;  %180 = vperm.xlu1 %1084, %v162_v34  }
  0x29   :  { %1057 = vmatpush3.bf16.msra.mxu1 %v1124_v48  ;;  %1030 = vmatprep.subr.bf16.mxu0 %v1125_v49 }
  0x2a   :  { %1058 = vmatprep.subr.bf16.mxu1 %v1126_v50 }
  0x2b   :  { %688 = vmatmul.mubr.bf16.gmra.mrb[4].mxu0 %v879_v1 }
  0x2c   :  { %1031 = vmatpush3.bf16.msra.mxu0 %v1127_v51  ;;  %737 = vmatmul.mubr.bf16.gmra.mrb[4].mxu1 %v881_v8 }
  0x2d   :  { %1059 = vmatpush3.bf16.msra.mxu1 %v1128_v52  ;;  %1032 = vmatprep.subr.bf16.mxu0 %v1129_v53 }
  0x2e   :  { %1060 = vmatprep.subr.bf16.mxu1 %v1130_v54  ;;  %777 = vmatprep.mubr.bf16.mxu0 %v876_v22 }
  0x2f   :  { %826 = vmatprep.mubr.bf16.mxu1 %v878_v24 }
  0x30   :  { %1033 = vmatpush3.bf16.msra.mxu0 %v1131_v55 }
  0x31   :  { %1061 = vmatpush3.bf16.msra.mxu1 %v1132_v56  ;;  %1034 = vmatprep.subr.bf16.mxu0 %v1133_v57 }
  0x32   :  { %1062 = vmatprep.subr.bf16.mxu1 %v1134_v58 }
  0x34   :  { %1035 = vmatpush3.bf16.msra.mxu0 %v1135_v59 }
  0x35   :  { %1063 = vmatpush3.bf16.msra.mxu1 %v1136_v60  ;;  %1036 = vmatprep.subr.bf16.mxu0 %v1137_v0 }
  0x36   :  { %1064 = vmatprep.subr.bf16.mxu1 %v1138_v2 }
  0x38   :  { %1037 = vmatpush3.bf16.msra.mxu0 %v1139_v3 }
  0x39   :  { %1065 = vmatpush3.bf16.msra.mxu1 %v1140_v4  ;;  %1038 = vmatprep.subr.bf16.mxu0 %v1141_v9 }
  0x3a   :  { %1066 = vmatprep.subr.bf16.mxu1 %v1142_v10 }
  0x3c   :  { %1039 = vmatpush3.bf16.msra.mxu0 %v1143_v11 }
  0x3d   :  { %1067 = vmatpush3.bf16.msra.mxu1 %v1144_v12  ;;  %1040 = vmatprep.subr.bf16.mxu0 %v1145_v13 }
  0x3e   :  { %1068 = vmatprep.subr.bf16.mxu1 %v1146_v14 }
  0x40   :  { %1041 = vmatpush3.bf16.msra.mxu0 %v1147_v15 }
  0x41   :  { %1069 = vmatpush3.bf16.msra.mxu1 %v1148_v16 }
  0x43   :  { %778 = vmatmul.mubr.bf16.vlgmr.msra.gmra.mrb[8].mxu0 %v875_v21 }
  0x44   :  { %827 = vmatmul.mubr.bf16.vlgmr.msra.gmra.mrb[8].mxu1 %v877_v23  ;;  %785 = vmatprep.mubr.bf16.mxu0 %v884_v28 }
  0x45   :  { %834 = vmatprep.mubr.bf16.mxu1 %v886_v30 }
  0x4b   :  { %786 = vmatmul.mubr.bf16.gmra.mrb[12].mxu0 %v883_v35 }
  0x4c   :  { %835 = vmatmul.mubr.bf16.gmra.mrb[12].mxu1 %v885_v36 }
  0xa1   :  { %v166_v37 = vpop.permute.xlu0 %165 }
  0xa2   :  { %v176_v55 = vpop.permute.xlu1 %175 }
  0xa6   :  { %v171_v39 = vpop.permute.xlu0 %170 }
  0xa7   :  { %v181_v62 = vpop.permute.xlu1 %180 }
  0xf6   :  { %v986_v38 = vpop.f32.mrb[0].mxu0 }
  0xf7   :  { %v1014_v40 = vpop.f32.mrb[0].mxu1  ;;  %v987_v41 = vpop.f32.mrb[1].mxu0 }
  0xf8   :  { %v988_v42 = vadd.f32 %v987_v41, %v986_v38  ;;  %v1015_v43 = vpop.f32.mrb[1].mxu1  ;;  %v989_v44 = vpop.f32.mrb[2].mxu0 }
  0xf9   :  { %v1016_v45 = vadd.f32 %v1015_v43, %v1014_v40  ;;  %v1017_v46 = vpop.f32.mrb[2].mxu1  ;;  %v990_v47 = vpop.f32.mrb[3].mxu0 }
  0xfa   :  { %v682_v48 = vadd.f32 %v988_v42, %v166_v37  ;;  %v991_v49 = vadd.f32 %v990_v47, %v989_v44  ;;  %v1018_v50 = vpop.f32.mrb[3].mxu1 }
  0xfb   :  { %v1019_v51 = vadd.f32 %v1018_v50, %v1017_v46 }
  0xfc   :  { %v731_v52 = vadd.f32 %v1016_v45, %v682_v48  ;;  %v685_v53 = vadd.f32 %v991_v49, %v171_v39 }
  0xfe   :  { %v734_v54 = vadd.f32 %v1019_v51, %v685_v53  ;;  %v992_v56 = vpop.f32.mrb[4].mxu0 }
  0xff   :  { %v993_v57 = vpop.f32.mrb[5].mxu0  ;;  %v1020_v0 = vpop.f32.mrb[4].mxu1 }
 0x100   :  { %v994_v58 = vadd.f32 %v993_v57, %v992_v56  ;;  %v995_v59 = vpop.f32.mrb[6].mxu0  ;;  %v1021_v1 = vpop.f32.mrb[5].mxu1 }
 0x101   :  { %v996_v60 = vpop.f32.mrb[7].mxu0  ;;  %v1022_v2 = vadd.f32 %v1021_v1, %v1020_v0  ;;  %v1023_v3 = vpop.f32.mrb[6].mxu1 }
 0x102   :  { %v997_v61 = vadd.f32 %v996_v60, %v995_v59  ;;  %v690_v63 = vadd.f32 %v994_v58, %v176_v55  ;;  %v1024_v5 = vpop.f32.mrb[7].mxu1 }
 0x103   :  { %v1025_v7 = vadd.f32 %v1024_v5, %v1023_v3 }
 0x104   :  { %v693_v4 = vadd.f32 %v997_v61, %v181_v62  ;;  %v739_v6 = vadd.f32 %v1022_v2, %v690_v63 }
 0x106   :  { %v742_v8 = vadd.f32 %v1025_v7, %v693_v4 }
 0x116   :  { %v1042_v9 = vpop.f32.mrb[8].mxu0 }
 0x117   :  { %v1070_v10 = vpop.f32.mrb[8].mxu1  ;;  %v1043_v11 = vpop.f32.mrb[9].mxu0 }
 0x118   :  { %v1071_v12 = vpop.f32.mrb[9].mxu1  ;;  %v1044_v13 = vadd.f32 %v1043_v11, %v1042_v9  ;;  %v1045_v15 = vpop.f32.mrb[10].mxu0 }
 0x119   :  { %v1072_v14 = vadd.f32 %v1071_v12, %v1070_v10  ;;  %v1073_v16 = vpop.f32.mrb[10].mxu1  ;;  %v1046_v17 = vpop.f32.mrb[11].mxu0 }
 0x11a   :  { %v1074_v18 = vpop.f32.mrb[11].mxu1  ;;  %v780_v19 = vadd.f32 %v1044_v13, %v731_v52  ;;  %v1047_v20 = vadd.f32 %v1046_v17, %v1045_v15 }
 0x11b   :  { %v1075_v21 = vadd.f32 %v1074_v18, %v1073_v16 }
 0x11c   :  { %v829_v22 = vadd.f32 %v1072_v14, %v780_v19  ;;  %v783_v23 = vadd.f32 %v1047_v20, %v734_v54 }
 0x11e   :  { %v832_v24 = vadd.f32 %v1075_v21, %v783_v23  ;;  %v1048_v25 = vpop.f32.mrb[12].mxu0  ;;  %v843_v29 = vmax.f32 %v829_v22, 0.0 }
 0x11f   :  { %v1076_v26 = vpop.f32.mrb[12].mxu1  ;;  %v1049_v27 = vpop.f32.mrb[13].mxu0 }
 0x120   :  { %v1077_v28 = vpop.f32.mrb[13].mxu1  ;;  %v844_v30 = vmax.f32 %v832_v24, 0.0  ;;  %v1050_v31 = vadd.f32 %v1049_v27, %v1048_v25  ;;  %v1051_v33 = vpop.f32.mrb[14].mxu0 }
 0x121   :  { %v1078_v32 = vadd.f32 %v1077_v28, %v1076_v26  ;;  %v1079_v34 = vpop.f32.mrb[14].mxu1  ;;  %v1052_v35 = vpop.f32.mrb[15].mxu0 }
 0x122   :  { %v1080_v36 = vpop.f32.mrb[15].mxu1  ;;  %v962_v37 = vpack.c.bf16 %v844_v30, %v843_v29  ;;  %v788_v38 = vadd.f32 %v1050_v31, %v739_v6  ;;  %v1053_v39 = vadd.f32 %v1052_v35, %v1051_v33 }
 0x123   :  { %v1081_v40 = vadd.f32 %v1080_v36, %v1079_v34 }
 0x124   :  { %963 = vst [vmem:[%s1431_s3] sm:$0xff] %v962_v37   ;;  %v837_v41 = vadd.f32 %v1078_v32, %v788_v38  ;;  %v791_v42 = vadd.f32 %v1053_v39, %v742_v8 }
 0x126   :  { %v840_v43 = vadd.f32 %v1081_v40, %v791_v42  ;;  %v845_v44 = vmax.f32 %v837_v41, 0.0 }
 0x128   :  { %v846_v45 = vmax.f32 %v840_v43, 0.0 }
 0x12a   :  { %v967_v46 = vpack.c.bf16 %v846_v45, %v845_v44 }
 0x12c   :  { %969 = vst [vmem:[%s1431_s3 + $0x8] sm:$0xff] %v967_v46  }

// kernel: _lambda_.15
= control target key start
LH: loop header
LB: loop body
LE: loop exit
PB: predicated region body
PF: predicated region fallthrough
CT: control target
= control target key end

     0   :  { %v534_v1 = vmov 0   ;;  %s672_s1 = inlined_call_operand.vmem [shape: bf16[512,128], index: 1, kind: input, shape index: {}]   ;;  %s673_s0 = inlined_call_operand.vmem [shape: bf16[16,512], index: 0, kind: input, shape index: {}]   ;;  %s674_s2 = inlined_call_operand.vmem [shape: f32[16,1], index: 2, kind: input, shape index: {}]   ;;  %s675_s3 = inlined_call_operand.vmem [shape: bf16[16,128], index: 3, kind: output, shape index: {}]  }
   0x1   :  { %v496_v0 = vld [vmem:[%s672_s1 + $0x40] sm:$0xff]   ;;  %495 = vset.pattern.permute.xlu0 %v534_v1  ;;  %v500_v5 = vld [vmem:[%s672_s1 + $0x48] sm:$0xff]   ;;  %v504_v9 = vld [vmem:[%s672_s1 + $0x50] sm:$0xff]  }
   0x2   :  { %v497_v2 = vld [vmem:[%s672_s1 + $0xc0] sm:$0xff]   ;;  %450 = vmatprep.subr.bf16.mxu0 %v496_v0  ;;  %v501_v6 = vld [vmem:[%s672_s1 + $0xc8] sm:$0xff]   ;;  %v505_v10 = vld [vmem:[%s672_s1 + $0xd0] sm:$0xff]  }
   0x3   :  { %v498_v3 = vld [vmem:[%s672_s1] sm:$0xff]   ;;  %472 = vmatprep.subr.bf16.mxu1 %v497_v2  ;;  %v502_v7 = vld [vmem:[%s672_s1 + $0x8] sm:$0xff]   ;;  %v506_v11 = vld [vmem:[%s672_s1 + $0x10] sm:$0xff]  }
   0x4   :  { %v499_v4 = vld [vmem:[%s672_s1 + $0x80] sm:$0xff]   ;;  %451 = vmatpush3.bf16.msra.mxu0 %v498_v3  ;;  %v503_v8 = vld [vmem:[%s672_s1 + $0x88] sm:$0xff]   ;;  %v507_v12 = vld [vmem:[%s672_s1 + $0x90] sm:$0xff]  }
   0x5   :  { %473 = vmatpush3.bf16.msra.mxu1 %v499_v4  ;;  %452 = vmatprep.subr.bf16.mxu0 %v500_v5  ;;  %v508_v13 = vld [vmem:[%s672_s1 + $0x58] sm:$0xff]   ;;  %v512_v17 = vld [vmem:[%s672_s1 + $0x60] sm:$0xff]   ;;  %v516_v21 = vld [vmem:[%s672_s1 + $0x68] sm:$0xff]  }
   0x6   :  { %474 = vmatprep.subr.bf16.mxu1 %v501_v6  ;;  %v509_v14 = vld [vmem:[%s672_s1 + $0xd8] sm:$0xff]   ;;  %v513_v18 = vld [vmem:[%s672_s1 + $0xe0] sm:$0xff]   ;;  %v517_v22 = vld [vmem:[%s672_s1 + $0xe8] sm:$0xff]  }
   0x7   :  { %v510_v15 = vld [vmem:[%s672_s1 + $0x18] sm:$0xff]   ;;  %v514_v19 = vld [vmem:[%s672_s1 + $0x20] sm:$0xff]   ;;  %v518_v23 = vld [vmem:[%s672_s1 + $0x28] sm:$0xff]  }
   0x8   :  { %453 = vmatpush3.bf16.msra.mxu0 %v502_v7  ;;  %v511_v16 = vld [vmem:[%s672_s1 + $0x98] sm:$0xff]   ;;  %v515_v20 = vld [vmem:[%s672_s1 + $0xa0] sm:$0xff]   ;;  %v519_v24 = vld [vmem:[%s672_s1 + $0xa8] sm:$0xff]  }
   0x9   :  { %475 = vmatpush3.bf16.msra.mxu1 %v503_v8  ;;  %454 = vmatprep.subr.bf16.mxu0 %v504_v9  ;;  %v520_v25 = vld [vmem:[%s672_s1 + $0x70] sm:$0xff]   ;;  %v524_v29 = vld [vmem:[%s672_s1 + $0x78] sm:$0xff]   ;;  %v83_v37 = vld [vmem:[%s674_s2] sm:$0xff] }
   0xa   :  { %476 = vmatprep.subr.bf16.mxu1 %v505_v10  ;;  %v521_v26 = vld [vmem:[%s672_s1 + $0xf0] sm:$0xff]   ;;  %v525_v30 = vld [vmem:[%s672_s1 + $0xf8] sm:$0xff]   ;;  %87 = vperm.xlu0 %495, %v83_v37   ;;  %v84_v38 = vld [vmem:[%s674_s2 + $0x8] sm:$0xff] }
   0xb   :  { %v522_v27 = vld [vmem:[%s672_s1 + $0x30] sm:$0xff]   ;;  %v526_v31 = vld [vmem:[%s672_s1 + $0x38] sm:$0xff]  }
   0xc   :  { %455 = vmatpush3.bf16.msra.mxu0 %v506_v11  ;;  %v523_v28 = vld [vmem:[%s672_s1 + $0xb0] sm:$0xff]   ;;  %v527_v32 = vld [vmem:[%s672_s1 + $0xb8] sm:$0xff]  }
   0xd   :  { %477 = vmatpush3.bf16.msra.mxu1 %v507_v12  ;;  %456 = vmatprep.subr.bf16.mxu0 %v508_v13  ;;  %v528_v33 = vld [vmem:[%s673_s0] ss:$16 sps:$4 sm:$0xff]   ;;  %v530_v34 = vld [vmem:[%s673_s0 + $0x4] ss:$16 sps:$4 sm:$0xff]   ;;  %v531_v35 = vld [vmem:[%s673_s0 + $0x8] ss:$16 sps:$4 sm:$0xff]  }
   0xe   :  { %478 = vmatprep.subr.bf16.mxu1 %v509_v14  ;;  %v533_v36 = vld [vmem:[%s673_s0 + $0xc] ss:$16 sps:$4 sm:$0xff]   ;;  %339 = vmatprep.mubr.bf16.mxu0 %v530_v34 }
   0xf   :  { %380 = vmatprep.mubr.bf16.mxu1 %v533_v36  ;;  %92 = vperm.xlu0 %495, %v84_v38  }
  0x10   :  { %457 = vmatpush3.bf16.msra.mxu0 %v510_v15 }
  0x11   :  { %479 = vmatpush3.bf16.msra.mxu1 %v511_v16  ;;  %458 = vmatprep.subr.bf16.mxu0 %v512_v17 }
  0x12   :  { %480 = vmatprep.subr.bf16.mxu1 %v513_v18 }
  0x14   :  { %459 = vmatpush3.bf16.msra.mxu0 %v514_v19 }
  0x15   :  { %481 = vmatpush3.bf16.msra.mxu1 %v515_v20  ;;  %460 = vmatprep.subr.bf16.mxu0 %v516_v21 }
  0x16   :  { %482 = vmatprep.subr.bf16.mxu1 %v517_v22 }
  0x18   :  { %461 = vmatpush3.bf16.msra.mxu0 %v518_v23 }
  0x19   :  { %483 = vmatpush3.bf16.msra.mxu1 %v519_v24  ;;  %462 = vmatprep.subr.bf16.mxu0 %v520_v25 }
  0x1a   :  { %484 = vmatprep.subr.bf16.mxu1 %v521_v26 }
  0x1c   :  { %463 = vmatpush3.bf16.msra.mxu0 %v522_v27 }
  0x1d   :  { %485 = vmatpush3.bf16.msra.mxu1 %v523_v28  ;;  %464 = vmatprep.subr.bf16.mxu0 %v524_v29 }
  0x1e   :  { %486 = vmatprep.subr.bf16.mxu1 %v525_v30 }
  0x20   :  { %465 = vmatpush3.bf16.msra.mxu0 %v526_v31 }
  0x21   :  { %487 = vmatpush3.bf16.msra.mxu1 %v527_v32 }
  0x23   :  { %340 = vmatmul.mubr.bf16.vlgmr.msra.gmra.mrb[0].mxu0 %v528_v33 }
  0x24   :  { %381 = vmatmul.mubr.bf16.vlgmr.msra.gmra.mrb[0].mxu1 %v531_v35 }
  0x89   :  { %v88_v39 = vpop.permute.xlu0 %87 }
  0x8e   :  { %v93_v52 = vpop.permute.xlu0 %92 }
  0xf6   :  { %v466_v40 = vpop.f32.mrb[0].mxu0 }
  0xf7   :  { %v488_v41 = vpop.f32.mrb[0].mxu1  ;;  %v467_v42 = vpop.f32.mrb[1].mxu0 }
  0xf8   :  { %v468_v43 = vadd.f32 %v467_v42, %v466_v40  ;;  %v489_v44 = vpop.f32.mrb[1].mxu1  ;;  %v469_v45 = vpop.f32.mrb[2].mxu0 }
  0xf9   :  { %v490_v46 = vadd.f32 %v489_v44, %v488_v41  ;;  %v491_v47 = vpop.f32.mrb[2].mxu1  ;;  %v470_v48 = vpop.f32.mrb[3].mxu0 }
  0xfa   :  { %v342_v49 = vadd.f32 %v468_v43, %v88_v39  ;;  %v471_v50 = vadd.f32 %v470_v48, %v469_v45  ;;  %v492_v51 = vpop.f32.mrb[3].mxu1 }
  0xfb   :  { %v493_v53 = vadd.f32 %v492_v51, %v491_v47 }
  0xfc   :  { %v383_v54 = vadd.f32 %v490_v46, %v342_v49  ;;  %v345_v55 = vadd.f32 %v471_v50, %v93_v52 }
  0xfe   :  { %v386_v56 = vadd.f32 %v493_v53, %v345_v55  ;;  %v389_v57 = vmax.f32 %v383_v54, 0.0 }
 0x100   :  { %v390_v58 = vmax.f32 %v386_v56, 0.0 }
 0x102   :  { %v448_v59 = vpack.c.bf16 %v390_v58, %v389_v57 }
 0x104   :  { %449 = vst [vmem:[%s675_s3] sm:$0xff] %v448_v59  }

// kernel: _lambda_.16
= control target key start
LH: loop header
LB: loop body
LE: loop exit
PB: predicated region body
PF: predicated region fallthrough
CT: control target
= control target key end

     0   :  { %s823_s12 = smov 0   ;;  %s825_s13 = smov 0   ;;  %s989_s0 = inlined_call_operand.vmem [shape: bf16[8,256], index: 0, kind: input, shape index: {}]   ;;  %s990_s1 = inlined_call_operand.vmem [shape: bf16[256,512], index: 1, kind: input, shape index: {}]   ;;  %s991_s2 = inlined_call_operand.vmem [shape: f32[8,1], index: 2, kind: input, shape index: {}]   ;;  %s992_s3 = inlined_call_operand.vmem [shape: bf16[8,512], index: 3, kind: output, shape index: {}]  }
   0x1   :  { %s827_s14 = smov 0  }
   0x2 LB: > { %s652_s15 = sadd.s32 4294967295, %s800_s14   ;;  %s840_s16 = sadd.s32 1, %s800_s14   ;;  %s800_s14 = sphi %s827_s14, %s995_s14   ;;  %s796_s13 = sphi %s825_s13, %s994_s13   ;;  %s792_s12 = sphi %s823_s12, %s993_s12  }
   0x3   : > { %s38_s17 = ssub.s32 %s800_s14, %s840_s16  ;;  %s41_s18 = sadd.s32 1, %s796_s13 }
   0x4   : > { %p39_p0 = scmp.eq.s32.totalorder %s38_s17, 0  ;;  %p48_p1 = scmp.ne.s32.totalorder %s796_s13, %s792_s12 }
   0x5   : > { %p49_p2 = scmp.eq.s32.totalorder %s800_s14, 0  ;;  %p655_p4 = scmp.ge.s32.totalorder %s800_s14, 2 }
   0x6   : > { %s849_s19 = scalar_select %p39_p0, %s796_s13, %s41_s18  }
   0x7   : > { %p50_p3 = por %p49_p2, %p48_p1  ;;  %127 = sbr.rel (%p655_p4) target bundleno = 34 (0x22), region = 24 }
   0xe   : > { %130 = sbr.rel (!%p50_p3) target bundleno = 34 (0x22), region = 28  ;;  %s132_s20 = sand.u32 (%p50_p3), 1, %s796_s13  }
   0xf   : > { %s700_s21 = sshll.u32 (%p50_p3), %s800_s14, 3  ;;  %s656_s22 = sshll.u32 (%p50_p3), %s132_s20, 8 }
  0x10   : > { %s857_s25 = scalar_lea.vmem (%p50_p3), %s990_s1, %s700_s21  ;;  %s862_s26 = scalar_lea.vmem (%p50_p3), [#allocation2], %s656_s22 }
  0x11   : > { %v227_v0 = vld [vmem:[%s857_s25] sm:$0xff] (%p50_p3)  ;;  %v229_v1 = vld [vmem:[%s857_s25 + $0x10] sm:$0xff] (%p50_p3) }
  0x12   : > { %v231_v2 = vld [vmem:[%s857_s25 + $0x20] sm:$0xff] (%p50_p3)  ;;  %228 = vst [vmem:[%s862_s26] sm:$0xff] (%p50_p3), %v227_v0  ;;  %230 = vst [vmem:[%s862_s26 + $0x8] sm:$0xff] (%p50_p3), %v229_v1  ;;  %v233_v3 = vld [vmem:[%s857_s25 + $0x30] sm:$0xff] (%p50_p3) }
  0x13   : > { %232 = vst [vmem:[%s862_s26 + $0x10] sm:$0xff] (%p50_p3), %v231_v2  ;;  %v235_v4 = vld [vmem:[%s857_s25 + $0x40] sm:$0xff] (%p50_p3)  ;;  %v237_v5 = vld [vmem:[%s857_s25 + $0x50] sm:$0xff] (%p50_p3)  ;;  %234 = vst [vmem:[%s862_s26 + $0x18] sm:$0xff] (%p50_p3), %v233_v3 }
  0x14   : > { %236 = vst [vmem:[%s862_s26 + $0x20] sm:$0xff] (%p50_p3), %v235_v4  ;;  %238 = vst [vmem:[%s862_s26 + $0x28] sm:$0xff] (%p50_p3), %v237_v5  ;;  %v239_v6 = vld [vmem:[%s857_s25 + $0x60] sm:$0xff] (%p50_p3)  ;;  %v241_v7 = vld [vmem:[%s857_s25 + $0x70] sm:$0xff] (%p50_p3) }
  0x15   : > { %v243_v8 = vld [vmem:[%s857_s25 + $0x80] sm:$0xff]  ;;  %240 = vst [vmem:[%s862_s26 + $0x30] sm:$0xff] %v239_v6  ;;  %242 = vst [vmem:[%s862_s26 + $0x38] sm:$0xff] %v241_v7  ;;  %v245_v9 = vld [vmem:[%s857_s25 + $0x90] sm:$0xff] }
  0x16   : > { %244 = vst [vmem:[%s862_s26 + $0x40] sm:$0xff] %v243_v8  ;;  %v247_v10 = vld [vmem:[%s857_s25 + $0xa0] sm:$0xff]  ;;  %v249_v11 = vld [vmem:[%s857_s25 + $0xb0] sm:$0xff]  ;;  %246 = vst [vmem:[%s862_s26 + $0x48] sm:$0xff] %v245_v9 }
  0x17   : > { %248 = vst [vmem:[%s862_s26 + $0x50] sm:$0xff] %v247_v10  ;;  %250 = vst [vmem:[%s862_s26 + $0x58] sm:$0xff] %v249_v11  ;;  %v251_v12 = vld [vmem:[%s857_s25 + $0xc0] sm:$0xff]  ;;  %v253_v13 = vld [vmem:[%s857_s25 + $0xd0] sm:$0xff] }
  0x18   : > { %v255_v14 = vld [vmem:[%s857_s25 + $0xe0] sm:$0xff]  ;;  %252 = vst [vmem:[%s862_s26 + $0x60] sm:$0xff] %v251_v12  ;;  %254 = vst [vmem:[%s862_s26 + $0x68] sm:$0xff] %v253_v13  ;;  %v257_v15 = vld [vmem:[%s857_s25 + $0xf0] sm:$0xff] }
  0x19   : > { %256 = vst [vmem:[%s862_s26 + $0x70] sm:$0xff] %v255_v14  ;;  %v259_v16 = vld [vmem:[%s857_s25 + $0x100] sm:$0xff]  ;;  %v261_v17 = vld [vmem:[%s857_s25 + $0x110] sm:$0xff]  ;;  %258 = vst [vmem:[%s862_s26 + $0x78] sm:$0xff] %v257_v15 }
  0x1a   : > { %260 = vst [vmem:[%s862_s26 + $0x80] sm:$0xff] %v259_v16  ;;  %262 = vst [vmem:[%s862_s26 + $0x88] sm:$0xff] %v261_v17  ;;  %v263_v18 = vld [vmem:[%s857_s25 + $0x120] sm:$0xff]  ;;  %v265_v19 = vld [vmem:[%s857_s25 + $0x130] sm:$0xff] }
  0x1b   : > { %v267_v20 = vld [vmem:[%s857_s25 + $0x140] sm:$0xff]  ;;  %264 = vst [vmem:[%s862_s26 + $0x90] sm:$0xff] %v263_v18  ;;  %266 = vst [vmem:[%s862_s26 + $0x98] sm:$0xff] %v265_v19  ;;  %v269_v21 = vld [vmem:[%s857_s25 + $0x150] sm:$0xff] }
  0x1c   : > { %268 = vst [vmem:[%s862_s26 + $0xa0] sm:$0xff] %v267_v20  ;;  %v271_v22 = vld [vmem:[%s857_s25 + $0x160] sm:$0xff]  ;;  %v273_v23 = vld [vmem:[%s857_s25 + $0x170] sm:$0xff]  ;;  %270 = vst [vmem:[%s862_s26 + $0xa8] sm:$0xff] %v269_v21 }
  0x1d   : > { %272 = vst [vmem:[%s862_s26 + $0xb0] sm:$0xff] %v271_v22  ;;  %274 = vst [vmem:[%s862_s26 + $0xb8] sm:$0xff] %v273_v23  ;;  %v275_v24 = vld [vmem:[%s857_s25 + $0x180] sm:$0xff]  ;;  %v277_v25 = vld [vmem:[%s857_s25 + $0x190] sm:$0xff] }
  0x1e   : > { %v279_v26 = vld [vmem:[%s857_s25 + $0x1a0] sm:$0xff]  ;;  %276 = vst [vmem:[%s862_s26 + $0xc0] sm:$0xff] %v275_v24  ;;  %278 = vst [vmem:[%s862_s26 + $0xc8] sm:$0xff] %v277_v25  ;;  %v281_v27 = vld [vmem:[%s857_s25 + $0x1b0] sm:$0xff] }
  0x1f   : > { %280 = vst [vmem:[%s862_s26 + $0xd0] sm:$0xff] %v279_v26  ;;  %v283_v28 = vld [vmem:[%s857_s25 + $0x1c0] sm:$0xff]  ;;  %v285_v29 = vld [vmem:[%s857_s25 + $0x1d0] sm:$0xff]  ;;  %282 = vst [vmem:[%s862_s26 + $0xd8] sm:$0xff] %v281_v27 }
  0x20   : > { %284 = vst [vmem:[%s862_s26 + $0xe0] sm:$0xff] %v283_v28  ;;  %286 = vst [vmem:[%s862_s26 + $0xe8] sm:$0xff] %v285_v29  ;;  %v287_v30 = vld [vmem:[%s857_s25 + $0x1e0] sm:$0xff]  ;;  %v289_v31 = vld [vmem:[%s857_s25 + $0x1f0] sm:$0xff] }
  0x21   : > { %288 = vst [vmem:[%s862_s26 + $0xf0] sm:$0xff] %v287_v30  ;;  %290 = vst [vmem:[%s862_s26 + $0xf8] sm:$0xff] %v289_v31 }
  0x22 PF: > { %p659_p5 = scmp.ge.s32.totalorder %s800_s14, 1  ;;  %p295_p6 = scmp.lt.s32.totalorder %s800_s14, 3 }
  0x24   : > { %p296_p7 = pnand %p659_p5, %p295_p6 }
  0x25   : > { %s302_s27 = sand.u32 (!%p296_p7), 1, %s792_s12   ;;  %v931_v32 = vld [vmem:[%s989_s0] sm:$0xff] (!%p296_p7)  ;;  %v802_v35 = vmov (!%p296_p7), 0   ;;  %s661_s7 = sshll.u32 (!%p296_p7), %s652_s15, 1 }
  0x26   : > { %299 = sbr.rel (%p296_p7) target bundleno = 325 (0x145), region = 66  ;;  %v365_v33 = vld [vmem:[%s991_s2] sm:$0xff] (!%p296_p7)  ;;  %s660_s5 = sshll.u32 (!%p296_p7), %s302_s27, 8  ;;  %v664_v34 = vcombine.high (!%p296_p7), %v931_v32, %v931_v32  ;;  %727 = vset.pattern.permute.xlu0 (!%p296_p7), %v802_v35  ;;  %v663_v4 = vcombine.low (!%p296_p7), %v931_v32, %v931_v32 }
  0x27   : > { %368 = vperm.xlu0 (!%p296_p7), %727, %v365_v33   ;;  %s938_s6 = scalar_lea.vmem (!%p296_p7), [#allocation2], %s660_s5  ;;  %p327_p8 = scmp.lt.s32.totalorder (!%p296_p7), %s661_s7, 3 }
  0x28   : > { %v728_v36 = vld [vmem:[%s938_s6 + $0x4] ss:$8 sps:$4 sm:$0xff] (!%p296_p7)   ;;  %570 = vmatprep.mubr.bf16.mxu0 (!%p296_p7), %v664_v34  ;;  %v730_v37 = vld [vmem:[%s938_s6] ss:$8 sps:$4 sm:$0xff] (!%p296_p7)   ;;  %v731_v38 = vld [vmem:[%s938_s6 + $0x14] ss:$8 sps:$4 sm:$0xff] (!%p296_p7)  }
  0x29   : > { %538 = vmatprep.subr.bf16.mxu0 (!%p296_p7), %v728_v36  ;;  %v733_v39 = vld [vmem:[%s938_s6 + $0x10] ss:$8 sps:$4 sm:$0xff] (!%p296_p7)   ;;  %v734_v40 = vld [vmem:[%s938_s6 + $0x24] ss:$8 sps:$4 sm:$0xff] (!%p296_p7)   ;;  %v736_v41 = vld [vmem:[%s938_s6 + $0x20] ss:$8 sps:$4 sm:$0xff] (!%p296_p7)  }
  0x2a   : > { %539 = vmatpush1.bf16.msra.mxu0 (!%p296_p7), %v730_v37  ;;  %v737_v42 = vld [vmem:[%s938_s6 + $0x34] ss:$8 sps:$4 sm:$0xff] (!%p296_p7)   ;;  %v739_v43 = vld [vmem:[%s938_s6 + $0x30] ss:$8 sps:$4 sm:$0xff] (!%p296_p7)   ;;  %v740_v44 = vld [vmem:[%s938_s6 + $0x44] ss:$8 sps:$4 sm:$0xff] (!%p296_p7)  }
  0x2b   : > { %540 = vmatprep.subr.bf16.mxu0 (!%p296_p7), %v731_v38  ;;  %v742_v45 = vld [vmem:[%s938_s6 + $0x40] ss:$8 sps:$4 sm:$0xff] (!%p296_p7)   ;;  %v743_v46 = vld [vmem:[%s938_s6 + $0x54] ss:$8 sps:$4 sm:$0xff] (!%p296_p7)   ;;  %v745_v47 = vld [vmem:[%s938_s6 + $0x50] ss:$8 sps:$4 sm:$0xff] (!%p296_p7)  }
  0x2c   : > { %v746_v48 = vld [vmem:[%s938_s6 + $0x64] ss:$8 sps:$4 sm:$0xff] (!%p296_p7)   ;;  %v748_v49 = vld [vmem:[%s938_s6 + $0x60] ss:$8 sps:$4 sm:$0xff] (!%p296_p7)   ;;  %v749_v50 = vld [vmem:[%s938_s6 + $0x74] ss:$8 sps:$4 sm:$0xff] (!%p296_p7)  }
  0x2d   : > { %v751_v51 = vld [vmem:[%s938_s6 + $0x70] ss:$8 sps:$4 sm:$0xff]   ;;  %v752_v52 = vld [vmem:[%s938_s6 + $0x84] ss:$8 sps:$4 sm:$0xff]   ;;  %v754_v53 = vld [vmem:[%s938_s6 + $0x80] ss:$8 sps:$4 sm:$0xff]  }
  0x2e   : > { %541 = vmatpush1.bf16.msra.mxu0 %v733_v39  ;;  %v755_v54 = vld [vmem:[%s938_s6 + $0x94] ss:$8 sps:$4 sm:$0xff]   ;;  %v757_v55 = vld [vmem:[%s938_s6 + $0x90] ss:$8 sps:$4 sm:$0xff]   ;;  %v758_v56 = vld [vmem:[%s938_s6 + $0xa4] ss:$8 sps:$4 sm:$0xff]  }
  0x2f   : > { %542 = vmatprep.subr.bf16.mxu0 %v734_v40  ;;  %v760_v57 = vld [vmem:[%s938_s6 + $0xa0] ss:$8 sps:$4 sm:$0xff]   ;;  %v761_v58 = vld [vmem:[%s938_s6 + $0xb4] ss:$8 sps:$4 sm:$0xff]   ;;  %v763_v59 = vld [vmem:[%s938_s6 + $0xb0] ss:$8 sps:$4 sm:$0xff]  }
  0x30   : > { %v764_v60 = vld [vmem:[%s938_s6 + $0xc4] ss:$8 sps:$4 sm:$0xff]   ;;  %v766_v61 = vld [vmem:[%s938_s6 + $0xc0] ss:$8 sps:$4 sm:$0xff]   ;;  %v767_v62 = vld [vmem:[%s938_s6 + $0xd4] ss:$8 sps:$4 sm:$0xff]  }
  0x31   : > { %v769_v63 = vld [vmem:[%s938_s6 + $0xd0] ss:$8 sps:$4 sm:$0xff]   ;;  %v770_v0 = vld [vmem:[%s938_s6 + $0xe4] ss:$8 sps:$4 sm:$0xff]   ;;  %v772_v1 = vld [vmem:[%s938_s6 + $0xe0] ss:$8 sps:$4 sm:$0xff]  }
  0x32   : > { %543 = vmatpush1.bf16.msra.mxu0 %v736_v41  ;;  %v773_v2 = vld [vmem:[%s938_s6 + $0xf4] ss:$8 sps:$4 sm:$0xff]   ;;  %v775_v3 = vld [vmem:[%s938_s6 + $0xf0] ss:$8 sps:$4 sm:$0xff]   ;;  %s997_s7 = smov (!%p327_p8, %s661_s7), 3 }
  0x33   : > { %544 = vmatprep.subr.bf16.mxu0 %v737_v42  ;;  %s662_s8 = sshll.u32 %s997_s7, 2 }
  0x34   : > { %s330_s11 = scalar_lea.vmem %s992_s3, %s662_s8 }
  0x36   : > { %545 = vmatpush1.bf16.msra.mxu0 %v739_v43 }
  0x37   : > { %546 = vmatprep.subr.bf16.mxu0 %v740_v44 }
  0x3a   : > { %547 = vmatpush1.bf16.msra.mxu0 %v742_v45 }
  0x3b   : > { %548 = vmatprep.subr.bf16.mxu0 %v743_v46 }
  0x3e   : > { %549 = vmatpush1.bf16.msra.mxu0 %v745_v47 }
  0x3f   : > { %550 = vmatprep.subr.bf16.mxu0 %v746_v48 }
  0x42   : > { %551 = vmatpush1.bf16.msra.mxu0 %v748_v49 }
  0x43   : > { %552 = vmatprep.subr.bf16.mxu0 %v749_v50 }
  0x46   : > { %553 = vmatpush1.bf16.msra.mxu0 %v751_v51 }
  0x47   : > { %554 = vmatprep.subr.bf16.mxu0 %v752_v52 }
  0x4a   : > { %555 = vmatpush1.bf16.msra.mxu0 %v754_v53 }
  0x4b   : > { %556 = vmatprep.subr.bf16.mxu0 %v755_v54 }
  0x4e   : > { %557 = vmatpush1.bf16.msra.mxu0 %v757_v55 }
  0x4f   : > { %558 = vmatprep.subr.bf16.mxu0 %v758_v56 }
  0x52   : > { %559 = vmatpush1.bf16.msra.mxu0 %v760_v57 }
  0x53   : > { %560 = vmatprep.subr.bf16.mxu0 %v761_v58 }
  0x56   : > { %561 = vmatpush1.bf16.msra.mxu0 %v763_v59 }
  0x57   : > { %562 = vmatprep.subr.bf16.mxu0 %v764_v60 }
  0x5a   : > { %563 = vmatpush1.bf16.msra.mxu0 %v766_v61 }
  0x5b   : > { %564 = vmatprep.subr.bf16.mxu0 %v767_v62 }
  0x5e   : > { %565 = vmatpush1.bf16.msra.mxu0 %v769_v63 }
  0x5f   : > { %566 = vmatprep.subr.bf16.mxu0 %v770_v0 }
  0x62   : > { %567 = vmatpush1.bf16.msra.mxu0 %v772_v1 }
  0x63   : > { %568 = vmatprep.subr.bf16.mxu0 %v773_v2 }
  0x66   : > { %569 = vmatpush1.bf16.msra.mxu0 %v775_v3 }
  0x69   : > { %571 = vmatmul.mubr.bf16.vlgmr.msra.gmra.mrb[0].mxu0 %v663_v4 }
  0xa6   : > { %v369_v5 = vpop.permute.xlu0 %368 }
 0x13c   : > { %v572_v6 = vpop.f32.mrb[0].mxu0 }
 0x13d   : > { %v573_v7 = vadd.f32 %v572_v6, %v369_v5  ;;  %v574_v8 = vpop.f32.mrb[1].mxu0 }
 0x13e   : > { %v575_v9 = vadd.f32 %v574_v8, %v369_v5  ;;  %v576_v10 = vpop.f32.mrb[2].mxu0 }
 0x13f   : > { %v579_v11 = vmax.f32 %v573_v7, 0.0  ;;  %v577_v12 = vpop.f32.mrb[3].mxu0 }
 0x140   : > { %v580_v13 = vmax.f32 %v575_v9, 0.0 }
 0x142   : > { %v701_v14 = vpack.c.bf16 %v580_v13, %v579_v11 }
 0x144   : > { %589 = vst [vmem:[%s330_s11] sm:$0xff] %v701_v14 }
 0x145 PF: > { %p10_p9 = scmp.ge.s32.totalorder %s840_s16, 4   ;;  %s993_s12 = smov %s796_s13 }
 0x146   : > { %s994_s13 = smov %s849_s19  ;;  %s995_s14 = smov %s840_s16 }
 0x147   :  { %12 = sbr.rel (!%p10_p9) target bundleno = 2 (0x2), region = 105 }

// kernel: _lambda_.17
= control target key start
LH: loop header
LB: loop body
LE: loop exit
PB: predicated region body
PF: predicated region fallthrough
CT: control target
= control target key end

     0   :  { %s772_s12 = smov 0   ;;  %s774_s13 = smov 0   ;;  %s932_s0 = inlined_call_operand.vmem [shape: bf16[8,128], index: 0, kind: input, shape index: {}]   ;;  %s933_s1 = inlined_call_operand.vmem [shape: bf16[128,2048], index: 1, kind: input, shape index: {}]   ;;  %s934_s2 = inlined_call_operand.vmem [shape: f32[8,1], index: 2, kind: input, shape index: {}]   ;;  %s935_s3 = inlined_call_operand.vmem [shape: f32[8,2048], index: 3, kind: output, shape index: {}]  }
   0x1   :  { %s776_s14 = smov 0  }
   0x2 LB: > { %s607_s15 = sadd.s32 4294967295, %s749_s14   ;;  %s789_s16 = sadd.s32 1, %s749_s14   ;;  %s749_s14 = sphi %s776_s14, %s938_s14   ;;  %s745_s13 = sphi %s774_s13, %s937_s13   ;;  %s741_s12 = sphi %s772_s12, %s936_s12  }
   0x3   : > { %s38_s17 = ssub.s32 %s749_s14, %s789_s16  ;;  %s41_s18 = sadd.s32 1, %s745_s13 }
   0x4   : > { %p39_p0 = scmp.eq.s32.totalorder %s38_s17, 0  ;;  %p48_p1 = scmp.ne.s32.totalorder %s745_s13, %s741_s12 }
   0x5   : > { %p49_p2 = scmp.eq.s32.totalorder %s749_s14, 0  ;;  %p610_p4 = scmp.ge.s32.totalorder %s749_s14, 4 }
   0x6   : > { %s798_s19 = scalar_select %p39_p0, %s745_s13, %s41_s18  }
   0x7   : > { %p50_p3 = por %p49_p2, %p48_p1  ;;  %127 = sbr.rel (%p610_p4) target bundleno = 34 (0x22), region = 24 }
   0xe   : > { %130 = sbr.rel (!%p50_p3) target bundleno = 34 (0x22), region = 28  ;;  %s132_s20 = sand.u32 (%p50_p3), 1, %s745_s13  }
   0xf   : > { %s652_s21 = sshll.u32 (%p50_p3), %s749_s14, 4  ;;  %s611_s22 = sshll.u32 (%p50_p3), %s132_s20, 8 }
  0x10   : > { %s806_s25 = scalar_lea.vmem (%p50_p3), %s933_s1, %s652_s21  ;;  %s811_s26 = scalar_lea.vmem (%p50_p3), [#allocation2], %s611_s22 }
  0x11   : > { %v150_v0 = vld [vmem:[%s806_s25] sm:$0xff] (%p50_p3)  ;;  %v152_v1 = vld [vmem:[%s806_s25 + $0x8] sm:$0xff] (%p50_p3) }
  0x12   : > { %v154_v2 = vld [vmem:[%s806_s25 + $0x40] sm:$0xff] (%p50_p3)  ;;  %151 = vst [vmem:[%s811_s26] sm:$0xff] (%p50_p3), %v150_v0  ;;  %153 = vst [vmem:[%s811_s26 + $0x8] sm:$0xff] (%p50_p3), %v152_v1  ;;  %v156_v3 = vld [vmem:[%s806_s25 + $0x48] sm:$0xff] (%p50_p3) }
  0x13   : > { %155 = vst [vmem:[%s811_s26 + $0x10] sm:$0xff] (%p50_p3), %v154_v2  ;;  %v158_v4 = vld [vmem:[%s806_s25 + $0x80] sm:$0xff] (%p50_p3)  ;;  %v160_v5 = vld [vmem:[%s806_s25 + $0x88] sm:$0xff] (%p50_p3)  ;;  %157 = vst [vmem:[%s811_s26 + $0x18] sm:$0xff] (%p50_p3), %v156_v3 }
  0x14   : > { %159 = vst [vmem:[%s811_s26 + $0x20] sm:$0xff] (%p50_p3), %v158_v4  ;;  %161 = vst [vmem:[%s811_s26 + $0x28] sm:$0xff] (%p50_p3), %v160_v5  ;;  %v162_v6 = vld [vmem:[%s806_s25 + $0xc0] sm:$0xff] (%p50_p3)  ;;  %v164_v7 = vld [vmem:[%s806_s25 + $0xc8] sm:$0xff] (%p50_p3) }
  0x15   : > { %v166_v8 = vld [vmem:[%s806_s25 + $0x100] sm:$0xff]  ;;  %163 = vst [vmem:[%s811_s26 + $0x30] sm:$0xff] %v162_v6  ;;  %165 = vst [vmem:[%s811_s26 + $0x38] sm:$0xff] %v164_v7  ;;  %v168_v9 = vld [vmem:[%s806_s25 + $0x108] sm:$0xff] }
  0x16   : > { %167 = vst [vmem:[%s811_s26 + $0x40] sm:$0xff] %v166_v8  ;;  %v170_v10 = vld [vmem:[%s806_s25 + $0x140] sm:$0xff]  ;;  %v172_v11 = vld [vmem:[%s806_s25 + $0x148] sm:$0xff]  ;;  %169 = vst [vmem:[%s811_s26 + $0x48] sm:$0xff] %v168_v9 }
  0x17   : > { %171 = vst [vmem:[%s811_s26 + $0x50] sm:$0xff] %v170_v10  ;;  %173 = vst [vmem:[%s811_s26 + $0x58] sm:$0xff] %v172_v11  ;;  %v174_v12 = vld [vmem:[%s806_s25 + $0x180] sm:$0xff]  ;;  %v176_v13 = vld [vmem:[%s806_s25 + $0x188] sm:$0xff] }
  0x18   : > { %v178_v14 = vld [vmem:[%s806_s25 + $0x1c0] sm:$0xff]  ;;  %175 = vst [vmem:[%s811_s26 + $0x60] sm:$0xff] %v174_v12  ;;  %177 = vst [vmem:[%s811_s26 + $0x68] sm:$0xff] %v176_v13  ;;  %v180_v15 = vld [vmem:[%s806_s25 + $0x1c8] sm:$0xff] }
  0x19   : > { %179 = vst [vmem:[%s811_s26 + $0x70] sm:$0xff] %v178_v14  ;;  %v182_v16 = vld [vmem:[%s806_s25 + $0x200] sm:$0xff]  ;;  %v184_v17 = vld [vmem:[%s806_s25 + $0x208] sm:$0xff]  ;;  %181 = vst [vmem:[%s811_s26 + $0x78] sm:$0xff] %v180_v15 }
  0x1a   : > { %183 = vst [vmem:[%s811_s26 + $0x80] sm:$0xff] %v182_v16  ;;  %185 = vst [vmem:[%s811_s26 + $0x88] sm:$0xff] %v184_v17  ;;  %v186_v18 = vld [vmem:[%s806_s25 + $0x240] sm:$0xff]  ;;  %v188_v19 = vld [vmem:[%s806_s25 + $0x248] sm:$0xff] }
  0x1b   : > { %v190_v20 = vld [vmem:[%s806_s25 + $0x280] sm:$0xff]  ;;  %187 = vst [vmem:[%s811_s26 + $0x90] sm:$0xff] %v186_v18  ;;  %189 = vst [vmem:[%s811_s26 + $0x98] sm:$0xff] %v188_v19  ;;  %v192_v21 = vld [vmem:[%s806_s25 + $0x288] sm:$0xff] }
  0x1c   : > { %191 = vst [vmem:[%s811_s26 + $0xa0] sm:$0xff] %v190_v20  ;;  %v194_v22 = vld [vmem:[%s806_s25 + $0x2c0] sm:$0xff]  ;;  %v196_v23 = vld [vmem:[%s806_s25 + $0x2c8] sm:$0xff]  ;;  %193 = vst [vmem:[%s811_s26 + $0xa8] sm:$0xff] %v192_v21 }
  0x1d   : > { %195 = vst [vmem:[%s811_s26 + $0xb0] sm:$0xff] %v194_v22  ;;  %197 = vst [vmem:[%s811_s26 + $0xb8] sm:$0xff] %v196_v23  ;;  %v198_v24 = vld [vmem:[%s806_s25 + $0x300] sm:$0xff]  ;;  %v200_v25 = vld [vmem:[%s806_s25 + $0x308] sm:$0xff] }
  0x1e   : > { %v202_v26 = vld [vmem:[%s806_s25 + $0x340] sm:$0xff]  ;;  %199 = vst [vmem:[%s811_s26 + $0xc0] sm:$0xff] %v198_v24  ;;  %201 = vst [vmem:[%s811_s26 + $0xc8] sm:$0xff] %v200_v25  ;;  %v204_v27 = vld [vmem:[%s806_s25 + $0x348] sm:$0xff] }
  0x1f   : > { %203 = vst [vmem:[%s811_s26 + $0xd0] sm:$0xff] %v202_v26  ;;  %v206_v28 = vld [vmem:[%s806_s25 + $0x380] sm:$0xff]  ;;  %v208_v29 = vld [vmem:[%s806_s25 + $0x388] sm:$0xff]  ;;  %205 = vst [vmem:[%s811_s26 + $0xd8] sm:$0xff] %v204_v27 }
  0x20   : > { %207 = vst [vmem:[%s811_s26 + $0xe0] sm:$0xff] %v206_v28  ;;  %209 = vst [vmem:[%s811_s26 + $0xe8] sm:$0xff] %v208_v29  ;;  %v210_v30 = vld [vmem:[%s806_s25 + $0x3c0] sm:$0xff]  ;;  %v212_v31 = vld [vmem:[%s806_s25 + $0x3c8] sm:$0xff] }
  0x21   : > { %211 = vst [vmem:[%s811_s26 + $0xf0] sm:$0xff] %v210_v30  ;;  %213 = vst [vmem:[%s811_s26 + $0xf8] sm:$0xff] %v212_v31 }
  0x22 PF: > { %p614_p5 = scmp.ge.s32.totalorder %s749_s14, 1  ;;  %p218_p6 = scmp.lt.s32.totalorder %s749_s14, 5 }
  0x24   : > { %p219_p7 = pnand %p614_p5, %p218_p6 }
  0x25   : > { %s225_s27 = sand.u32 (!%p219_p7), 1, %s741_s12   ;;  %v289_v32 = vld [vmem:[%s934_s2] sm:$0xff] (!%p219_p7)  ;;  %v751_v33 = vmov (!%p219_p7), 0   ;;  %s616_s7 = sshll.u32 (!%p219_p7), %s607_s15, 2 }
  0x26   : > { %222 = sbr.rel (%p219_p7) target bundleno = 291 (0x123), region = 51  ;;  %s615_s30 = sshll.u32 (!%p219_p7), %s225_s27, 8  ;;  %487 = vmatprep.mubr.bf16.mxu0 (!%p219_p7), %v751_v33  ;;  %528 = vmatprep.mubr.bf16.mxu1 (!%p219_p7), %v751_v33  ;;  %v256_v2 = vld [vmem:[%s932_s0] sm:$0xf] (!%p219_p7) }
  0x27   : > { %678 = vset.pattern.permute.xlu0 (!%p219_p7), %v751_v33  ;;  %s880_s4 = scalar_lea.vmem (!%p219_p7), [#allocation2], %s615_s30  ;;  %p250_p8 = scmp.lt.s32.totalorder (!%p219_p7), %s616_s7, 15 }
  0x28   : > { %v679_v34 = vld [vmem:[%s880_s4 + $0x4] ss:$16 sps:$4 sm:$0xff] (!%p219_p7)   ;;  %292 = vperm.xlu0 (!%p219_p7), %678, %v289_v32   ;;  %v681_v35 = vld [vmem:[%s880_s4 + $0xc] ss:$16 sps:$4 sm:$0xff] (!%p219_p7)   ;;  %v683_v36 = vld [vmem:[%s880_s4] ss:$16 sps:$4 sm:$0xff] (!%p219_p7)  }
  0x29   : > { %455 = vmatprep.subr.bf16.mxu0 (!%p219_p7), %v679_v34  ;;  %v684_v37 = vld [vmem:[%s880_s4 + $0x8] ss:$16 sps:$4 sm:$0xff] (!%p219_p7)   ;;  %496 = vmatprep.subr.bf16.mxu1 (!%p219_p7), %v681_v35  ;;  %v685_v38 = vld [vmem:[%s880_s4 + $0x24] ss:$16 sps:$4 sm:$0xff] (!%p219_p7)   ;;  %v687_v39 = vld [vmem:[%s880_s4 + $0x2c] ss:$16 sps:$4 sm:$0xff] (!%p219_p7)  }
  0x2a   : > { %456 = vmatpush1.bf16.msra.mxu0 (!%p219_p7), %v683_v36  ;;  %497 = vmatpush1.bf16.msra.mxu1 (!%p219_p7), %v684_v37  ;;  %v689_v40 = vld [vmem:[%s880_s4 + $0x20] ss:$16 sps:$4 sm:$0xff] (!%p219_p7)   ;;  %v690_v41 = vld [vmem:[%s880_s4 + $0x28] ss:$16 sps:$4 sm:$0xff] (!%p219_p7)   ;;  %v691_v42 = vld [vmem:[%s880_s4 + $0x44] ss:$16 sps:$4 sm:$0xff] (!%p219_p7)  }
  0x2b   : > { %457 = vmatprep.subr.bf16.mxu0 (!%p219_p7), %v685_v38  ;;  %498 = vmatprep.subr.bf16.mxu1 (!%p219_p7), %v687_v39  ;;  %v693_v43 = vld [vmem:[%s880_s4 + $0x4c] ss:$16 sps:$4 sm:$0xff] (!%p219_p7)   ;;  %v695_v44 = vld [vmem:[%s880_s4 + $0x40] ss:$16 sps:$4 sm:$0xff] (!%p219_p7)   ;;  %v696_v45 = vld [vmem:[%s880_s4 + $0x48] ss:$16 sps:$4 sm:$0xff] (!%p219_p7)  }
  0x2c   : > { %v697_v46 = vld [vmem:[%s880_s4 + $0x64] ss:$16 sps:$4 sm:$0xff] (!%p219_p7)   ;;  %v699_v47 = vld [vmem:[%s880_s4 + $0x6c] ss:$16 sps:$4 sm:$0xff] (!%p219_p7)   ;;  %v701_v48 = vld [vmem:[%s880_s4 + $0x60] ss:$16 sps:$4 sm:$0xff] (!%p219_p7)  }
  0x2d   : > { %v702_v49 = vld [vmem:[%s880_s4 + $0x68] ss:$16 sps:$4 sm:$0xff]   ;;  %v703_v50 = vld [vmem:[%s880_s4 + $0x84] ss:$16 sps:$4 sm:$0xff]   ;;  %v705_v51 = vld [vmem:[%s880_s4 + $0x8c] ss:$16 sps:$4 sm:$0xff]  }
  0x2e   : > { %458 = vmatpush1.bf16.msra.mxu0 %v689_v40  ;;  %499 = vmatpush1.bf16.msra.mxu1 %v690_v41  ;;  %v707_v52 = vld [vmem:[%s880_s4 + $0x80] ss:$16 sps:$4 sm:$0xff]   ;;  %v708_v53 = vld [vmem:[%s880_s4 + $0x88] ss:$16 sps:$4 sm:$0xff]   ;;  %v709_v54 = vld [vmem:[%s880_s4 + $0xa4] ss:$16 sps:$4 sm:$0xff]  }
  0x2f   : > { %459 = vmatprep.subr.bf16.mxu0 %v691_v42  ;;  %500 = vmatprep.subr.bf16.mxu1 %v693_v43  ;;  %v711_v55 = vld [vmem:[%s880_s4 + $0xac] ss:$16 sps:$4 sm:$0xff]   ;;  %v713_v56 = vld [vmem:[%s880_s4 + $0xa0] ss:$16 sps:$4 sm:$0xff]   ;;  %v714_v57 = vld [vmem:[%s880_s4 + $0xa8] ss:$16 sps:$4 sm:$0xff]  }
  0x30   : > { %v715_v58 = vld [vmem:[%s880_s4 + $0xc4] ss:$16 sps:$4 sm:$0xff]   ;;  %v717_v59 = vld [vmem:[%s880_s4 + $0xcc] ss:$16 sps:$4 sm:$0xff]   ;;  %v719_v60 = vld [vmem:[%s880_s4 + $0xc0] ss:$16 sps:$4 sm:$0xff]  }
  0x31   : > { %v720_v61 = vld [vmem:[%s880_s4 + $0xc8] ss:$16 sps:$4 sm:$0xff]   ;;  %v721_v62 = vld [vmem:[%s880_s4 + $0xe4] ss:$16 sps:$4 sm:$0xff]   ;;  %v723_v63 = vld [vmem:[%s880_s4 + $0xec] ss:$16 sps:$4 sm:$0xff]  }
  0x32   : > { %460 = vmatpush1.bf16.msra.mxu0 %v695_v44  ;;  %501 = vmatpush1.bf16.msra.mxu1 %v696_v45  ;;  %v725_v0 = vld [vmem:[%s880_s4 + $0xe0] ss:$16 sps:$4 sm:$0xff]   ;;  %v726_v1 = vld [vmem:[%s880_s4 + $0xe8] ss:$16 sps:$4 sm:$0xff]   ;;  %s940_s7 = smov (!%p250_p8, %s616_s7), 15 }
  0x33   : > { %461 = vmatprep.subr.bf16.mxu0 %v697_v46  ;;  %502 = vmatprep.subr.bf16.mxu1 %v699_v47  ;;  %s617_s8 = sshll.u32 %s940_s7, 3 }
  0x34   : > { %s253_s11 = scalar_lea.vmem %s935_s3, %s617_s8 }
  0x36   : > { %462 = vmatpush1.bf16.msra.mxu0 %v701_v48  ;;  %503 = vmatpush1.bf16.msra.mxu1 %v702_v49 }
  0x37   : > { %463 = vmatprep.subr.bf16.mxu0 %v703_v50  ;;  %504 = vmatprep.subr.bf16.mxu1 %v705_v51 }
  0x3a   : > { %464 = vmatpush1.bf16.msra.mxu0 %v707_v52  ;;  %505 = vmatpush1.bf16.msra.mxu1 %v708_v53 }
  0x3b   : > { %465 = vmatprep.subr.bf16.mxu0 %v709_v54  ;;  %506 = vmatprep.subr.bf16.mxu1 %v711_v55 }
  0x3e   : > { %466 = vmatpush1.bf16.msra.mxu0 %v713_v56  ;;  %507 = vmatpush1.bf16.msra.mxu1 %v714_v57 }
  0x3f   : > { %467 = vmatprep.subr.bf16.mxu0 %v715_v58  ;;  %508 = vmatprep.subr.bf16.mxu1 %v717_v59 }
  0x42   : > { %468 = vmatpush1.bf16.msra.mxu0 %v719_v60  ;;  %509 = vmatpush1.bf16.msra.mxu1 %v720_v61 }
  0x43   : > { %469 = vmatprep.subr.bf16.mxu0 %v721_v62  ;;  %510 = vmatprep.subr.bf16.mxu1 %v723_v63 }
  0x46   : > { %470 = vmatpush1.bf16.msra.mxu0 %v725_v0  ;;  %511 = vmatpush1.bf16.msra.mxu1 %v726_v1 }
  0x49   : > { %488 = vmatmul.mubr.bf16.vlgmr.msra.gmra.mrb[0].mxu0 %v256_v2  ;;  %529 = vmatmul.mubr.bf16.vlgmr.msra.gmra.mrb[0].mxu1 %v256_v2 }
  0xa7   : > { %v293_v3 = vpop.permute.xlu0 %292 }
 0x11c   : > { %v489_v4 = vpop.f32.mrb[0].mxu0  ;;  %v530_v5 = vpop.f32.mrb[0].mxu1 }
 0x11d   : > { %v490_v6 = vadd.f32 %v489_v4, %v293_v3  ;;  %v531_v7 = vadd.f32 %v530_v5, %v293_v3  ;;  %v491_v8 = vpop.f32.mrb[1].mxu0  ;;  %v532_v9 = vpop.f32.mrb[1].mxu1 }
 0x11e   : > { %v492_v10 = vadd.f32 %v491_v8, %v293_v3  ;;  %v533_v11 = vadd.f32 %v532_v9, %v293_v3  ;;  %v493_v12 = vpop.f32.mrb[2].mxu0  ;;  %v534_v13 = vpop.f32.mrb[2].mxu1 }
 0x11f   : > { %v537_v14 = vmax.f32 %v490_v6, 0.0  ;;  %v539_v15 = vmax.f32 %v531_v7, 0.0  ;;  %v494_v16 = vpop.f32.mrb[3].mxu0  ;;  %v535_v17 = vpop.f32.mrb[3].mxu1 }
 0x120   : > { %v538_v18 = vmax.f32 %v492_v10, 0.0  ;;  %v540_v19 = vmax.f32 %v533_v11, 0.0 }
 0x121   : > { %541 = vst [vmem:[%s253_s11] sm:$0xff] %v537_v14  ;;  %543 = vst [vmem:[%s253_s11 + $0x10] sm:$0xff] %v539_v15 }
 0x122   : > { %542 = vst [vmem:[%s253_s11 + $0x8] sm:$0xff] %v538_v18  ;;  %544 = vst [vmem:[%s253_s11 + $0x18] sm:$0xff] %v540_v19 }
 0x123 PF: > { %p10_p9 = scmp.ge.s32.totalorder %s789_s16, 6   ;;  %s936_s12 = smov %s745_s13 }
 0x124   : > { %s937_s13 = smov %s798_s19  ;;  %s938_s14 = smov %s789_s16 }
 0x125   :  { %12 = sbr.rel (!%p10_p9) target bundleno = 2 (0x2), region = 90 }

</bundles_post_ra>
